<compile_context>
chip_gen: v7x
topology: tpu7x:2x2x1
jax: 0.10.0
libtpu: 0.0.40
codegen_flags: <defaults>
</compile_context>

<pallas_src>
import functools

import jax
import jax.numpy as jnp
from jax.experimental import pallas as pl
from jax.experimental.pallas import tpu as pltpu


_INV_SQRT2 = 0.7071067811865476
_LANE = 128  # pad channel / embedding dims to the TPU lane width (lane-dense)


# ----------------------------- in-kernel helpers -----------------------------

def _erf(z):
    # Abramowitz & Stegun 7.1.26, max abs error ~1.5e-7.
    a1, a2, a3, a4, a5 = 0.254829592, -0.284496736, 1.421413741, -1.453152027, 1.061405429
    p = 0.3275911
    sign = jnp.where(z >= 0.0, 1.0, -1.0)
    az = jnp.abs(z)
    t = 1.0 / (1.0 + p * az)
    poly = ((((a5 * t + a4) * t + a3) * t + a2) * t + a1) * t
    return sign * (1.0 - poly * jnp.exp(-az * az))


def _gelu_exact(x):
    return 0.5 * x * (1.0 + _erf(x * _INV_SQRT2))


def _shifted(x, s, circular):
    """xs[t, :] = x[t + s, :] with circular wrap or zero padding. x:(L,C), s static."""
    L = x.shape[0]
    if circular:
        r = (-s) % L                       # pltpu.roll follows np.roll semantics
        if r == 0:
            return x
        return pltpu.roll(x, r, axis=0)    # XLU sublane rotate
    if s == 0:
        return x
    if abs(s) >= L:
        return jnp.zeros_like(x)
    rolled = pltpu.roll(x, (-s) % L, axis=0)
    t_idx = jax.lax.broadcasted_iota(jnp.int32, x.shape, 0)
    valid = (t_idx < (L - s)) if s > 0 else (t_idx >= (-s))
    return jnp.where(valid, rolled, 0.0)


# ------------------------------- fused kernel --------------------------------

def _cdil_fused_kernel(x_ref, w_ref, bc_ref, rw_ref, rb_ref, hw_ref, hb_ref, o_ref,
                       *, layer_meta, K):
    """Whole CDIL forward for one batch element (grid axis = batch, 'parallel').

    x_ref : (1, L, CP)       channel-padded input activation
    w_ref : (N, K*CP, CP)    per-layer fused-tap conv weights (zero padded)
    bc_ref: (N, 1, CP)       per-layer conv bias (zeros on deformable layers)
    rw_ref: (N, CP, CP)      per-layer residual 1x1 conv weight (zeros if unused)
    rb_ref: (N, 1, CP)       per-layer residual bias
    hw_ref: (CP, EP)         head linear weight
    hb_ref: (1, EP)          head linear bias
    o_ref : (1, 1, EP)
    """
    x = x_ref[0].astype(jnp.float32)                      # (L, CP), stays in VMEM/vregs
    center = K // 2
    for i, (dil, circular, has_res) in enumerate(layer_meta):
        # Deformable layers: offsets == 0 and mask == 1 (zero-init convs), so the
        # modulator branch is elided (gated by a trace-time flag in pack_params).
        taps = [_shifted(x, (k - center) * dil, circular) for k in range(K)]
        xs_cat = jnp.concatenate(taps, axis=1)            # (L, K*CP) -> one MXU matmul
        out = jnp.dot(xs_cat, w_ref[i], preferred_element_type=jnp.float32) + bc_ref[i]
        y = _gelu_exact(out)
        if has_res:
            res = jnp.dot(x, rw_ref[i], preferred_element_type=jnp.float32) + rb_ref[i]
        else:
            res = x
        x = y + res

    # Fused head: mean over length of the VMEM-resident final activation, then Linear.
    m = jnp.mean(x, axis=0, keepdims=True)                # (1, CP)
    o = jnp.dot(m, hw_ref[...], preferred_element_type=jnp.float32) + hb_ref[...]
    o_ref[0] = o.astype(o_ref.dtype)


# ------------------------------- host wrappers --------------------------------

def _pad_to(a, shape):
    return jnp.pad(a, [(0, t - s) for s, t in zip(a.shape, shape)])


def pack_params(raw_layers, head, cp=_LANE, ep=_LANE):
    """Pad / stack per-layer params into lane-dense, layer-stacked tensors."""
    ws, bs, rws, rbs, meta = [], [], [], [], []
    K = raw_layers[0]["w"].shape[0]
    for lp in raw_layers:
        if not lp["modulator_is_zero"]:
            # TODO(synk): trained (non-zero) modulator/offset weights would need the
            # full deform_conv2d path (per-tap mask + bilinear sampling); unreachable
            # here because both convs are zero-initialized in __init__ (forward only).
            raise NotImplementedError("non-zero modulator/offset weights not supported")
        ws.append(_pad_to(lp["w"], (K, cp, cp)).reshape(K * cp, cp))  # fused-tap weight
        bs.append(_pad_to(lp["b"], (1, cp)))
        if lp["has_res"]:
            rws.append(_pad_to(lp["rw"], (cp, cp)))
            rbs.append(_pad_to(lp["rb"], (1, cp)))
        else:
            rws.append(jnp.zeros((cp, cp), jnp.float32))              # unused placeholder
            rbs.append(jnp.zeros((1, cp), jnp.float32))
        meta.append((lp["dilation"], lp["circular"], lp["has_res"]))
    lw, lb = head
    return dict(w=jnp.stack(ws), b=jnp.stack(bs), rw=jnp.stack(rws), rb=jnp.stack(rbs),
                hw=_pad_to(lw, (cp, ep)), hb=_pad_to(lb, (1, ep)),
                meta=tuple(meta), K=K, emb=lw.shape[1])


def cdil_forward(x_ncl, packed, cp=_LANE, ep=_LANE):
    """x_ncl: (B, C_in, L) PyTorch-style input.  Returns (B, embedding)."""
    B, _, L = x_ncl.shape
    x = jnp.transpose(x_ncl, (0, 2, 1))                   # NCL -> (B, L, C)
    x = _pad_to(x, (B, L, cp))                            # lane-dense channels
    n_layers = packed["w"].shape[0]
    K = packed["K"]

    kernel = functools.partial(_cdil_fused_kernel, layer_meta=packed["meta"], K=K)
    # TODO(synk): at realistic sizes (L in the tens of thousands) the length axis
    # should be tiled with a dilation-sized halo and vmem_limit_bytes set for
    # v7x's 64 MiB VMEM; at these shapes the whole activation fits comfortably.
    out = pl.pallas_call(
        kernel,
        out_shape=jax.ShapeDtypeStruct((B, 1, ep), jnp.float32),
        grid=(B,),
        in_specs=[
            pl.BlockSpec((1, L, cp), lambda b: (b, 0, 0)),
            pl.BlockSpec((n_layers, K * cp, cp), lambda b: (0, 0, 0)),
            pl.BlockSpec((n_layers, 1, cp), lambda b: (0, 0, 0)),
            pl.BlockSpec((n_layers, cp, cp), lambda b: (0, 0, 0)),
            pl.BlockSpec((n_layers, 1, cp), lambda b: (0, 0, 0)),
            pl.BlockSpec((cp, ep), lambda b: (0, 0)),
            pl.BlockSpec((1, ep), lambda b: (0, 0)),
        ],
        out_specs=pl.BlockSpec((1, 1, ep), lambda b: (b, 0, 0)),
        compiler_params=pltpu.CompilerParams(dimension_semantics=("parallel",)),
    )(x, packed["w"], packed["b"], packed["rw"], packed["rb"], packed["hw"], packed["hb"])
    return out.reshape(B, ep)[:, : packed["emb"]]


# ------------------------------- parameter init --------------------------------

def init_params(key, num_channels, ks, emb):
    """Deterministic synthetic parameters matching the module's __init__ shapes."""
    layers = []
    n = len(num_channels)
    for i in range(1, n):                         # dynamic=True -> begin at layer 1
        cin, cout = num_channels[i - 1], num_channels[i]
        dil = 2 ** i                              # CDIL dilation; padding = dil for ks=3
        deform = i >= n - 3                       # last 3 layers: DeformableConv2d
        key, k1, k2, k3, k4 = jax.random.split(key, 5)
        w = jax.random.normal(k1, (ks, cin, cout), jnp.float32) * 0.1   # weight_norm folded
        if deform:
            b = jnp.zeros((1, cout), jnp.float32)     # regular_conv has bias=False
        else:
            b = jax.random.normal(k2, (1, cout), jnp.float32) * 0.01
        if cin != cout:
            rw = jax.random.normal(k3, (cin, cout), jnp.float32) * 0.01
            rb = jax.random.normal(k4, (1, cout), jnp.float32) * 0.01
            has_res = True
        else:
            rw = jnp.zeros((cin, cout), jnp.float32)  # unused
            rb = jnp.zeros((1, cout), jnp.float32)
            has_res = False
        layers.append(dict(w=w, b=b, rw=rw, rb=rb, dilation=dil,
                           circular=not deform, has_res=has_res,
                           modulator_is_zero=True))   # offset/modulator convs zero-init
    key, k5, k6 = jax.random.split(key, 3)
    lw = jax.random.normal(k5, (num_channels[-1], emb), jnp.float32) * 0.05
    lb = jax.random.normal(k6, (1, emb), jnp.float32) * 0.05
    return layers, (lw, lb)


# ------------------------------ pure-JAX reference ------------------------------

def _ref_shift(x, s, circular):
    L = x.shape[0]
    idx = jnp.arange(L) + s
    if circular:
        return x[idx % L]
    valid = (idx >= 0) & (idx < L)
    return jnp.where(valid[:, None], x[jnp.clip(idx, 0, L - 1)], 0.0)


def cdil_reference(x_ncl, raw_layers, head):
    """Non-Pallas reference of the same forward pass (f32-accurate matmuls)."""
    hi = jax.lax.Precision.HIGHEST
    x = jnp.transpose(x_ncl, (0, 2, 1))          # (B, L, C)
    for lp in raw_layers:
        K = lp["w"].shape[0]
        outs = []
        for xb in x:
            acc = lp["b"].astype(jnp.float32)
            for k in range(K):
                xs = _ref_shift(xb, (k - K // 2) * lp["dilation"], lp["circular"])
                acc = acc + jnp.dot(xs, lp["w"][k], precision=hi)
            y = jax.nn.gelu(acc, approximate=False)
            res = (jnp.dot(xb, lp["rw"], precision=hi) + lp["rb"]) if lp["has_res"] else xb
            outs.append(y + res)
        x = jnp.stack(outs)
    lw, lb = head
    return jnp.dot(jnp.mean(x, axis=1), lw, precision=hi) + lb


# ------------------------------------ main --------------------------------------

if __name__ == "__main__":
    key = jax.random.PRNGKey(0)

    # Small config mirroring the default construction:
    #   num_channels = [hidden]*n ; num_channels[0] = 12 ; num_channels[-1] = embedding
    B, L = 2, 64
    ks = 3
    embedding_size = 16
    num_channels = [8] * 6
    num_channels[0] = 12
    num_channels[-1] = embedding_size

    kp, kx = jax.random.split(key)
    raw_layers, head = init_params(kp, num_channels, ks, embedding_size)
    packed = pack_params(raw_layers, head)

    # PyTorch-style NCL input: (batch, 12 leads, length)
    x = jax.random.normal(kx, (B, num_channels[0], L), jnp.float32)

    y = cdil_forward(x, packed)
    y = jax.block_until_ready(y)

    assert y.shape == (B, embedding_size), y.shape
    assert bool(jnp.all(jnp.isfinite(y)))

    # Correctness check against a pure-JAX reference of the same math.
    y_ref = cdil_reference(x, raw_layers, head)
    assert jnp.allclose(y, y_ref, rtol=5e-3, atol=5e-4), float(jnp.max(jnp.abs(y - y_ref)))

    print("KERNEL_OK")
</pallas_src>

<mosaic_0001>
module attributes {stable_mosaic.version = 11 : i64} {
  func.func @_cdil_fused_kernel(%arg0: i32, %arg1: memref<1x64x128xf32, #tpu.memory_space<vmem>>, %arg2: memref<5x384x128xf32, #tpu.memory_space<vmem>>, %arg3: memref<5x1x128xf32, #tpu.memory_space<vmem>>, %arg4: memref<5x128x128xf32, #tpu.memory_space<vmem>>, %arg5: memref<5x1x128xf32, #tpu.memory_space<vmem>>, %arg6: memref<128x128xf32, #tpu.memory_space<vmem>>, %arg7: memref<1x128xf32, #tpu.memory_space<vmem>>, %arg8: memref<1x1x128xf32, #tpu.memory_space<vmem>>) attributes {dimension_semantics = [#tpu.dimension_semantics<parallel>], iteration_bounds = array<i64: 2>, scalar_prefetch = 0 : i64, scratch_operands = 0 : i64, tpu.core_type = #tpu.core_type<tc>, window_params = [{transform_indices = @transform_0, window_bounds = array<i64: 1, 64, 128>}, {pipeline_mode = #tpu.pipeline_mode<synchronous>, transform_indices = @transform_1, window_bounds = array<i64: 5, 384, 128>}, {pipeline_mode = #tpu.pipeline_mode<synchronous>, transform_indices = @transform_2, window_bounds = array<i64: 5, 1, 128>}, {pipeline_mode = #tpu.pipeline_mode<synchronous>, transform_indices = @transform_3, window_bounds = array<i64: 5, 128, 128>}, {pipeline_mode = #tpu.pipeline_mode<synchronous>, transform_indices = @transform_4, window_bounds = array<i64: 5, 1, 128>}, {pipeline_mode = #tpu.pipeline_mode<synchronous>, transform_indices = @transform_5, window_bounds = array<i64: 128, 128>}, {pipeline_mode = #tpu.pipeline_mode<synchronous>, transform_indices = @transform_6, window_bounds = array<i64: 1, 128>}, {transform_indices = @transform_7, window_bounds = array<i64: 1, 1, 128>}]} {
    %c0 = arith.constant 0 : index
    %c0_0 = arith.constant 0 : index
    %c0_1 = arith.constant 0 : index
    %0 = vector.load %arg1[%c0, %c0_0, %c0_1] : memref<1x64x128xf32, #tpu.memory_space<vmem>>, vector<1x64x128xf32>
    %1 = vector.shape_cast %0 : vector<1x64x128xf32> to vector<64x128xf32>
    %c2_i32 = arith.constant 2 : i32
    %2 = tpu.dynamic_rotate %1 by %c2_i32 dim 0 : vector<64x128xf32>, i32 -> vector<64x128xf32>
    %c62_i32 = arith.constant 62 : i32
    %3 = tpu.dynamic_rotate %1 by %c62_i32 dim 0 : vector<64x128xf32>, i32 -> vector<64x128xf32>
    %4 = tpu.concatenate %2, %1, %3 in 1 : vector<64x128xf32>, vector<64x128xf32>, vector<64x128xf32> -> vector<64x384xf32>
    %c0_2 = arith.constant 0 : index
    %c0_3 = arith.constant 0 : index
    %c0_4 = arith.constant 0 : index
    %5 = vector.load %arg2[%c0_2, %c0_3, %c0_4] : memref<5x384x128xf32, #tpu.memory_space<vmem>>, vector<1x384x128xf32>
    %6 = vector.shape_cast %5 : vector<1x384x128xf32> to vector<384x128xf32>
    %cst = arith.constant dense<0.000000e+00> : vector<64x128xf32>
    %7 = tpu.matmul %4, %6, %cst {dimension_numbers = #tpu.dot_dimension_numbers<[1], [0], [0], [1], [0, 0, 1, 1], [], []>} : vector<64x384xf32>, vector<384x128xf32>, vector<64x128xf32> -> vector<64x128xf32>
    %c0_5 = arith.constant 0 : index
    %c0_6 = arith.constant 0 : index
    %c0_7 = arith.constant 0 : index
    %8 = vector.load %arg3[%c0_5, %c0_6, %c0_7] : memref<5x1x128xf32, #tpu.memory_space<vmem>>, vector<1x1x128xf32>
    %9 = vector.shape_cast %8 : vector<1x1x128xf32> to vector<1x128xf32>
    %10 = vector.broadcast %9 : vector<1x128xf32> to vector<64x128xf32>
    %11 = arith.addf %7, %10 : vector<64x128xf32>
    %cst_8 = arith.constant 5.000000e-01 : f32
    %12 = vector.broadcast %cst_8 : f32 to vector<64x128xf32>
    %13 = arith.mulf %12, %11 : vector<64x128xf32>
    %cst_9 = arith.constant 0.707106769 : f32
    %14 = vector.broadcast %cst_9 : f32 to vector<64x128xf32>
    %15 = arith.mulf %11, %14 : vector<64x128xf32>
    %cst_10 = arith.constant 0.000000e+00 : f32
    %16 = vector.broadcast %cst_10 : f32 to vector<64x128xf32>
    %17 = arith.cmpf oge, %15, %16 : vector<64x128xf32>
    %cst_11 = arith.constant 1.000000e+00 : f32
    %cst_12 = arith.constant -1.000000e+00 : f32
    %18 = vector.broadcast %cst_11 : f32 to vector<64x128xf32>
    %19 = vector.broadcast %cst_12 : f32 to vector<64x128xf32>
    %20 = arith.select %17, %18, %19 : vector<64x128xi1>, vector<64x128xf32>
    %21 = math.absf %15 : vector<64x128xf32>
    %cst_13 = arith.constant 0.327591091 : f32
    %22 = vector.broadcast %cst_13 : f32 to vector<64x128xf32>
    %23 = arith.mulf %22, %21 : vector<64x128xf32>
    %cst_14 = arith.constant 1.000000e+00 : f32
    %24 = vector.broadcast %cst_14 : f32 to vector<64x128xf32>
    %25 = arith.addf %24, %23 : vector<64x128xf32>
    %cst_15 = arith.constant 1.000000e+00 : f32
    %26 = vector.broadcast %cst_15 : f32 to vector<64x128xf32>
    %27 = arith.divf %26, %25 : vector<64x128xf32>
    %cst_16 = arith.constant 1.06140542 : f32
    %28 = vector.broadcast %cst_16 : f32 to vector<64x128xf32>
    %29 = arith.mulf %28, %27 : vector<64x128xf32>
    %cst_17 = arith.constant -1.45315206 : f32
    %30 = vector.broadcast %cst_17 : f32 to vector<64x128xf32>
    %31 = arith.addf %29, %30 : vector<64x128xf32>
    %32 = arith.mulf %31, %27 : vector<64x128xf32>
    %cst_18 = arith.constant 1.42141378 : f32
    %33 = vector.broadcast %cst_18 : f32 to vector<64x128xf32>
    %34 = arith.addf %32, %33 : vector<64x128xf32>
    %35 = arith.mulf %34, %27 : vector<64x128xf32>
    %cst_19 = arith.constant -0.284496725 : f32
    %36 = vector.broadcast %cst_19 : f32 to vector<64x128xf32>
    %37 = arith.addf %35, %36 : vector<64x128xf32>
    %38 = arith.mulf %37, %27 : vector<64x128xf32>
    %cst_20 = arith.constant 0.254829586 : f32
    %39 = vector.broadcast %cst_20 : f32 to vector<64x128xf32>
    %40 = arith.addf %38, %39 : vector<64x128xf32>
    %41 = arith.mulf %40, %27 : vector<64x128xf32>
    %cst_21 = arith.constant 0.000000e+00 : f32
    %42 = vector.broadcast %cst_21 : f32 to vector<64x128xf32>
    %43 = arith.subf %42, %21 : vector<64x128xf32>
    %44 = arith.mulf %43, %21 : vector<64x128xf32>
    %45 = math.exp %44 : vector<64x128xf32>
    %46 = arith.mulf %41, %45 : vector<64x128xf32>
    %cst_22 = arith.constant 1.000000e+00 : f32
    %47 = vector.broadcast %cst_22 : f32 to vector<64x128xf32>
    %48 = arith.subf %47, %46 : vector<64x128xf32>
    %49 = arith.mulf %20, %48 : vector<64x128xf32>
    %cst_23 = arith.constant 1.000000e+00 : f32
    %50 = vector.broadcast %cst_23 : f32 to vector<64x128xf32>
    %51 = arith.addf %50, %49 : vector<64x128xf32>
    %52 = arith.mulf %13, %51 : vector<64x128xf32>
    %c0_24 = arith.constant 0 : index
    %c0_25 = arith.constant 0 : index
    %c0_26 = arith.constant 0 : index
    %53 = vector.load %arg4[%c0_24, %c0_25, %c0_26] : memref<5x128x128xf32, #tpu.memory_space<vmem>>, vector<1x128x128xf32>
    %54 = vector.shape_cast %53 : vector<1x128x128xf32> to vector<128x128xf32>
    %cst_27 = arith.constant dense<0.000000e+00> : vector<64x128xf32>
    %55 = tpu.matmul %1, %54, %cst_27 {dimension_numbers = #tpu.dot_dimension_numbers<[1], [0], [0], [1], [0, 0, 1, 1], [], []>} : vector<64x128xf32>, vector<128x128xf32>, vector<64x128xf32> -> vector<64x128xf32>
    %c0_28 = arith.constant 0 : index
    %c0_29 = arith.constant 0 : index
    %c0_30 = arith.constant 0 : index
    %56 = vector.load %arg5[%c0_28, %c0_29, %c0_30] : memref<5x1x128xf32, #tpu.memory_space<vmem>>, vector<1x1x128xf32>
    %57 = vector.shape_cast %56 : vector<1x1x128xf32> to vector<1x128xf32>
    %58 = vector.broadcast %57 : vector<1x128xf32> to vector<64x128xf32>
    %59 = arith.addf %55, %58 : vector<64x128xf32>
    %60 = arith.addf %52, %59 : vector<64x128xf32>
    %c4_i32 = arith.constant 4 : i32
    %61 = tpu.dynamic_rotate %60 by %c4_i32 dim 0 : vector<64x128xf32>, i32 -> vector<64x128xf32>
    %c60_i32 = arith.constant 60 : i32
    %62 = tpu.dynamic_rotate %60 by %c60_i32 dim 0 : vector<64x128xf32>, i32 -> vector<64x128xf32>
    %63 = tpu.concatenate %61, %60, %62 in 1 : vector<64x128xf32>, vector<64x128xf32>, vector<64x128xf32> -> vector<64x384xf32>
    %c1 = arith.constant 1 : index
    %c0_31 = arith.constant 0 : index
    %c0_32 = arith.constant 0 : index
    %64 = vector.load %arg2[%c1, %c0_31, %c0_32] : memref<5x384x128xf32, #tpu.memory_space<vmem>>, vector<1x384x128xf32>
    %65 = vector.shape_cast %64 : vector<1x384x128xf32> to vector<384x128xf32>
    %cst_33 = arith.constant dense<0.000000e+00> : vector<64x128xf32>
    %66 = tpu.matmul %63, %65, %cst_33 {dimension_numbers = #tpu.dot_dimension_numbers<[1], [0], [0], [1], [0, 0, 1, 1], [], []>} : vector<64x384xf32>, vector<384x128xf32>, vector<64x128xf32> -> vector<64x128xf32>
    %c1_34 = arith.constant 1 : index
    %c0_35 = arith.constant 0 : index
    %c0_36 = arith.constant 0 : index
    %67 = vector.load %arg3[%c1_34, %c0_35, %c0_36] : memref<5x1x128xf32, #tpu.memory_space<vmem>>, vector<1x1x128xf32>
    %68 = vector.shape_cast %67 : vector<1x1x128xf32> to vector<1x128xf32>
    %69 = vector.broadcast %68 : vector<1x128xf32> to vector<64x128xf32>
    %70 = arith.addf %66, %69 : vector<64x128xf32>
    %cst_37 = arith.constant 5.000000e-01 : f32
    %71 = vector.broadcast %cst_37 : f32 to vector<64x128xf32>
    %72 = arith.mulf %71, %70 : vector<64x128xf32>
    %cst_38 = arith.constant 0.707106769 : f32
    %73 = vector.broadcast %cst_38 : f32 to vector<64x128xf32>
    %74 = arith.mulf %70, %73 : vector<64x128xf32>
    %cst_39 = arith.constant 0.000000e+00 : f32
    %75 = vector.broadcast %cst_39 : f32 to vector<64x128xf32>
    %76 = arith.cmpf oge, %74, %75 : vector<64x128xf32>
    %cst_40 = arith.constant 1.000000e+00 : f32
    %cst_41 = arith.constant -1.000000e+00 : f32
    %77 = vector.broadcast %cst_40 : f32 to vector<64x128xf32>
    %78 = vector.broadcast %cst_41 : f32 to vector<64x128xf32>
    %79 = arith.select %76, %77, %78 : vector<64x128xi1>, vector<64x128xf32>
    %80 = math.absf %74 : vector<64x128xf32>
    %cst_42 = arith.constant 0.327591091 : f32
    %81 = vector.broadcast %cst_42 : f32 to vector<64x128xf32>
    %82 = arith.mulf %81, %80 : vector<64x128xf32>
    %cst_43 = arith.constant 1.000000e+00 : f32
    %83 = vector.broadcast %cst_43 : f32 to vector<64x128xf32>
    %84 = arith.addf %83, %82 : vector<64x128xf32>
    %cst_44 = arith.constant 1.000000e+00 : f32
    %85 = vector.broadcast %cst_44 : f32 to vector<64x128xf32>
    %86 = arith.divf %85, %84 : vector<64x128xf32>
    %cst_45 = arith.constant 1.06140542 : f32
    %87 = vector.broadcast %cst_45 : f32 to vector<64x128xf32>
    %88 = arith.mulf %87, %86 : vector<64x128xf32>
    %cst_46 = arith.constant -1.45315206 : f32
    %89 = vector.broadcast %cst_46 : f32 to vector<64x128xf32>
    %90 = arith.addf %88, %89 : vector<64x128xf32>
    %91 = arith.mulf %90, %86 : vector<64x128xf32>
    %cst_47 = arith.constant 1.42141378 : f32
    %92 = vector.broadcast %cst_47 : f32 to vector<64x128xf32>
    %93 = arith.addf %91, %92 : vector<64x128xf32>
    %94 = arith.mulf %93, %86 : vector<64x128xf32>
    %cst_48 = arith.constant -0.284496725 : f32
    %95 = vector.broadcast %cst_48 : f32 to vector<64x128xf32>
    %96 = arith.addf %94, %95 : vector<64x128xf32>
    %97 = arith.mulf %96, %86 : vector<64x128xf32>
    %cst_49 = arith.constant 0.254829586 : f32
    %98 = vector.broadcast %cst_49 : f32 to vector<64x128xf32>
    %99 = arith.addf %97, %98 : vector<64x128xf32>
    %100 = arith.mulf %99, %86 : vector<64x128xf32>
    %cst_50 = arith.constant 0.000000e+00 : f32
    %101 = vector.broadcast %cst_50 : f32 to vector<64x128xf32>
    %102 = arith.subf %101, %80 : vector<64x128xf32>
    %103 = arith.mulf %102, %80 : vector<64x128xf32>
    %104 = math.exp %103 : vector<64x128xf32>
    %105 = arith.mulf %100, %104 : vector<64x128xf32>
    %cst_51 = arith.constant 1.000000e+00 : f32
    %106 = vector.broadcast %cst_51 : f32 to vector<64x128xf32>
    %107 = arith.subf %106, %105 : vector<64x128xf32>
    %108 = arith.mulf %79, %107 : vector<64x128xf32>
    %cst_52 = arith.constant 1.000000e+00 : f32
    %109 = vector.broadcast %cst_52 : f32 to vector<64x128xf32>
    %110 = arith.addf %109, %108 : vector<64x128xf32>
    %111 = arith.mulf %72, %110 : vector<64x128xf32>
    %112 = arith.addf %111, %60 : vector<64x128xf32>
    %c8_i32 = arith.constant 8 : i32
    %113 = tpu.dynamic_rotate %112 by %c8_i32 dim 0 : vector<64x128xf32>, i32 -> vector<64x128xf32>
    %114 = tpu.iota {dimensions = array<i32: 0>} : vector<64x128xi32>
    %c8_i32_53 = arith.constant 8 : i32
    %115 = vector.broadcast %c8_i32_53 : i32 to vector<64x128xi32>
    %116 = arith.cmpi sge, %114, %115 : vector<64x128xi32>
    %cst_54 = arith.constant 0.000000e+00 : f32
    %117 = vector.broadcast %cst_54 : f32 to vector<64x128xf32>
    %118 = arith.select %116, %113, %117 : vector<64x128xi1>, vector<64x128xf32>
    %c56_i32 = arith.constant 56 : i32
    %119 = tpu.dynamic_rotate %112 by %c56_i32 dim 0 : vector<64x128xf32>, i32 -> vector<64x128xf32>
    %120 = tpu.iota {dimensions = array<i32: 0>} : vector<64x128xi32>
    %c56_i32_55 = arith.constant 56 : i32
    %121 = vector.broadcast %c56_i32_55 : i32 to vector<64x128xi32>
    %122 = arith.cmpi slt, %120, %121 : vector<64x128xi32>
    %cst_56 = arith.constant 0.000000e+00 : f32
    %123 = vector.broadcast %cst_56 : f32 to vector<64x128xf32>
    %124 = arith.select %122, %119, %123 : vector<64x128xi1>, vector<64x128xf32>
    %125 = tpu.concatenate %118, %112, %124 in 1 : vector<64x128xf32>, vector<64x128xf32>, vector<64x128xf32> -> vector<64x384xf32>
    %c2 = arith.constant 2 : index
    %c0_57 = arith.constant 0 : index
    %c0_58 = arith.constant 0 : index
    %126 = vector.load %arg2[%c2, %c0_57, %c0_58] : memref<5x384x128xf32, #tpu.memory_space<vmem>>, vector<1x384x128xf32>
    %127 = vector.shape_cast %126 : vector<1x384x128xf32> to vector<384x128xf32>
    %cst_59 = arith.constant dense<0.000000e+00> : vector<64x128xf32>
    %128 = tpu.matmul %125, %127, %cst_59 {dimension_numbers = #tpu.dot_dimension_numbers<[1], [0], [0], [1], [0, 0, 1, 1], [], []>} : vector<64x384xf32>, vector<384x128xf32>, vector<64x128xf32> -> vector<64x128xf32>
    %c2_60 = arith.constant 2 : index
    %c0_61 = arith.constant 0 : index
    %c0_62 = arith.constant 0 : index
    %129 = vector.load %arg3[%c2_60, %c0_61, %c0_62] : memref<5x1x128xf32, #tpu.memory_space<vmem>>, vector<1x1x128xf32>
    %130 = vector.shape_cast %129 : vector<1x1x128xf32> to vector<1x128xf32>
    %131 = vector.broadcast %130 : vector<1x128xf32> to vector<64x128xf32>
    %132 = arith.addf %128, %131 : vector<64x128xf32>
    %cst_63 = arith.constant 5.000000e-01 : f32
    %133 = vector.broadcast %cst_63 : f32 to vector<64x128xf32>
    %134 = arith.mulf %133, %132 : vector<64x128xf32>
    %cst_64 = arith.constant 0.707106769 : f32
    %135 = vector.broadcast %cst_64 : f32 to vector<64x128xf32>
    %136 = arith.mulf %132, %135 : vector<64x128xf32>
    %cst_65 = arith.constant 0.000000e+00 : f32
    %137 = vector.broadcast %cst_65 : f32 to vector<64x128xf32>
    %138 = arith.cmpf oge, %136, %137 : vector<64x128xf32>
    %cst_66 = arith.constant 1.000000e+00 : f32
    %cst_67 = arith.constant -1.000000e+00 : f32
    %139 = vector.broadcast %cst_66 : f32 to vector<64x128xf32>
    %140 = vector.broadcast %cst_67 : f32 to vector<64x128xf32>
    %141 = arith.select %138, %139, %140 : vector<64x128xi1>, vector<64x128xf32>
    %142 = math.absf %136 : vector<64x128xf32>
    %cst_68 = arith.constant 0.327591091 : f32
    %143 = vector.broadcast %cst_68 : f32 to vector<64x128xf32>
    %144 = arith.mulf %143, %142 : vector<64x128xf32>
    %cst_69 = arith.constant 1.000000e+00 : f32
    %145 = vector.broadcast %cst_69 : f32 to vector<64x128xf32>
    %146 = arith.addf %145, %144 : vector<64x128xf32>
    %cst_70 = arith.constant 1.000000e+00 : f32
    %147 = vector.broadcast %cst_70 : f32 to vector<64x128xf32>
    %148 = arith.divf %147, %146 : vector<64x128xf32>
    %cst_71 = arith.constant 1.06140542 : f32
    %149 = vector.broadcast %cst_71 : f32 to vector<64x128xf32>
    %150 = arith.mulf %149, %148 : vector<64x128xf32>
    %cst_72 = arith.constant -1.45315206 : f32
    %151 = vector.broadcast %cst_72 : f32 to vector<64x128xf32>
    %152 = arith.addf %150, %151 : vector<64x128xf32>
    %153 = arith.mulf %152, %148 : vector<64x128xf32>
    %cst_73 = arith.constant 1.42141378 : f32
    %154 = vector.broadcast %cst_73 : f32 to vector<64x128xf32>
    %155 = arith.addf %153, %154 : vector<64x128xf32>
    %156 = arith.mulf %155, %148 : vector<64x128xf32>
    %cst_74 = arith.constant -0.284496725 : f32
    %157 = vector.broadcast %cst_74 : f32 to vector<64x128xf32>
    %158 = arith.addf %156, %157 : vector<64x128xf32>
    %159 = arith.mulf %158, %148 : vector<64x128xf32>
    %cst_75 = arith.constant 0.254829586 : f32
    %160 = vector.broadcast %cst_75 : f32 to vector<64x128xf32>
    %161 = arith.addf %159, %160 : vector<64x128xf32>
    %162 = arith.mulf %161, %148 : vector<64x128xf32>
    %cst_76 = arith.constant 0.000000e+00 : f32
    %163 = vector.broadcast %cst_76 : f32 to vector<64x128xf32>
    %164 = arith.subf %163, %142 : vector<64x128xf32>
    %165 = arith.mulf %164, %142 : vector<64x128xf32>
    %166 = math.exp %165 : vector<64x128xf32>
    %167 = arith.mulf %162, %166 : vector<64x128xf32>
    %cst_77 = arith.constant 1.000000e+00 : f32
    %168 = vector.broadcast %cst_77 : f32 to vector<64x128xf32>
    %169 = arith.subf %168, %167 : vector<64x128xf32>
    %170 = arith.mulf %141, %169 : vector<64x128xf32>
    %cst_78 = arith.constant 1.000000e+00 : f32
    %171 = vector.broadcast %cst_78 : f32 to vector<64x128xf32>
    %172 = arith.addf %171, %170 : vector<64x128xf32>
    %173 = arith.mulf %134, %172 : vector<64x128xf32>
    %174 = arith.addf %173, %112 : vector<64x128xf32>
    %c16_i32 = arith.constant 16 : i32
    %175 = tpu.dynamic_rotate %174 by %c16_i32 dim 0 : vector<64x128xf32>, i32 -> vector<64x128xf32>
    %176 = tpu.iota {dimensions = array<i32: 0>} : vector<64x128xi32>
    %c16_i32_79 = arith.constant 16 : i32
    %177 = vector.broadcast %c16_i32_79 : i32 to vector<64x128xi32>
    %178 = arith.cmpi sge, %176, %177 : vector<64x128xi32>
    %cst_80 = arith.constant 0.000000e+00 : f32
    %179 = vector.broadcast %cst_80 : f32 to vector<64x128xf32>
    %180 = arith.select %178, %175, %179 : vector<64x128xi1>, vector<64x128xf32>
    %c48_i32 = arith.constant 48 : i32
    %181 = tpu.dynamic_rotate %174 by %c48_i32 dim 0 : vector<64x128xf32>, i32 -> vector<64x128xf32>
    %182 = tpu.iota {dimensions = array<i32: 0>} : vector<64x128xi32>
    %c48_i32_81 = arith.constant 48 : i32
    %183 = vector.broadcast %c48_i32_81 : i32 to vector<64x128xi32>
    %184 = arith.cmpi slt, %182, %183 : vector<64x128xi32>
    %cst_82 = arith.constant 0.000000e+00 : f32
    %185 = vector.broadcast %cst_82 : f32 to vector<64x128xf32>
    %186 = arith.select %184, %181, %185 : vector<64x128xi1>, vector<64x128xf32>
    %187 = tpu.concatenate %180, %174, %186 in 1 : vector<64x128xf32>, vector<64x128xf32>, vector<64x128xf32> -> vector<64x384xf32>
    %c3 = arith.constant 3 : index
    %c0_83 = arith.constant 0 : index
    %c0_84 = arith.constant 0 : index
    %188 = vector.load %arg2[%c3, %c0_83, %c0_84] : memref<5x384x128xf32, #tpu.memory_space<vmem>>, vector<1x384x128xf32>
    %189 = vector.shape_cast %188 : vector<1x384x128xf32> to vector<384x128xf32>
    %cst_85 = arith.constant dense<0.000000e+00> : vector<64x128xf32>
    %190 = tpu.matmul %187, %189, %cst_85 {dimension_numbers = #tpu.dot_dimension_numbers<[1], [0], [0], [1], [0, 0, 1, 1], [], []>} : vector<64x384xf32>, vector<384x128xf32>, vector<64x128xf32> -> vector<64x128xf32>
    %c3_86 = arith.constant 3 : index
    %c0_87 = arith.constant 0 : index
    %c0_88 = arith.constant 0 : index
    %191 = vector.load %arg3[%c3_86, %c0_87, %c0_88] : memref<5x1x128xf32, #tpu.memory_space<vmem>>, vector<1x1x128xf32>
    %192 = vector.shape_cast %191 : vector<1x1x128xf32> to vector<1x128xf32>
    %193 = vector.broadcast %192 : vector<1x128xf32> to vector<64x128xf32>
    %194 = arith.addf %190, %193 : vector<64x128xf32>
    %cst_89 = arith.constant 5.000000e-01 : f32
    %195 = vector.broadcast %cst_89 : f32 to vector<64x128xf32>
    %196 = arith.mulf %195, %194 : vector<64x128xf32>
    %cst_90 = arith.constant 0.707106769 : f32
    %197 = vector.broadcast %cst_90 : f32 to vector<64x128xf32>
    %198 = arith.mulf %194, %197 : vector<64x128xf32>
    %cst_91 = arith.constant 0.000000e+00 : f32
    %199 = vector.broadcast %cst_91 : f32 to vector<64x128xf32>
    %200 = arith.cmpf oge, %198, %199 : vector<64x128xf32>
    %cst_92 = arith.constant 1.000000e+00 : f32
    %cst_93 = arith.constant -1.000000e+00 : f32
    %201 = vector.broadcast %cst_92 : f32 to vector<64x128xf32>
    %202 = vector.broadcast %cst_93 : f32 to vector<64x128xf32>
    %203 = arith.select %200, %201, %202 : vector<64x128xi1>, vector<64x128xf32>
    %204 = math.absf %198 : vector<64x128xf32>
    %cst_94 = arith.constant 0.327591091 : f32
    %205 = vector.broadcast %cst_94 : f32 to vector<64x128xf32>
    %206 = arith.mulf %205, %204 : vector<64x128xf32>
    %cst_95 = arith.constant 1.000000e+00 : f32
    %207 = vector.broadcast %cst_95 : f32 to vector<64x128xf32>
    %208 = arith.addf %207, %206 : vector<64x128xf32>
    %cst_96 = arith.constant 1.000000e+00 : f32
    %209 = vector.broadcast %cst_96 : f32 to vector<64x128xf32>
    %210 = arith.divf %209, %208 : vector<64x128xf32>
    %cst_97 = arith.constant 1.06140542 : f32
    %211 = vector.broadcast %cst_97 : f32 to vector<64x128xf32>
    %212 = arith.mulf %211, %210 : vector<64x128xf32>
    %cst_98 = arith.constant -1.45315206 : f32
    %213 = vector.broadcast %cst_98 : f32 to vector<64x128xf32>
    %214 = arith.addf %212, %213 : vector<64x128xf32>
    %215 = arith.mulf %214, %210 : vector<64x128xf32>
    %cst_99 = arith.constant 1.42141378 : f32
    %216 = vector.broadcast %cst_99 : f32 to vector<64x128xf32>
    %217 = arith.addf %215, %216 : vector<64x128xf32>
    %218 = arith.mulf %217, %210 : vector<64x128xf32>
    %cst_100 = arith.constant -0.284496725 : f32
    %219 = vector.broadcast %cst_100 : f32 to vector<64x128xf32>
    %220 = arith.addf %218, %219 : vector<64x128xf32>
    %221 = arith.mulf %220, %210 : vector<64x128xf32>
    %cst_101 = arith.constant 0.254829586 : f32
    %222 = vector.broadcast %cst_101 : f32 to vector<64x128xf32>
    %223 = arith.addf %221, %222 : vector<64x128xf32>
    %224 = arith.mulf %223, %210 : vector<64x128xf32>
    %cst_102 = arith.constant 0.000000e+00 : f32
    %225 = vector.broadcast %cst_102 : f32 to vector<64x128xf32>
    %226 = arith.subf %225, %204 : vector<64x128xf32>
    %227 = arith.mulf %226, %204 : vector<64x128xf32>
    %228 = math.exp %227 : vector<64x128xf32>
    %229 = arith.mulf %224, %228 : vector<64x128xf32>
    %cst_103 = arith.constant 1.000000e+00 : f32
    %230 = vector.broadcast %cst_103 : f32 to vector<64x128xf32>
    %231 = arith.subf %230, %229 : vector<64x128xf32>
    %232 = arith.mulf %203, %231 : vector<64x128xf32>
    %cst_104 = arith.constant 1.000000e+00 : f32
    %233 = vector.broadcast %cst_104 : f32 to vector<64x128xf32>
    %234 = arith.addf %233, %232 : vector<64x128xf32>
    %235 = arith.mulf %196, %234 : vector<64x128xf32>
    %236 = arith.addf %235, %174 : vector<64x128xf32>
    %c32_i32 = arith.constant 32 : i32
    %237 = tpu.dynamic_rotate %236 by %c32_i32 dim 0 : vector<64x128xf32>, i32 -> vector<64x128xf32>
    %238 = tpu.iota {dimensions = array<i32: 0>} : vector<64x128xi32>
    %c32_i32_105 = arith.constant 32 : i32
    %239 = vector.broadcast %c32_i32_105 : i32 to vector<64x128xi32>
    %240 = arith.cmpi sge, %238, %239 : vector<64x128xi32>
    %cst_106 = arith.constant 0.000000e+00 : f32
    %241 = vector.broadcast %cst_106 : f32 to vector<64x128xf32>
    %242 = arith.select %240, %237, %241 : vector<64x128xi1>, vector<64x128xf32>
    %c32_i32_107 = arith.constant 32 : i32
    %243 = tpu.dynamic_rotate %236 by %c32_i32_107 dim 0 : vector<64x128xf32>, i32 -> vector<64x128xf32>
    %244 = tpu.iota {dimensions = array<i32: 0>} : vector<64x128xi32>
    %c32_i32_108 = arith.constant 32 : i32
    %245 = vector.broadcast %c32_i32_108 : i32 to vector<64x128xi32>
    %246 = arith.cmpi slt, %244, %245 : vector<64x128xi32>
    %cst_109 = arith.constant 0.000000e+00 : f32
    %247 = vector.broadcast %cst_109 : f32 to vector<64x128xf32>
    %248 = arith.select %246, %243, %247 : vector<64x128xi1>, vector<64x128xf32>
    %249 = tpu.concatenate %242, %236, %248 in 1 : vector<64x128xf32>, vector<64x128xf32>, vector<64x128xf32> -> vector<64x384xf32>
    %c4 = arith.constant 4 : index
    %c0_110 = arith.constant 0 : index
    %c0_111 = arith.constant 0 : index
    %250 = vector.load %arg2[%c4, %c0_110, %c0_111] : memref<5x384x128xf32, #tpu.memory_space<vmem>>, vector<1x384x128xf32>
    %251 = vector.shape_cast %250 : vector<1x384x128xf32> to vector<384x128xf32>
    %cst_112 = arith.constant dense<0.000000e+00> : vector<64x128xf32>
    %252 = tpu.matmul %249, %251, %cst_112 {dimension_numbers = #tpu.dot_dimension_numbers<[1], [0], [0], [1], [0, 0, 1, 1], [], []>} : vector<64x384xf32>, vector<384x128xf32>, vector<64x128xf32> -> vector<64x128xf32>
    %c4_113 = arith.constant 4 : index
    %c0_114 = arith.constant 0 : index
    %c0_115 = arith.constant 0 : index
    %253 = vector.load %arg3[%c4_113, %c0_114, %c0_115] : memref<5x1x128xf32, #tpu.memory_space<vmem>>, vector<1x1x128xf32>
    %254 = vector.shape_cast %253 : vector<1x1x128xf32> to vector<1x128xf32>
    %255 = vector.broadcast %254 : vector<1x128xf32> to vector<64x128xf32>
    %256 = arith.addf %252, %255 : vector<64x128xf32>
    %cst_116 = arith.constant 5.000000e-01 : f32
    %257 = vector.broadcast %cst_116 : f32 to vector<64x128xf32>
    %258 = arith.mulf %257, %256 : vector<64x128xf32>
    %cst_117 = arith.constant 0.707106769 : f32
    %259 = vector.broadcast %cst_117 : f32 to vector<64x128xf32>
    %260 = arith.mulf %256, %259 : vector<64x128xf32>
    %cst_118 = arith.constant 0.000000e+00 : f32
    %261 = vector.broadcast %cst_118 : f32 to vector<64x128xf32>
    %262 = arith.cmpf oge, %260, %261 : vector<64x128xf32>
    %cst_119 = arith.constant 1.000000e+00 : f32
    %cst_120 = arith.constant -1.000000e+00 : f32
    %263 = vector.broadcast %cst_119 : f32 to vector<64x128xf32>
    %264 = vector.broadcast %cst_120 : f32 to vector<64x128xf32>
    %265 = arith.select %262, %263, %264 : vector<64x128xi1>, vector<64x128xf32>
    %266 = math.absf %260 : vector<64x128xf32>
    %cst_121 = arith.constant 0.327591091 : f32
    %267 = vector.broadcast %cst_121 : f32 to vector<64x128xf32>
    %268 = arith.mulf %267, %266 : vector<64x128xf32>
    %cst_122 = arith.constant 1.000000e+00 : f32
    %269 = vector.broadcast %cst_122 : f32 to vector<64x128xf32>
    %270 = arith.addf %269, %268 : vector<64x128xf32>
    %cst_123 = arith.constant 1.000000e+00 : f32
    %271 = vector.broadcast %cst_123 : f32 to vector<64x128xf32>
    %272 = arith.divf %271, %270 : vector<64x128xf32>
    %cst_124 = arith.constant 1.06140542 : f32
    %273 = vector.broadcast %cst_124 : f32 to vector<64x128xf32>
    %274 = arith.mulf %273, %272 : vector<64x128xf32>
    %cst_125 = arith.constant -1.45315206 : f32
    %275 = vector.broadcast %cst_125 : f32 to vector<64x128xf32>
    %276 = arith.addf %274, %275 : vector<64x128xf32>
    %277 = arith.mulf %276, %272 : vector<64x128xf32>
    %cst_126 = arith.constant 1.42141378 : f32
    %278 = vector.broadcast %cst_126 : f32 to vector<64x128xf32>
    %279 = arith.addf %277, %278 : vector<64x128xf32>
    %280 = arith.mulf %279, %272 : vector<64x128xf32>
    %cst_127 = arith.constant -0.284496725 : f32
    %281 = vector.broadcast %cst_127 : f32 to vector<64x128xf32>
    %282 = arith.addf %280, %281 : vector<64x128xf32>
    %283 = arith.mulf %282, %272 : vector<64x128xf32>
    %cst_128 = arith.constant 0.254829586 : f32
    %284 = vector.broadcast %cst_128 : f32 to vector<64x128xf32>
    %285 = arith.addf %283, %284 : vector<64x128xf32>
    %286 = arith.mulf %285, %272 : vector<64x128xf32>
    %cst_129 = arith.constant 0.000000e+00 : f32
    %287 = vector.broadcast %cst_129 : f32 to vector<64x128xf32>
    %288 = arith.subf %287, %266 : vector<64x128xf32>
    %289 = arith.mulf %288, %266 : vector<64x128xf32>
    %290 = math.exp %289 : vector<64x128xf32>
    %291 = arith.mulf %286, %290 : vector<64x128xf32>
    %cst_130 = arith.constant 1.000000e+00 : f32
    %292 = vector.broadcast %cst_130 : f32 to vector<64x128xf32>
    %293 = arith.subf %292, %291 : vector<64x128xf32>
    %294 = arith.mulf %265, %293 : vector<64x128xf32>
    %cst_131 = arith.constant 1.000000e+00 : f32
    %295 = vector.broadcast %cst_131 : f32 to vector<64x128xf32>
    %296 = arith.addf %295, %294 : vector<64x128xf32>
    %297 = arith.mulf %258, %296 : vector<64x128xf32>
    %c4_132 = arith.constant 4 : index
    %c0_133 = arith.constant 0 : index
    %c0_134 = arith.constant 0 : index
    %298 = vector.load %arg4[%c4_132, %c0_133, %c0_134] : memref<5x128x128xf32, #tpu.memory_space<vmem>>, vector<1x128x128xf32>
    %299 = vector.shape_cast %298 : vector<1x128x128xf32> to vector<128x128xf32>
    %cst_135 = arith.constant dense<0.000000e+00> : vector<64x128xf32>
    %300 = tpu.matmul %236, %299, %cst_135 {dimension_numbers = #tpu.dot_dimension_numbers<[1], [0], [0], [1], [0, 0, 1, 1], [], []>} : vector<64x128xf32>, vector<128x128xf32>, vector<64x128xf32> -> vector<64x128xf32>
    %c4_136 = arith.constant 4 : index
    %c0_137 = arith.constant 0 : index
    %c0_138 = arith.constant 0 : index
    %301 = vector.load %arg5[%c4_136, %c0_137, %c0_138] : memref<5x1x128xf32, #tpu.memory_space<vmem>>, vector<1x1x128xf32>
    %302 = vector.shape_cast %301 : vector<1x1x128xf32> to vector<1x128xf32>
    %303 = vector.broadcast %302 : vector<1x128xf32> to vector<64x128xf32>
    %304 = arith.addf %300, %303 : vector<64x128xf32>
    %305 = arith.addf %297, %304 : vector<64x128xf32>
    %cst_139 = arith.constant dense<0.000000e+00> : vector<128xf32>
    %306 = vector.multi_reduction <add>, %305, %cst_139 [0] : vector<64x128xf32> to vector<128xf32>
    %307 = vector.shape_cast %306 : vector<128xf32> to vector<1x128xf32>
    %cst_140 = arith.constant 6.400000e+01 : f32
    %308 = vector.broadcast %cst_140 : f32 to vector<1x128xf32>
    %309 = arith.divf %307, %308 : vector<1x128xf32>
    %c0_141 = arith.constant 0 : index
    %c0_142 = arith.constant 0 : index
    %310 = vector.load %arg6[%c0_141, %c0_142] : memref<128x128xf32, #tpu.memory_space<vmem>>, vector<128x128xf32>
    %cst_143 = arith.constant dense<0.000000e+00> : vector<1x128xf32>
    %311 = tpu.matmul %309, %310, %cst_143 {dimension_numbers = #tpu.dot_dimension_numbers<[1], [0], [0], [1], [0, 0, 1, 1], [], []>} : vector<1x128xf32>, vector<128x128xf32>, vector<1x128xf32> -> vector<1x128xf32>
    %c0_144 = arith.constant 0 : index
    %c0_145 = arith.constant 0 : index
    %312 = vector.load %arg7[%c0_144, %c0_145] : memref<1x128xf32, #tpu.memory_space<vmem>>, vector<1x128xf32>
    %313 = arith.addf %311, %312 : vector<1x128xf32>
    %c0_146 = arith.constant 0 : index
    %c0_147 = arith.constant 0 : index
    %c0_148 = arith.constant 0 : index
    %314 = vector.load %arg8[%c0_146, %c0_147, %c0_148] : memref<1x1x128xf32, #tpu.memory_space<vmem>>, vector<1x1x128xf32>
    %315 = vector.shape_cast %314 : vector<1x1x128xf32> to vector<1x128xf32>
    %316 = vector.shape_cast %313 : vector<1x128xf32> to vector<1x1x128xf32>
    tpu.vector_store %arg8[%c0_146, %c0_147, %c0_148], %316 {strides = array<i32>} : memref<1x1x128xf32, #tpu.memory_space<vmem>>, vector<1x1x128xf32>,
    return
  }
  func.func @transform_0(%arg0: i32) -> (i32, i32, i32) {
    %c0_i32 = arith.constant 0 : i32
    %c0_i32_0 = arith.constant 0 : i32
    %c0_i32_1 = arith.constant 0 : i32
    return %arg0, %c0_i32, %c0_i32_0 : i32, i32, i32
  }
  func.func @transform_1(%arg0: i32) -> (i32, i32, i32) {
    %c0_i32 = arith.constant 0 : i32
    %c0_i32_0 = arith.constant 0 : i32
    %c0_i32_1 = arith.constant 0 : i32
    %c0_i32_2 = arith.constant 0 : i32
    return %c0_i32, %c0_i32_0, %c0_i32_1 : i32, i32, i32
  }
  func.func @transform_2(%arg0: i32) -> (i32, i32, i32) {
    %c0_i32 = arith.constant 0 : i32
    %c0_i32_0 = arith.constant 0 : i32
    %c0_i32_1 = arith.constant 0 : i32
    %c0_i32_2 = arith.constant 0 : i32
    return %c0_i32, %c0_i32_0, %c0_i32_1 : i32, i32, i32
  }
  func.func @transform_3(%arg0: i32) -> (i32, i32, i32) {
    %c0_i32 = arith.constant 0 : i32
    %c0_i32_0 = arith.constant 0 : i32
    %c0_i32_1 = arith.constant 0 : i32
    %c0_i32_2 = arith.constant 0 : i32
    return %c0_i32, %c0_i32_0, %c0_i32_1 : i32, i32, i32
  }
  func.func @transform_4(%arg0: i32) -> (i32, i32, i32) {
    %c0_i32 = arith.constant 0 : i32
    %c0_i32_0 = arith.constant 0 : i32
    %c0_i32_1 = arith.constant 0 : i32
    %c0_i32_2 = arith.constant 0 : i32
    return %c0_i32, %c0_i32_0, %c0_i32_1 : i32, i32, i32
  }
  func.func @transform_5(%arg0: i32) -> (i32, i32) {
    %c0_i32 = arith.constant 0 : i32
    %c0_i32_0 = arith.constant 0 : i32
    %c0_i32_1 = arith.constant 0 : i32
    return %c0_i32, %c0_i32_0 : i32, i32
  }
  func.func @transform_6(%arg0: i32) -> (i32, i32) {
    %c0_i32 = arith.constant 0 : i32
    %c0_i32_0 = arith.constant 0 : i32
    %c0_i32_1 = arith.constant 0 : i32
    return %c0_i32, %c0_i32_0 : i32, i32
  }
  func.func @transform_7(%arg0: i32) -> (i32, i32, i32) {
    %c0_i32 = arith.constant 0 : i32
    %c0_i32_0 = arith.constant 0 : i32
    %c0_i32_1 = arith.constant 0 : i32
    return %arg0, %c0_i32, %c0_i32_0 : i32, i32, i32
  }
}

</mosaic_0001>

<bundles_post_ra>
// kernel: tpu_custom_call.1
= control target key start
LH: loop header
LB: loop body
LE: loop exit
PB: predicated region body
PF: predicated region fallthrough
CT: control target
= control target key end

     0   :  { %12 = vsyncpa [#allocation3], 0  ;;  %s6633_s0 = inlined_call_operand.hbm [shape: f32[2,64,128], index: 0, kind: input, shape index: {}]   ;;  %s6634_s1 = inlined_call_operand.hbm [shape: f32[5,384,128], index: 1, kind: input, shape index: {}]   ;;  %s6635_s2 = inlined_call_operand.vmem [shape: f32[5,1,128], index: 2, kind: input, shape index: {}]   ;;  %s6636_s3 = inlined_call_operand.hbm [shape: f32[5,128,128], index: 3, kind: input, shape index: {}]   ;;  %s6637_s4 = inlined_call_operand.vmem [shape: f32[5,1,128], index: 4, kind: input, shape index: {}]   ;;  %s6638_s5 = inlined_call_operand.hbm [shape: f32[128,128], index: 5, kind: input, shape index: {}]   ;;  %s6639_s6 = inlined_call_operand.vmem [shape: f32[1,128], index: 6, kind: input, shape index: {}]   ;;  %s6640_s7 = inlined_call_operand.hbm [shape: f32[2,1,128], index: 7, kind: output, shape index: {}]  }
   0x1   :  { %14 = vsyncpa [#allocation3 + $0x1], 0 }
   0x2   :  { %15 = vsyncpa [#allocation6], 0 }
   0x3   :  { %16 = vsyncpa [#allocation9], 0 }
   0x4   :  { %17 = vsyncpa [#allocation4], 0 }
   0x5   :  { %19 = vsyncpa [#allocation4 + $0x1], 0  ;;  %s5156_s24 = smov 0   ;;  %s5158_s25 = smov 0  }
   0x6   :  { %s5160_s26 = smov 0   ;;  %s5162_s27 = smov 0  }
   0x7 LB: > { %s5177_s28 = sadd.s32 4294967295, %s5103_s27   ;;  %s3426_s29 = sadd.s32 4294967294, %s5103_s27   ;;  %s5103_s27 = sphi %s5162_s27, %s6666_s27   ;;  %s5099_s26 = sphi %s5160_s26, %s6665_s26   ;;  %s5095_s25 = sphi %s5158_s25, %s6664_s25   ;;  %s5091_s24 = sphi %s5156_s24, %s6663_s24  }
   0x8   : > { %p45_p0 = scmp.ne.s32.totalorder %s5095_s25, %s5091_s24  ;;  %p6641_p1 = scmp.eq.s32.totalorder %s5177_s28, 0 }
   0x9   : > { %p201_p3 = scmp.eq.s32.totalorder %s3426_s29, 1  ;;  %p3427_p5 = scmp.ge.s32.totalorder %s5103_s27, 1 }
   0xa   : > { %p5186_p4 = por %p6641_p1, %p45_p0  ;;  %p208_p7 = scmp.lt.s32.totalorder %s5103_s27, 3 }
   0xb   : > { %p5191_p6 = por %p201_p3, %p45_p0  ;;  %s5105_s10 = smov [#allocation5]  }
   0xc   : > { %s6645_s30 = scalar_select %p5186_p4, 1, 0 }
   0xd   : > { %s6646_s8 = scalar_select %p5191_p6, 1, 0 }
   0xe   : > { %p5196_p8 = pnand %p3427_p5, %p208_p7  ;;  %s220_s11 = sshll.u32 %s5105_s10, 4  ;;  %s5200_s11 = int_to_ptr.vmem [resolvable:$true] %s220_s11 }
   0xf   : > { %6647 = sst [smem:[#allocation15_spill]] %s6646_s8  ;;  %s5106_s13 = smov [#allocation7]  }
  0x10   : > { %s6648_s9 = scalar_select %p5196_p8, 1, 0 }
  0x11   : > { %p4688_p9 = pneg %p5196_p8  ;;  %s236_s14 = sshll.u32 %s5106_s13, 4  ;;  %s5211_s14 = int_to_ptr.vmem [resolvable:$true] %s236_s14 }
  0x12   : > { %s5107_s15 = smov [#allocation8]   ;;  %s4915_s19 = scalar_lea.hbm %s6634_s1, 30720 }
  0x13   : > { %p5207_p11 = pnand %p4688_p9, %p6641_p1  ;;  %s5213_s16 = sshll.u32 %s5107_s15, 4  ;;  %s253_s16 = int_to_ptr.vmem [resolvable:$true] %s5213_s16 }
  0x14   : > { %p4916_p12 = scmp.ne.s32.totalorder %s6634_s1, %s4915_s19  ;;  %p4922_p5 = scmp.lt.u32.totalorder %s4915_s19, %s6634_s1 }
  0x15   : > { %p5223_p13 = pneg %p5207_p11 }
  0x17   : > { %p4918_p0 = pnand %p5223_p13, %p4916_p12 }
  0x19   : > { %p4919_p3 = pneg %p4918_p0 }
  0x1b   : > { %p4924_p7 = pnand %p4922_p5, %p4919_p3 }
  0x1d   : > { %4927 = shalt.err (!%p4924_p7)
}
  0x1e   : > { %s4928_s10 = scalar_lea.vmem %s5200_s11, 30720  ;;  %p4936_p2 = scmp.lt.s32.totalorder %s5200_s11, %s5200_s11 }
  0x1f   : > { %p4929_p9 = scmp.ne.s32.totalorder %s5200_s11, %s4928_s10  ;;  %p4937_p6 = scmp.lt.s32.totalorder %s4928_s10, %s4928_s10 }
  0x21   : > { %p4931_p10 = pnand %p4929_p9, %p5223_p13  ;;  %p4938_p12 = por %p4937_p6, %p4936_p2 }
  0x23   : > { %p4932_p1 = pneg %p4931_p10 }
  0x25   : > { %p4939_p0 = pnand %p4938_p12, %p4932_p1 }
  0x27   : > { %4942 = shalt.err (!%p4939_p0)
}
  0x28   : > { %s5108_s13 = smov 128   ;;  %s5109_s15 = smov 8  }
  0x29   : > { %4691 = dma.hbm_to_vmem [thread:$0]  (!%p5207_p11), %s6634_s1, 30720, %s5200_s11, [#allocation6], %s5108_s13, %s5108_s13, %s5109_s15  }
  0x2a   : > { %s4943_s21 = scalar_lea.hbm %s6636_s3, 10240 }
  0x2b   : > { %p4944_p1 = scmp.ne.s32.totalorder %s6636_s3, %s4943_s21  ;;  %p4950_p10 = scmp.lt.u32.totalorder %s4943_s21, %s6636_s3 }
  0x2d   : > { %p4946_p2 = pnand %p4944_p1, %p5223_p13 }
  0x2f   : > { %p4947_p6 = pneg %p4946_p2 }
  0x31   : > { %p4952_p3 = pnand %p4950_p10, %p4947_p6 }
  0x33   : > { %4955 = shalt.err (!%p4952_p3)
}
  0x34   : > { %s4956_s11 = scalar_lea.vmem %s5211_s14, 10240  ;;  %p4964_p12 = scmp.lt.s32.totalorder %s5211_s14, %s5211_s14 }
  0x35   : > { %p4957_p5 = scmp.ne.s32.totalorder %s5211_s14, %s4956_s11  ;;  %p4965_p0 = scmp.lt.s32.totalorder %s4956_s11, %s4956_s11 }
  0x37   : > { %p4959_p7 = pnand %p4957_p5, %p5223_p13  ;;  %p4966_p1 = por %p4965_p0, %p4964_p12 }
  0x39   : > { %p4960_p9 = pneg %p4959_p7 }
  0x3b   : > { %p4967_p2 = pnand %p4966_p1, %p4960_p9 }
  0x3d   : > { %4970 = shalt.err (!%p4967_p2)
}
  0x3e   : > { %4694 = dma.hbm_to_vmem [thread:$0]  (!%p5207_p11), %s6636_s3, 10240, %s5211_s14, [#allocation6], %s5108_s13, %s5108_s13, %s5109_s15  }
  0x3f   : > { %s4971_s20 = scalar_lea.hbm %s6638_s5, 2048 }
  0x40   : > { %p4972_p6 = scmp.ne.s32.totalorder %s6638_s5, %s4971_s20  ;;  %p4978_p5 = scmp.lt.u32.totalorder %s4971_s20, %s6638_s5 }
  0x42   : > { %p4974_p10 = pnand %p4972_p6, %p5223_p13 }
  0x44   : > { %p4975_p3 = pneg %p4974_p10 }
  0x46   : > { %p4980_p7 = pnand %p4978_p5, %p4975_p3 }
  0x48   : > { %4983 = shalt.err (!%p4980_p7)
}
  0x49   : > { %s4984_s11 = scalar_lea.vmem %s253_s16, 2048  ;;  %p4992_p1 = scmp.lt.s32.totalorder %s253_s16, %s253_s16 }
  0x4a   : > { %p4985_p9 = scmp.ne.s32.totalorder %s253_s16, %s4984_s11  ;;  %p4993_p2 = scmp.lt.s32.totalorder %s4984_s11, %s4984_s11 }
  0x4c   : > { %p4987_p12 = pnand %p4985_p9, %p5223_p13  ;;  %p4994_p4 = por %p4993_p2, %p4992_p1 }
  0x4e   : > { %p4988_p0 = pneg %p4987_p12 }
  0x50   : > { %p4995_p8 = pnand %p4994_p4, %p4988_p0 }
  0x52   : > { %4998 = shalt.err (!%p4995_p8)
}
  0x53   : > { %4697 = dma.hbm_to_vmem [thread:$0]  (!%p5207_p11), %s6638_s5, 2048, %s253_s16, [#allocation9], %s5108_s13, %s5108_s13, %s5109_s15  }
  0x54   : > { %s5296_s22 = sadd.s32 1, %s5103_s27   ;;  %s32_s17 = sadd.s32 1, %s5099_s26 }
  0x55   : > { %s29_s12 = ssub.s32 %s5103_s27, %s5296_s22  ;;  %p39_p8 = scmp.ne.s32.totalorder %s5099_s26, %s5095_s25 }
  0x56   : > { %p30_p4 = scmp.eq.s32.totalorder %s29_s12, 0  ;;  %p40_p13 = scmp.eq.s32.totalorder %s5103_s27, 0 }
  0x57   : > { %p4709_p6 = scmp.lt.s32.totalorder %s5103_s27, 2  ;;  %p6651_p3 = scmp.eq.s32.totalorder %s5177_s28, 1 }
  0x58   : > { %s5306_s18 = scalar_select %p30_p4, %s5099_s26, %s32_s17  }
  0x59   : > { %p41_p10 = por %p40_p13, %p39_p8  ;;  %p5310_p5 = por %p6651_p3, %p39_p8 }
  0x5a   : > { %s269_s20 = sand.u32 1, %s5099_s26   ;;  %s3455_s21 = sshll.u32 %s5103_s27, 10 }
  0x5b   : > { %s3432_s16 = sshll.u32 %s269_s20, 6  ;;  %s5319_s10 = scalar_lea.hbm %s6633_s0, %s3455_s21 }
  0x5c   : > { %s273_s11 = scalar_lea.vmem [#allocation2], %s3432_s16  ;;  %p5321_p11 = pnand %p4709_p6, %p41_p10 }
  0x5d   : > { %s280_s14 = sshll.u32 %s273_s11, 4  ;;  %s5327_s12 = scalar_lea.sflag [#allocation3], %s269_s20  ;;  %s5325_s14 = int_to_ptr.vmem [resolvable:$true] %s280_s14 }
  0x5e   : > { %s4999_s17 = scalar_lea.hbm %s5319_s10, 1024  ;;  %p5001_p9 = pneg %p5321_p11 }
  0x5f   : > { %p5000_p7 = scmp.ne.s32.totalorder %s5319_s10, %s4999_s17  ;;  %s5004_s23 = scalar_lea.hbm %s6633_s0, 2048 }
  0x60   : > { %p5005_p1 = scmp.lt.u32.totalorder %s5319_s10, %s6633_s0  ;;  %p5006_p2 = scmp.lt.u32.totalorder %s5004_s23, %s4999_s17 }
  0x61   : > { %p5002_p12 = pnand %p5001_p9, %p5000_p7  ;;  %p5008_p8 = scmp.lt.u32.totalorder %s4999_s17, %s5319_s10 }
  0x62   : > { %p5007_p4 = por %p5006_p2, %p5005_p1 }
  0x63   : > { %p5003_p0 = pneg %p5002_p12 }
  0x64   : > { %p5009_p13 = por %p5008_p8, %p5007_p4 }
  0x66   : > { %p5010_p6 = pnand %p5009_p13, %p5003_p0 }
  0x68   : > { %5013 = shalt.err (!%p5010_p6)
}
  0x69   : > { %s5014_s20 = scalar_lea.vmem %s5325_s14, 1024  ;;  %s5110_s21 = smov [#allocation2]  }
  0x6a   : > { %p5015_p10 = scmp.ne.s32.totalorder %s5325_s14, %s5014_s20  ;;  %s5019_s16 = sshll.u32 %s5110_s21, 4  ;;  %s5020_s16 = int_to_ptr.vmem [resolvable:$false] %s5019_s16 }
  0x6b   : > { %s5021_s29 = scalar_lea.vmem %s5020_s16, 2048  ;;  %p5022_p12 = scmp.lt.s32.totalorder %s5325_s14, %s5020_s16 }
  0x6c   : > { %p5017_p3 = pnand %p5015_p10, %p5001_p9  ;;  %p5023_p1 = scmp.lt.s32.totalorder %s5021_s29, %s5014_s20 }
  0x6e   : > { %p5018_p7 = pneg %p5017_p3  ;;  %p5024_p2 = por %p5023_p1, %p5022_p12 }
  0x70   : > { %p5025_p4 = pnand %p5024_p2, %p5018_p7 }
  0x72   : > { %5028 = shalt.err (!%p5025_p4)
}
  0x73   : > { %4701 = dma.hbm_to_vmem [thread:$0]  (!%p5321_p11), %s5319_s10, 1024, %s5325_s14, %s5327_s12, %s5108_s13, %s5108_s13, %s5109_s15  }
  0x74   : > { %p6654_p9 = scmp.ne.s32.totalorder %s6648_s9, 0 }
  0x75   : > { %s5361_s17 = sand.u32 (!%p6654_p9), 1, %s5095_s25   ;;  %p6655_p0 = scmp.ne.s32.totalorder (!%p6654_p9), %s6645_s30, 0 }
  0x76   : > { %292 = sbr.rel (%p6654_p9) target bundleno = 1854 (0x73e), region = 48  ;;  %s3436_s23 = sshll.u32 (!%p6654_p9), %s5361_s17, 6 }
  0x77   : > { %s295_s11 = scalar_lea.sflag (!%p6654_p9), [#allocation3], %s5361_s17  ;;  %s5365_s20 = scalar_lea.vmem (!%p6654_p9), [#allocation2], %s3436_s23 }
  0x7d   : > { %5074 = dma.done.wait (%p6655_p0), %s295_s11, 1024  }
  0x7e   : > { %5076 = vsyncadd (%p6655_p0), %s295_s11, 4294966272  ;;  %p6656_p11 = scmp.eq.s32.totalorder %s5177_s28, 0 }
  0x80   : > { %5078 = dma.done.wait (%p6656_p11), [#allocation6], 40960   ;;  %p6657_p8 = pmov %p6656_p11 }
  0x82   : > { %5080 = vsyncadd (%p6657_p8), [#allocation6], 4294926336  ;;  %p6658_p13 = pmov %p6657_p8 }
  0x83   : > { %p6659_p6 = pmov %p6657_p8 }
  0x84   : > { %5082 = dma.done.wait (%p6658_p13), [#allocation9], 2048  }
  0x85   : > { %5084 = vsyncadd (%p6659_p6), [#allocation9], 4294965248  ;;  %v400_v0 = vld [vmem:[#allocation5 + $0x80] sm:$0xff]  ;;  %v401_v1 = vld [vmem:[#allocation5 + $0x88] sm:$0xff]  ;;  %v356_v36 = vlaneseq  ;;  %s3452_s13 = sshll.u32 %s5177_s28, 4  ;;  %s339_s15 = scalar_lea.vmem [#allocation10], %s5361_s17 }
  0x86   : > { %v384_v2 = vld [vmem:[#allocation5] sm:$0xff]  ;;  %v4264_v3 = vpack.c.bf16 %v401_v1, %v400_v0  ;;  %v385_v4 = vld [vmem:[#allocation5 + $0x8] sm:$0xff]  ;;  %v402_v5 = vld [vmem:[#allocation5 + $0x90] sm:$0xff]  ;;  %s3331_s10 = sshll.u32 %s339_s15, 4  ;;  %s6589_s12 = scalar_lea.hbm %s6640_s7, %s3452_s13  ;;  %s6591_s10 = int_to_ptr.vmem [resolvable:$true] %s3331_s10 }
  0x87   : > { %v403_v6 = vld [vmem:[#allocation5 + $0x98] sm:$0xff]  ;;  %v4266_v7 = vpack.c.bf16 %v385_v4, %v384_v2  ;;  %v416_v9 = vld [vmem:[#allocation5 + $0x100] sm:$0xff]  ;;  %v417_v10 = vld [vmem:[#allocation5 + $0x108] sm:$0xff]  ;;  %v5379_v46 = vshrl.u32 %v356_v36, 7  ;;  %s3319_s21 = scalar_lea.sflag [#allocation4], %s5361_s17  ;;  %s5029_s16 = scalar_lea.vmem %s6591_s10, 16 }
  0x88   : > { %v4268_v8 = vpack.c.bf16 %v403_v6, %v402_v5  ;;  %v386_v11 = vld [vmem:[#allocation5 + $0x10] sm:$0xff]  ;;  %4265 = vmatprep.subr.bf16.mxu0 %v4264_v3  ;;  %v4296_v12 = vpack.c.bf16 %v417_v10, %v416_v9  ;;  %v387_v13 = vld [vmem:[#allocation5 + $0x18] sm:$0xff]  ;;  %v404_v14 = vld [vmem:[#allocation5 + $0xa0] sm:$0xff]  ;;  %p5030_p10 = scmp.ne.s32.totalorder %s6591_s10, %s5029_s16  ;;  %s5115_s28 = smov [#allocation10]  }
  0x89   : > { %v405_v15 = vld [vmem:[#allocation5 + $0xa8] sm:$0xff]  ;;  %4267 = vmatpush3.bf16.msra.mxu0 %v4266_v7  ;;  %v4270_v16 = vpack.c.bf16 %v387_v13, %v386_v11  ;;  %v418_v17 = vld [vmem:[#allocation5 + $0x110] sm:$0xff]  ;;  %v419_v18 = vld [vmem:[#allocation5 + $0x118] sm:$0xff]  ;;  %vm375_vm0 = vcmp.lt.s32.totalorder %v5379_v46, 6  ;;  %vm358_vm1 = vcmp.lt.s32.totalorder %v5379_v46, 2  ;;  %vm1009_vm7 = vcmp.lt.s32.totalorder %v5379_v46, 4 }
  0x8a   : > { %4269 = vmatprep.subr.bf16.mxu0 %v4268_v8  ;;  %4297 = vmatprep.subr.bf16.mxu1 %v4296_v12  ;;  %v4272_v19 = vpack.c.bf16 %v405_v15, %v404_v14  ;;  %v4300_v20 = vpack.c.bf16 %v419_v18, %v418_v17  ;;  %v388_v21 = vld [vmem:[#allocation5 + $0x20] sm:$0xff]  ;;  %v389_v22 = vld [vmem:[#allocation5 + $0x28] sm:$0xff]  ;;  %v406_v23 = vld [vmem:[#allocation5 + $0xb0] sm:$0xff]  ;;  %p5031_p3 = pnand %p5030_p10, %p5310_p5  ;;  %s5033_s29 = sshll.u32 %s5115_s28, 4  ;;  %s5034_s29 = int_to_ptr.vmem [resolvable:$false] %s5033_s29 }
  0x8b   : > { %4299 = vmatpush3.bf16.msra.mxu1 %v4296_v12  ;;  %v407_v24 = vld [vmem:[#allocation5 + $0xb8] sm:$0xff]  ;;  %v420_v25 = vld [vmem:[#allocation5 + $0x120] sm:$0xff]  ;;  %v421_v26 = vld [vmem:[#allocation5 + $0x128] sm:$0xff]  ;;  %v4274_v28 = vpack.c.bf16 %v389_v22, %v388_v21  ;;  %s5035_s23 = scalar_lea.vmem %s5034_s29, 32  ;;  %p5036_p12 = scmp.lt.s32.totalorder %s6591_s10, %s5034_s29 }
  0x8c   : > { %4301 = vmatprep.subr.bf16.mxu1 %v4300_v20  ;;  %v4304_v27 = vpack.c.bf16 %v421_v26, %v420_v25  ;;  %v422_v29 = vld [vmem:[#allocation5 + $0x130] sm:$0xff]  ;;  %v423_v30 = vld [vmem:[#allocation5 + $0x138] sm:$0xff]  ;;  %v4276_v31 = vpack.c.bf16 %v407_v24, %v406_v23  ;;  %v408_v34 = vld [vmem:[#allocation5 + $0xc0] sm:$0xff]  ;;  %p5032_p7 = pneg %p5031_p3  ;;  %p5037_p1 = scmp.lt.s32.totalorder %s5035_s23, %s5029_s16 }
  0x8d   : > { %4271 = vmatpush3.bf16.msra.mxu0 %v4270_v16  ;;  %v390_v32 = vld [vmem:[#allocation5 + $0x30] sm:$0xff]  ;;  %v391_v33 = vld [vmem:[#allocation5 + $0x38] sm:$0xff]  ;;  %v409_v35 = vld [vmem:[#allocation5 + $0xc8] sm:$0xff]  ;;  %v4308_v37 = vpack.c.bf16 %v423_v30, %v422_v29 }
  0x8e   : > { %4273 = vmatprep.subr.bf16.mxu0 %v4272_v19  ;;  %v4278_v38 = vpack.c.bf16 %v391_v33, %v390_v32  ;;  %v424_v39 = vld [vmem:[#allocation5 + $0x140] sm:$0xff]  ;;  %v425_v40 = vld [vmem:[#allocation5 + $0x148] sm:$0xff]  ;;  %v4280_v41 = vpack.c.bf16 %v409_v35, %v408_v34  ;;  %v410_v44 = vld [vmem:[#allocation5 + $0xd0] sm:$0xff]  ;;  %p5038_p2 = por %p5037_p1, %p5036_p12 }
  0x8f   : > { %4303 = vmatpush3.bf16.msra.mxu1 %v4300_v20  ;;  %v392_v42 = vld [vmem:[#allocation5 + $0x40] sm:$0xff]  ;;  %v393_v43 = vld [vmem:[#allocation5 + $0x48] sm:$0xff]  ;;  %v411_v45 = vld [vmem:[#allocation5 + $0xd8] sm:$0xff]  ;;  %v4312_v47 = vpack.c.bf16 %v425_v40, %v424_v39 }
  0x90   : > { %4305 = vmatprep.subr.bf16.mxu1 %v4304_v27  ;;  %v5382_v48 = vld [vmem:[%s5365_s20] sm:$0xff]  ;;  %v4282_v49 = vpack.c.bf16 %v393_v43, %v392_v42  ;;  %v426_v50 = vld [vmem:[#allocation5 + $0x150] sm:$0xff]  ;;  %v427_v51 = vld [vmem:[#allocation5 + $0x158] sm:$0xff]  ;;  %v4284_v54 = vpack.c.bf16 %v411_v45, %v410_v44  ;;  %p5039_p4 = pnand %p5038_p2, %p5032_p7 }
  0x91   : > { %4275 = vmatpush3.bf16.msra.mxu0 %v4274_v28  ;;  %503 = vmatprep.mubr.f32.mxu0 %v5382_v48  ;;  %v5386_v52 = vld [vmem:[%s5365_s20 + $0x8] sm:$0xff]  ;;  %v367_v53 = vrot.slane %v5382_v48, 2  ;;  %v394_v55 = vld [vmem:[#allocation5 + $0x50] sm:$0xff]  ;;  %v395_v56 = vld [vmem:[#allocation5 + $0x58] sm:$0xff]  ;;  %v4316_v60 = vpack.c.bf16 %v427_v51, %v426_v50  ;;  %v348_v19 = vrot.slane %v5382_v48, 6 }
  0x92   : > { %4277 = vmatprep.subr.bf16.mxu0 %v4276_v31  ;;  %v368_v57 = vrot.slane %v5386_v52, 2  ;;  %v412_v58 = vld [vmem:[#allocation5 + $0xe0] sm:$0xff]  ;;  %v413_v59 = vld [vmem:[#allocation5 + $0xe8] sm:$0xff]  ;;  %v4286_v62 = vpack.c.bf16 %v395_v56, %v394_v55  ;;  %v414_v4 = vld [vmem:[#allocation5 + $0xf0] sm:$0xff]  ;;  %v349_v29 = vrot.slane %v5386_v52, 6 }
  0x93   : > { %4307 = vmatpush3.bf16.msra.mxu1 %v4304_v27  ;;  %v428_v63 = vld [vmem:[#allocation5 + $0x160] sm:$0xff]  ;;  %v429_v0 = vld [vmem:[#allocation5 + $0x168] sm:$0xff]  ;;  %v4288_v1 = vpack.c.bf16 %v413_v59, %v412_v58  ;;  %v415_v5 = vld [vmem:[#allocation5 + $0xf8] sm:$0xff] }
  0x94   : > { %4309 = vmatprep.subr.bf16.mxu1 %v4308_v37  ;;  %v382_v61 = vsel %vm375_vm0, %v367_v53, %v368_v57  ;;  %v396_v2 = vld [vmem:[#allocation5 + $0x60] sm:$0xff]  ;;  %v397_v3 = vld [vmem:[#allocation5 + $0x68] sm:$0xff]  ;;  %v4320_v6 = vpack.c.bf16 %v429_v0, %v428_v63  ;;  %v430_v8 = vld [vmem:[#allocation5 + $0x170] sm:$0xff]  ;;  %v4292_v10 = vpack.c.bf16 %v415_v5, %v414_v4  ;;  %v365_v39 = vsel %vm358_vm1, %v348_v19, %v349_v29 }
  0x95   : > { %4279 = vmatpush3.bf16.msra.mxu0 %v4278_v38  ;;  %3953 = vmatprep.mubr.f32.mxu1 %v382_v61  ;;  %v4290_v7 = vpack.c.bf16 %v397_v3, %v396_v2  ;;  %v431_v9 = vld [vmem:[#allocation5 + $0x178] sm:$0xff]  ;;  %v398_v11 = vld [vmem:[#allocation5 + $0x70] sm:$0xff]  ;;  %v865_v14 = vld [vmem:[#allocation7] sm:$0xff] }
  0x96   : > { %4281 = vmatprep.subr.bf16.mxu0 %v4280_v41  ;;  %v399_v12 = vld [vmem:[#allocation5 + $0x78] sm:$0xff]  ;;  %v866_v15 = vld [vmem:[#allocation7 + $0x8] sm:$0xff]  ;;  %v4324_v16 = vpack.c.bf16 %v431_v9, %v430_v8  ;;  %v5399_v17 = vld [vmem:[%s5365_s20 + $0x10] sm:$0xff] }
  0x97   : > { %4311 = vmatpush3.bf16.msra.mxu1 %v4308_v37  ;;  %v5396_v13 = vld [vmem:[%s5365_s20 + $0x38] sm:$0xff]  ;;  %v4294_v18 = vpack.c.bf16 %v399_v12, %v398_v11  ;;  %v4328_v22 = vpack.c.bf16 %v866_v15, %v865_v14  ;;  %v369_v23 = vrot.slane %v5399_v17, 2  ;;  %v867_v24 = vld [vmem:[#allocation7 + $0x10] sm:$0xff]  ;;  %v5410_v27 = vld [vmem:[%s5365_s20 + $0x20] sm:$0xff]  ;;  %v350_v40 = vrot.slane %v5399_v17, 6 }
  0x98   : > { %4313 = vmatprep.subr.bf16.mxu1 %v4312_v47  ;;  %v355_v20 = vrot.slane %v5396_v13, 6  ;;  %v5404_v21 = vld [vmem:[%s5365_s20 + $0x18] sm:$0xff]  ;;  %v5418_v30 = vld [vmem:[%s5365_s20 + $0x28] sm:$0xff]  ;;  %v371_v33 = vrot.slane %v5410_v27, 2  ;;  %v869_v34 = vld [vmem:[#allocation7 + $0x20] sm:$0xff] }
  0x99   : > { %4283 = vmatpush3.bf16.msra.mxu0 %v4282_v49  ;;  %v868_v25 = vld [vmem:[#allocation7 + $0x18] sm:$0xff]  ;;  %v370_v26 = vrot.slane %v5404_v21, 2  ;;  %v381_v32 = vsel %vm375_vm0, %v368_v57, %v369_v23  ;;  %v870_v35 = vld [vmem:[#allocation7 + $0x28] sm:$0xff]  ;;  %v372_v37 = vrot.slane %v5418_v30, 2  ;;  %v5427_v38 = vld [vmem:[%s5365_s20 + $0x30] sm:$0xff]  ;;  %v374_v49 = vrot.slane %v5396_v13, 2 }
  0x9a   : > { %4285 = vmatprep.subr.bf16.mxu0 %v4284_v54  ;;  %v366_v28 = vsel %vm358_vm1, %v355_v20, %v348_v19  ;;  %v4332_v31 = vpack.c.bf16 %v868_v25, %v867_v24  ;;  %v4336_v41 = vpack.c.bf16 %v870_v35, %v869_v34  ;;  %v373_v43 = vrot.slane %v5427_v38, 2  ;;  %v871_v44 = vld [vmem:[#allocation7 + $0x30] sm:$0xff]  ;;  %v872_v45 = vld [vmem:[#allocation7 + $0x38] sm:$0xff]  ;;  %v873_v56 = vld [vmem:[#allocation7 + $0x40] sm:$0xff] }
  0x9b   : > { %4315 = vmatpush3.bf16.msra.mxu1 %v4312_v47  ;;  %v380_v36 = vsel %vm375_vm0, %v369_v23, %v370_v26  ;;  %v379_v42 = vsel %vm375_vm0, %v370_v26, %v371_v33  ;;  %v378_v47 = vsel %vm375_vm0, %v371_v33, %v372_v37  ;;  %v364_v50 = vsel %vm358_vm1, %v349_v29, %v350_v40  ;;  %v874_v57 = vld [vmem:[#allocation7 + $0x48] sm:$0xff]  ;;  %v875_v63 = vld [vmem:[#allocation7 + $0x50] sm:$0xff]  ;;  %v876_v0 = vld [vmem:[#allocation7 + $0x58] sm:$0xff] }
  0x9c   : > { %4317 = vmatprep.subr.bf16.mxu1 %v4316_v60  ;;  %v351_v51 = vrot.slane %v5404_v21, 6  ;;  %v4340_v54 = vpack.c.bf16 %v872_v45, %v871_v44  ;;  %v377_v55 = vsel %vm375_vm0, %v372_v37, %v373_v43  ;;  %v376_v58 = vsel %vm375_vm0, %v373_v43, %v374_v49  ;;  %v877_v4 = vld [vmem:[#allocation7 + $0x60] sm:$0xff]  ;;  %v878_v5 = vld [vmem:[#allocation7 + $0x68] sm:$0xff]  ;;  %v879_v8 = vld [vmem:[#allocation7 + $0x70] sm:$0xff] }
  0x9d   : > { %4287 = vmatpush3.bf16.msra.mxu0 %v4286_v62  ;;  %v4344_v61 = vpack.c.bf16 %v874_v57, %v873_v56  ;;  %v383_v62 = vsel %vm375_vm0, %v374_v49, %v367_v53  ;;  %v353_v2 = vrot.slane %v5418_v30, 6  ;;  %v4348_v3 = vpack.c.bf16 %v876_v0, %v875_v63  ;;  %v880_v9 = vld [vmem:[#allocation7 + $0x78] sm:$0xff]  ;;  %v1051_v14 = vld [vmem:[#allocation5 + $0x280] sm:$0xff]  ;;  %v1052_v15 = vld [vmem:[#allocation5 + $0x288] sm:$0xff] }
  0x9e   : > { %4289 = vmatprep.subr.bf16.mxu0 %v4288_v1  ;;  %v363_v59 = vsel %vm358_vm1, %v350_v40, %v351_v51  ;;  %v4356_v11 = vpack.c.bf16 %v880_v9, %v879_v8  ;;  %v1056_v19 = vld [vmem:[#allocation5 + $0x2a8] sm:$0xff]  ;;  %v1035_v26 = vld [vmem:[#allocation5 + $0x200] sm:$0xff]  ;;  %v1037_v35 = vld [vmem:[#allocation5 + $0x210] sm:$0xff] }
  0x9f   : > { %4319 = vmatpush3.bf16.msra.mxu1 %v4316_v60  ;;  %v352_v60 = vrot.slane %v5410_v27, 6  ;;  %v1060_v24 = vld [vmem:[#allocation5 + $0x2c8] sm:$0xff]  ;;  %v1063_v37 = vld [vmem:[#allocation5 + $0x2e0] sm:$0xff]  ;;  %v1021_v40 = vld [vmem:[#allocation5 + $0x190] sm:$0xff] }
  0xa0   : > { %4321 = vmatprep.subr.bf16.mxu1 %v4320_v6  ;;  %v1039_v44 = vld [vmem:[#allocation5 + $0x220] sm:$0xff]  ;;  %v1040_v45 = vld [vmem:[#allocation5 + $0x228] sm:$0xff]  ;;  %v1041_v57 = vld [vmem:[#allocation5 + $0x230] sm:$0xff] }
  0xa1   : > { %4291 = vmatpush3.bf16.msra.mxu0 %v4290_v7  ;;  %v362_v1 = vsel %vm358_vm1, %v351_v51, %v352_v60  ;;  %v361_v53 = vsel %vm358_vm1, %v352_v60, %v353_v2  ;;  %v4352_v7 = vpack.c.bf16 %v878_v5, %v877_v4  ;;  %v4368_v49 = vpack.c.bf16 %v1040_v45, %v1039_v44  ;;  %v1023_v51 = vld [vmem:[#allocation5 + $0x1a0] sm:$0xff]  ;;  %v1044_v63 = vld [vmem:[#allocation5 + $0x248] sm:$0xff]  ;;  %v1045_v5 = vld [vmem:[#allocation5 + $0x250] sm:$0xff] }
  0xa2   : > { %4293 = vmatprep.subr.bf16.mxu0 %v4292_v10  ;;  %v1030_v8 = vld [vmem:[#allocation5 + $0x1d8] sm:$0xff]  ;;  %v1047_v9 = vld [vmem:[#allocation5 + $0x260] sm:$0xff] }
  0xa3   : > { %4323 = vmatpush3.bf16.msra.mxu1 %v4320_v6  ;;  %v354_v6 = vrot.slane %v5427_v38, 6  ;;  %v1565_v46 = vld [vmem:[#allocation5 + $0x380] sm:$0xff] }
  0xa4   : > { %4325 = vmatprep.subr.bf16.mxu1 %v4324_v16 }
  0xa5   : > { %4295 = vmatpush3.bf16.msra.mxu0 %v4294_v18  ;;  %v360_v10 = vsel %vm358_vm1, %v353_v2, %v354_v6  ;;  %v359_v12 = vsel %vm358_vm1, %v354_v6, %v355_v20  ;;  %v1054_v18 = vld [vmem:[#allocation5 + $0x298] sm:$0xff]  ;;  %v1027_v2 = vld [vmem:[#allocation5 + $0x1c0] sm:$0xff]  ;;  %v1029_v6 = vld [vmem:[#allocation5 + $0x1d0] sm:$0xff] }
  0xa6   : > { %4329 = vmatprep.subr.bf16.mxu0 %v4328_v22 }
  0xa7   : > { %4327 = vmatpush3.bf16.msra.mxu1 %v4324_v16  ;;  %v4392_v16 = vpack.c.bf16 %v1052_v15, %v1051_v14  ;;  %v1031_v14 = vld [vmem:[#allocation5 + $0x1e0] sm:$0xff]  ;;  %v1032_v15 = vld [vmem:[#allocation5 + $0x1e8] sm:$0xff] }
  0xa8   : > { %504 = vmatmul.mubr.f32.vlgmr.msra.gmra.mrb[0].mxu0 %v366_v28  ;;  %v1061_v28 = vld [vmem:[#allocation5 + $0x2d0] sm:$0xff] }
  0xa9   : > { %508 = vmatprep.mubr.f32.mxu0 %v5386_v52  ;;  %4331 = vmatpush3.bf16.msra.mxu0 %v4328_v22  ;;  %v1058_v22 = vld [vmem:[#allocation5 + $0x2b8] sm:$0xff] }
  0xaa   : > { %3954 = vmatmul.mubr.f32.vlgmr.msra.gmra.mrb[0].mxu1 %v381_v32  ;;  %4333 = vmatprep.subr.bf16.mxu0 %v4332_v31  ;;  %v1020_v32 = vld [vmem:[#allocation5 + $0x188] sm:$0xff] }
  0xab   : > { %3956 = vmatprep.mubr.f32.mxu1 %v380_v36  ;;  %v1038_v36 = vld [vmem:[#allocation5 + $0x218] sm:$0xff] }
  0xac   : > { %509 = vmatmul.mubr.f32.gmra.mrb[2].mxu0 %v365_v39  ;;  %v1064_v39 = vld [vmem:[#allocation5 + $0x2e8] sm:$0xff] }
  0xad   : > { %513 = vmatprep.mubr.f32.mxu0 %v5399_v17  ;;  %4335 = vmatpush3.bf16.msra.mxu0 %v4332_v31  ;;  %v1019_v31 = vld [vmem:[#allocation5 + $0x180] sm:$0xff] }
  0xae   : > { %3957 = vmatmul.mubr.f32.gmra.mrb[2].mxu1 %v379_v42  ;;  %4337 = vmatprep.subr.bf16.mxu0 %v4336_v41  ;;  %v4362_v34 = vpack.c.bf16 %v1020_v32, %v1019_v31  ;;  %v4416_v42 = vpack.c.bf16 %v1064_v39, %v1063_v37 }
  0xaf   : > { %3959 = vmatprep.mubr.f32.mxu1 %v378_v47  ;;  %v1065_v47 = vld [vmem:[#allocation5 + $0x2f0] sm:$0xff] }
  0xb0   : > { %514 = vmatmul.mubr.f32.gmra.mrb[4].mxu0 %v364_v50  ;;  %v1066_v50 = vld [vmem:[#allocation5 + $0x2f8] sm:$0xff] }
  0xb1   : > { %518 = vmatprep.mubr.f32.mxu0 %v5404_v21  ;;  %4339 = vmatpush3.bf16.msra.mxu0 %v4336_v41  ;;  %v1022_v41 = vld [vmem:[#allocation5 + $0x198] sm:$0xff] }
  0xb2   : > { %3960 = vmatmul.mubr.f32.gmra.mrb[4].mxu1 %v377_v55  ;;  %4341 = vmatprep.subr.bf16.mxu0 %v4340_v54  ;;  %v4366_v43 = vpack.c.bf16 %v1022_v41, %v1021_v40  ;;  %v4420_v55 = vpack.c.bf16 %v1066_v50, %v1065_v47 }
  0xb3   : > { %3962 = vmatprep.mubr.f32.mxu1 %v376_v58  ;;  %v1042_v58 = vld [vmem:[#allocation5 + $0x238] sm:$0xff] }
  0xb4   : > { %519 = vmatmul.mubr.f32.gmra.mrb[6].mxu0 %v363_v59  ;;  %v1025_v59 = vld [vmem:[#allocation5 + $0x1b0] sm:$0xff]  ;;  %v4372_v60 = vpack.c.bf16 %v1042_v58, %v1041_v57 }
  0xb5   : > { %523 = vmatprep.mubr.f32.mxu0 %v5410_v27  ;;  %4343 = vmatpush3.bf16.msra.mxu0 %v4340_v54  ;;  %v1024_v54 = vld [vmem:[#allocation5 + $0x1a8] sm:$0xff] }
  0xb6   : > { %3963 = vmatmul.mubr.f32.gmra.mrb[6].mxu1 %v383_v62  ;;  %4345 = vmatprep.subr.bf16.mxu0 %v4344_v61  ;;  %v4370_v56 = vpack.c.bf16 %v1024_v54, %v1023_v51  ;;  %v1043_v62 = vld [vmem:[#allocation5 + $0x240] sm:$0xff] }
  0xb8   : > { %524 = vmatmul.mubr.f32.gmra.mrb[8].mxu0 %v362_v1  ;;  %v4376_v1 = vpack.c.bf16 %v1044_v63, %v1043_v62 }
  0xb9   : > { %528 = vmatprep.mubr.f32.mxu0 %v5418_v30  ;;  %4347 = vmatpush3.bf16.msra.mxu0 %v4344_v61  ;;  %v1026_v61 = vld [vmem:[#allocation5 + $0x1b8] sm:$0xff] }
  0xba   : > { %4349 = vmatprep.subr.bf16.mxu0 %v4348_v3  ;;  %v4374_v0 = vpack.c.bf16 %v1026_v61, %v1025_v59 }
  0xbc   : > { %529 = vmatmul.mubr.f32.gmra.mrb[10].mxu0 %v361_v53  ;;  %v1046_v53 = vld [vmem:[#allocation5 + $0x258] sm:$0xff] }
  0xbd   : > { %533 = vmatprep.mubr.f32.mxu0 %v5427_v38  ;;  %4351 = vmatpush3.bf16.msra.mxu0 %v4348_v3  ;;  %v1028_v3 = vld [vmem:[#allocation5 + $0x1c8] sm:$0xff] }
  0xbe   : > { %4353 = vmatprep.subr.bf16.mxu0 %v4352_v7  ;;  %v4378_v4 = vpack.c.bf16 %v1028_v3, %v1027_v2 }
  0xc0   : > { %534 = vmatmul.mubr.f32.gmra.mrb[12].mxu0 %v360_v10  ;;  %v1048_v10 = vld [vmem:[#allocation5 + $0x268] sm:$0xff] }
  0xc1   : > { %538 = vmatprep.mubr.f32.mxu0 %v5396_v13  ;;  %4355 = vmatpush3.bf16.msra.mxu0 %v4352_v7  ;;  %v4380_v7 = vpack.c.bf16 %v1046_v53, %v1045_v5 }
  0xc2   : > { %4357 = vmatprep.subr.bf16.mxu0 %v4356_v11 }
  0xc4   : > { %539 = vmatmul.mubr.f32.gmra.mrb[14].mxu0 %v359_v12  ;;  %v4384_v12 = vpack.c.bf16 %v1048_v10, %v1047_v9 }
  0xc5   : > { %4359 = vmatpush3.bf16.msra.mxu0 %v4356_v11  ;;  %3997 = vmatprep.mubr.f32.mxu0 %v5382_v48  ;;  %v1053_v48 = vld [vmem:[#allocation5 + $0x290] sm:$0xff]  ;;  %v4382_v11 = vpack.c.bf16 %v1030_v8, %v1029_v6 }
  0xc6   : > { %4393 = vmatprep.subr.bf16.mxu0 %v4392_v16 }
  0xc8   : > { %3998 = vmatmul.mubr.f32.vlgmr.msra.gmra.mrb[16].mxu0 %v5386_v52  ;;  %v4396_v52 = vpack.c.bf16 %v1054_v18, %v1053_v48  ;;  %v1050_v48 = vld [vmem:[#allocation5 + $0x278] sm:$0xff]  ;;  %v4386_v18 = vpack.c.bf16 %v1032_v15, %v1031_v14  ;;  %v5111_v15 = vmov -1.0  }
  0xc9   : > { %4000 = vmatprep.mubr.f32.mxu0 %v5399_v17  ;;  %4395 = vmatpush3.bf16.msra.mxu0 %v4392_v16  ;;  %v1055_v17 = vld [vmem:[#allocation5 + $0x2a0] sm:$0xff]  ;;  %v1049_v16 = vld [vmem:[#allocation5 + $0x270] sm:$0xff] }
  0xca   : > { %4397 = vmatprep.subr.bf16.mxu0 %v4396_v52  ;;  %v4400_v20 = vpack.c.bf16 %v1056_v19, %v1055_v17  ;;  %v1033_v17 = vld [vmem:[#allocation5 + $0x1f0] sm:$0xff]  ;;  %v1034_v19 = vld [vmem:[#allocation5 + $0x1f8] sm:$0xff] }
  0xcc   : > { %4001 = vmatmul.mubr.f32.gmra.mrb[18].mxu0 %v5404_v21  ;;  %v1057_v21 = vld [vmem:[#allocation5 + $0x2b0] sm:$0xff] }
  0xcd   : > { %4003 = vmatprep.mubr.f32.mxu0 %v5410_v27  ;;  %4399 = vmatpush3.bf16.msra.mxu0 %v4396_v52  ;;  %v4404_v23 = vpack.c.bf16 %v1058_v22, %v1057_v21  ;;  %v1036_v27 = vld [vmem:[#allocation5 + $0x208] sm:$0xff]  ;;  %v4388_v52 = vpack.c.bf16 %v1050_v48, %v1049_v16 }
  0xce   : > { %4401 = vmatprep.subr.bf16.mxu0 %v4400_v20  ;;  %v4360_v29 = vpack.c.bf16 %v1036_v27, %v1035_v26 }
  0xd0   : > { %4004 = vmatmul.mubr.f32.gmra.mrb[20].mxu0 %v5418_v30  ;;  %v1062_v30 = vld [vmem:[#allocation5 + $0x2d8] sm:$0xff]  ;;  %4361 = vmatprep.subr.bf16.mxu1 %v4360_v29 }
  0xd1   : > { %4006 = vmatprep.mubr.f32.mxu0 %v5427_v38  ;;  %4403 = vmatpush3.bf16.msra.mxu0 %v4400_v20  ;;  %v4412_v33 = vpack.c.bf16 %v1062_v30, %v1061_v28  ;;  %v4364_v38 = vpack.c.bf16 %v1038_v36, %v1037_v35  ;;  %v4390_v20 = vpack.c.bf16 %v1034_v19, %v1033_v17 }
  0xd2   : > { %4405 = vmatprep.subr.bf16.mxu0 %v4404_v23  ;;  %4363 = vmatpush3.bf16.msra.mxu1 %v4362_v34 }
  0xd3   : > { %4365 = vmatprep.subr.bf16.mxu1 %v4364_v38 }
  0xd4   : > { %4007 = vmatmul.mubr.f32.gmra.mrb[22].mxu0 %v5396_v13  ;;  %v1059_v13 = vld [vmem:[#allocation5 + $0x2c0] sm:$0xff] }
  0xd5   : > { %4407 = vmatpush3.bf16.msra.mxu0 %v4404_v23  ;;  %v4408_v25 = vpack.c.bf16 %v1060_v24, %v1059_v13  ;;  %v5482_v23 = vld [vmem:[%s6635_s2] ss:$0 sm:$0xff] }
  0xd6   : > { %4367 = vmatpush3.bf16.msra.mxu1 %v4366_v43 }
  0xd7   : > { %4409 = vmatprep.subr.bf16.mxu0 %v4408_v25  ;;  %4369 = vmatprep.subr.bf16.mxu1 %v4368_v49 }
  0xd9   : > { %4411 = vmatpush3.bf16.msra.mxu0 %v4408_v25 }
  0xda   : > { %4413 = vmatprep.subr.bf16.mxu0 %v4412_v33  ;;  %4371 = vmatpush3.bf16.msra.mxu1 %v4370_v56 }
  0xdb   : > { %4373 = vmatprep.subr.bf16.mxu1 %v4372_v60 }
  0xdd   : > { %4415 = vmatpush3.bf16.msra.mxu0 %v4412_v33 }
  0xde   : > { %4417 = vmatprep.subr.bf16.mxu0 %v4416_v42  ;;  %4375 = vmatpush3.bf16.msra.mxu1 %v4374_v0 }
  0xdf   : > { %4377 = vmatprep.subr.bf16.mxu1 %v4376_v1 }
  0xe1   : > { %4419 = vmatpush3.bf16.msra.mxu0 %v4416_v42 }
  0xe2   : > { %4421 = vmatprep.subr.bf16.mxu0 %v4420_v55  ;;  %4379 = vmatpush3.bf16.msra.mxu1 %v4378_v4 }
  0xe3   : > { %4381 = vmatprep.subr.bf16.mxu1 %v4380_v7 }
  0xe5   : > { %4423 = vmatpush3.bf16.msra.mxu0 %v4420_v55 }
  0xe6   : > { %4383 = vmatpush3.bf16.msra.mxu1 %v4382_v11 }
  0xe7   : > { %4385 = vmatprep.subr.bf16.mxu1 %v4384_v12 }
  0xea   : > { %4387 = vmatpush3.bf16.msra.mxu1 %v4386_v18 }
  0xeb   : > { %4389 = vmatprep.subr.bf16.mxu1 %v4388_v52 }
  0xee   : > { %4391 = vmatpush3.bf16.msra.mxu1 %v4390_v20 }
 0x17b   : > { %v3488_v21 = vpop.f32.mrb[0].mxu0 }
 0x17c   : > { %v3489_v22 = vpop.f32.mrb[1].mxu0 }
 0x17d   : > { %v3490_v13 = vadd.f32 %v3489_v22, %v3488_v21  ;;  %v3955_v24 = vpop.f32.mrb[0].mxu1 }
 0x17e   : > { %v610_v25 = vpop.f32.mrb[1].mxu1 }
 0x17f   : > { %v3491_v26 = vpop.f32.mrb[2].mxu0  ;;  %v506_v27 = vadd.f32 %v3490_v13, %v5482_v23 }
 0x180   : > { %v3492_v28 = vpop.f32.mrb[3].mxu0 }
 0x181   : > { %v3493_v29 = vadd.f32 %v3492_v28, %v3491_v26  ;;  %v611_v30 = vadd.f32 %v610_v25, %v506_v27  ;;  %v3958_v31 = vpop.f32.mrb[2].mxu1 }
 0x182   : > { %v620_v32 = vpop.f32.mrb[3].mxu1 }
 0x183   : > { %v511_v33 = vadd.f32 %v3493_v29, %v5482_v23  ;;  %v657_v34 = vmul.f32 0.70710677, %v611_v30  ;;  %v3494_v35 = vpop.f32.mrb[4].mxu0  ;;  %v5500_v11 = vmul.f32 0.5, %v611_v30 }
 0x184   : > { %v3495_v36 = vpop.f32.mrb[5].mxu0 }
 0x185   : > { %v616_v37 = vadd.f32 %v3955_v24, %v511_v33  ;;  %v681_v38 = vand.u32 2147483647, %v657_v34  ;;  %v3496_v39 = vadd.f32 %v3495_v36, %v3494_v35  ;;  %v3961_v40 = vpop.f32.mrb[4].mxu1  ;;  %vm665_vm2 = vcmp.ge.f32.partialorder %v657_v34, 0.0 }
 0x186   : > { %v630_v41 = vpop.f32.mrb[5].mxu1  ;;  %v5505_v16 = vsel %vm665_vm2, 1.0, %v5111_v15 }
 0x187   : > { %v658_v42 = vmul.f32 0.70710677, %v616_v37  ;;  %v689_v43 = vmul.f32 0.3275911, %v681_v38  ;;  %v3497_v44 = vpop.f32.mrb[6].mxu0  ;;  %v516_v45 = vadd.f32 %v3496_v39, %v5482_v23  ;;  %v793_v58 = vsub.f32 0.0, %v681_v38 }
 0x188   : > { %v3498_v47 = vpop.f32.mrb[7].mxu0  ;;  %v5517_v29 = vmul.f32 0.5, %v616_v37 }
 0x189   : > { %v682_v49 = vand.u32 2147483647, %v658_v42  ;;  %v697_v50 = vadd.f32 1.0, %v689_v43  ;;  %v5487_v51 = vpop.f32.mrb[6].mxu1  ;;  %v3499_v54 = vadd.f32 %v3498_v47, %v3497_v44  ;;  %v621_v55 = vadd.f32 %v620_v32, %v516_v45 }
 0x18a   : > { %v5489_v56 = vpop.f32.mrb[7].mxu1  ;;  %v801_v3 = vmul.f32 %v793_v58, %v681_v38  ;;  %vm666_vm3 = vcmp.ge.f32.partialorder %v658_v42, 0.0 }
 0x18b   : > { %v690_v57 = vmul.f32 0.3275911, %v682_v49  ;;  %4755 = vrcp.f32 %v697_v50  ;;  %v3500_v59 = vpop.f32.mrb[8].mxu0  ;;  %v521_v60 = vadd.f32 %v3499_v54, %v5482_v23  ;;  %v659_v61 = vmul.f32 0.70710677, %v621_v55 }
 0x18c   : > { %v3501_v62 = vpop.f32.mrb[9].mxu0  ;;  %v794_v53 = vsub.f32 0.0, %v682_v49  ;;  %v809_v19 = vmul.f32 1.442695, %v801_v3  ;;  %v5521_v30 = vsel %vm666_vm3, 1.0, %v5111_v15  ;;  %v5523_v32 = vmul.f32 0.5, %v621_v55 }
 0x18d   : > { %v698_v63 = vadd.f32 1.0, %v690_v57  ;;  %v3502_v0 = vadd.f32 %v3501_v62, %v3500_v59  ;;  %v5492_v1 = vadd.f32 %v3958_v31, %v521_v60  ;;  %v683_v2 = vand.u32 2147483647, %v659_v61 }
 0x18e   : > { %v802_v17 = vmul.f32 %v794_v53, %v682_v49  ;;  %vm667_vm4 = vcmp.ge.f32.partialorder %v659_v61, 0.0 }
 0x18f   : > { %v3503_v4 = vpop.f32.mrb[10].mxu0  ;;  %v526_v5 = vadd.f32 %v3502_v0, %v5482_v23  ;;  %4757 = vrcp.f32 %v698_v63  ;;  %v5496_v6 = vmul.f32 0.70710677, %v5492_v1  ;;  %v691_v7 = vmul.f32 0.3275911, %v683_v2 }
 0x190   : > { %v3504_v8 = vpop.f32.mrb[11].mxu0  ;;  %v795_v13 = vsub.f32 0.0, %v683_v2  ;;  %v811_v39 = vmul.f32 1.442695, %v802_v17  ;;  %v5537_v50 = vsel %vm667_vm4, 1.0, %v5111_v15  ;;  %v5548_v61 = vmul.f32 0.5, %v5492_v1 }
 0x191   : > { %v3505_v9 = vadd.f32 %v3504_v8, %v3503_v4  ;;  %v5498_v10 = vadd.f32 %v630_v41, %v526_v5  ;;  %v684_v12 = vand.u32 2147483647, %v5496_v6  ;;  %v699_v14 = vadd.f32 1.0, %v691_v7 }
 0x192   : > { %v803_v37 = vmul.f32 %v795_v13, %v683_v2  ;;  %vm668_vm5 = vcmp.ge.f32.partialorder %v5496_v6, 0.0 }
 0x193   : > { %v531_v48 = vadd.f32 %v3505_v9, %v5482_v23  ;;  %v5509_v18 = vmul.f32 0.70710677, %v5498_v10  ;;  %v3506_v52 = vpop.f32.mrb[12].mxu0  ;;  %v692_v20 = vmul.f32 0.3275911, %v684_v12  ;;  %4759 = vrcp.f32 %v699_v14 }
 0x194   : > { %v3507_v21 = vpop.f32.mrb[13].mxu0  ;;  %v796_v31 = vsub.f32 0.0, %v684_v12  ;;  %4761 = vpow2.f32 %v809_v19  ;;  %v813_v3 = vmul.f32 1.442695, %v803_v37 }
 0x195   : > { %v5511_v22 = vpop.eup %4755  ;;  %v5513_v24 = vadd.f32 %v3961_v40, %v531_v48  ;;  %v685_v25 = vand.u32 2147483647, %v5509_v18  ;;  %v3508_v26 = vadd.f32 %v3507_v21, %v3506_v52  ;;  %v700_v28 = vadd.f32 1.0, %v692_v20 }
 0x196   : > { %v721_v27 = vmul.f32 1.0614054, %v5511_v22  ;;  %v804_v49 = vmul.f32 %v796_v31, %v684_v12  ;;  %v5566_v48 = vmul.f32 0.5, %v5498_v10  ;;  %vm669_vm6 = vcmp.ge.f32.partialorder %v5509_v18, 0.0 }
 0x197   : > { %v5526_v33 = vmul.f32 0.70710677, %v5513_v24  ;;  %v693_v34 = vmul.f32 0.3275911, %v685_v25  ;;  %v3509_v36 = vpop.f32.mrb[14].mxu0  ;;  %v536_v38 = vadd.f32 %v3508_v26, %v5482_v23  ;;  %4763 = vrcp.f32 %v700_v28 }
 0x198   : > { %v729_v35 = vadd.f32 -1.4531521, %v721_v27  ;;  %v3510_v42 = vpop.f32.mrb[15].mxu0  ;;  %v797_v62 = vsub.f32 0.0, %v685_v25  ;;  %v815_v5 = vmul.f32 1.442695, %v804_v49 }
 0x199   : > { %v686_v40 = vand.u32 2147483647, %v5526_v33  ;;  %v701_v41 = vadd.f32 1.0, %v693_v34  ;;  %v5530_v43 = vpop.eup %4757  ;;  %v3511_v45 = vadd.f32 %v3510_v42, %v3509_v36  ;;  %v5534_v47 = vadd.f32 %v5489_v56, %v536_v38 }
 0x19a   : > { %v737_v44 = vmul.f32 %v5511_v22, %v729_v35  ;;  %v722_v63 = vmul.f32 1.0614054, %v5530_v43  ;;  %v5577_v26 = vsel %vm668_vm5, 1.0, %v5111_v15  ;;  %vm670_vm8 = vcmp.ge.f32.partialorder %v5526_v33, 0.0 }
 0x19b   : > { %v694_v54 = vmul.f32 0.3275911, %v686_v40  ;;  %4765 = vrcp.f32 %v701_v41  ;;  %v5539_v55 = vpop.f32.mrb[16].mxu0  ;;  %v541_v58 = vadd.f32 %v3511_v45, %v5482_v23  ;;  %v5543_v59 = vmul.f32 0.70710677, %v5534_v47 }
 0x19c   : > { %v745_v57 = vadd.f32 1.4214138, %v737_v44  ;;  %v5545_v60 = vpop.f32.mrb[17].mxu0  ;;  %v798_v53 = vsub.f32 0.0, %v686_v40  ;;  %v730_v52 = vadd.f32 -1.4531521, %v722_v63 }
 0x19d   : > { %v702_v56 = vadd.f32 1.0, %v694_v54  ;;  %v5552_v0 = vpop.eup %4759  ;;  %v5556_v23 = vadd.f32 %v5487_v51, %v541_v58  ;;  %v687_v4 = vand.u32 2147483647, %v5543_v59  ;;  %v805_v51 = vmul.f32 %v797_v62, %v685_v25  ;;  %v5606_v63 = vld [vmem:[%s6637_s4] ss:$0 sm:$0xff] }
 0x19e   : > { %v753_v2 = vmul.f32 %v5511_v22, %v745_v57  ;;  %v723_v1 = vmul.f32 1.0614054, %v5552_v0  ;;  %v4762_v19 = vpop.eup %4761  ;;  %v806_v10 = vmul.f32 %v798_v53, %v686_v40  ;;  %v738_v25 = vmul.f32 %v5530_v43, %v730_v52 }
 0x19f   : > { %4767 = vrcp.f32 %v702_v56  ;;  %v5560_v7 = vpop.f32.mrb[18].mxu0  ;;  %v5563_v9 = vmul.f32 0.70710677, %v5556_v23  ;;  %v695_v12 = vmul.f32 0.3275911, %v687_v4  ;;  %v799_v44 = vsub.f32 0.0, %v687_v4 }
 0x1a0   : > { %4769 = vpow2.f32 %v811_v39  ;;  %v761_v8 = vadd.f32 -0.28449672, %v753_v2  ;;  %v731_v14 = vadd.f32 -1.4531521, %v723_v1  ;;  %v5568_v17 = vpop.f32.mrb[19].mxu0  ;;  %v5601_v62 = vsel %vm669_vm6, 1.0, %v5111_v15 }
 0x1a1   : > { %v5572_v21 = vand.u32 2147483647, %v5563_v9  ;;  %v703_v13 = vadd.f32 1.0, %v695_v12  ;;  %4771 = vpow2.f32 %v813_v3  ;;  %v5583_v31 = vpop.eup %4763  ;;  %v817_v39 = vmul.f32 1.442695, %v805_v51 }
 0x1a2   : > { %v769_v20 = vmul.f32 %v5511_v22, %v761_v8  ;;  %v739_v27 = vmul.f32 %v5552_v0, %v731_v14  ;;  %v746_v37 = vadd.f32 1.4214138, %v738_v25  ;;  %v819_v49 = vmul.f32 1.442695, %v806_v10 }
 0x1a3   : > { %v5581_v28 = vpop.f32.mrb[20].mxu0  ;;  %v696_v35 = vmul.f32 0.3275911, %v5572_v21  ;;  %4773 = vrcp.f32 %v703_v13  ;;  %v724_v57 = vmul.f32 1.0614054, %v5583_v31  ;;  %v807_v14 = vmul.f32 %v799_v44, %v687_v4 }
 0x1a4   : > { %v777_v34 = vadd.f32 0.2548296, %v769_v20  ;;  %v5587_v36 = vpop.f32.mrb[21].mxu0  ;;  %4775 = vpow2.f32 %v815_v5  ;;  %v747_v38 = vadd.f32 1.4214138, %v739_v27  ;;  %v754_v54 = vmul.f32 %v5530_v43, %v746_v37 }
 0x1a5   : > { %v5589_v6 = vpop.eup %4765  ;;  %v704_v42 = vadd.f32 1.0, %v696_v35  ;;  %v732_v53 = vadd.f32 -1.4531521, %v724_v57  ;;  %v5615_v51 = vadd.f32 %v5539_v55, %v5606_v63  ;;  %v800_v10 = vsub.f32 0.0, %v5572_v21 }
 0x1a6   : > { %v785_v40 = vmul.f32 %v5511_v22, %v777_v34  ;;  %v725_v41 = vmul.f32 1.0614054, %v5589_v6  ;;  %v755_v45 = vmul.f32 %v5552_v0, %v747_v38  ;;  %v762_v1 = vadd.f32 -0.28449672, %v754_v54 }
 0x1a7   : > { %v5596_v58 = vpop.f32.mrb[22].mxu0  ;;  %4777 = vrcp.f32 %v704_v42  ;;  %v740_v20 = vmul.f32 %v5583_v31, %v732_v53  ;;  %v955_v55 = vadd.f32 %v5606_v63, %v5545_v60  ;;  %v808_v60 = vmul.f32 %v800_v10, %v5572_v21 }
 0x1a8   : > { %v825_v56 = vmul.f32 %v4762_v19, %v785_v40  ;;  %v733_v22 = vadd.f32 -1.4531521, %v725_v41  ;;  %v5608_v2 = vpop.f32.mrb[23].mxu0  ;;  %v763_v5 = vadd.f32 -0.28449672, %v755_v45  ;;  %4779 = vpow2.f32 %v817_v39 }
 0x1a9   : > { %v5610_v3 = vpop.eup %4767  ;;  %4781 = vpow2.f32 %v819_v49  ;;  %v770_v19 = vmul.f32 %v5530_v43, %v762_v1  ;;  %v748_v38 = vadd.f32 1.4214138, %v740_v20  ;;  %v821_v40 = vmul.f32 1.442695, %v807_v14 }
 0x1aa   : > { %v4770_v8 = vpop.eup %4769  ;;  %v833_v12 = vsub.f32 1.0, %v825_v56  ;;  %v741_v18 = vmul.f32 %v5589_v6, %v733_v22  ;;  %v771_v52 = vmul.f32 %v5552_v0, %v763_v5  ;;  %v726_v25 = vmul.f32 1.0614054, %v5610_v3 }
 0x1ab   : > { %v4772_v34 = vpop.eup %4771  ;;  %v778_v35 = vadd.f32 0.2548296, %v770_v19  ;;  %v756_v54 = vmul.f32 %v5583_v31, %v748_v38  ;;  %4783 = vpow2.f32 %v821_v40  ;;  %vm671_vm9 = vcmp.ge.f32.partialorder %v5543_v59, 0.0 }
 0x1ac   : > { %v841_v13 = vmul.f32 %v833_v12, %v5505_v16  ;;  %v749_v27 = vadd.f32 1.4214138, %v741_v18  ;;  %v779_v4 = vadd.f32 0.2548296, %v771_v52  ;;  %v734_v42 = vadd.f32 -1.4531521, %v726_v25 }
 0x1ad   : > { %v5625_v39 = vpop.eup %4773  ;;  %v786_v49 = vmul.f32 %v5530_v43, %v778_v35  ;;  %v764_v12 = vadd.f32 -0.28449672, %v756_v54  ;;  %v679_v59 = vsel %vm671_vm9, 1.0, %v5111_v15  ;;  %vm672_vm10 = vcmp.ge.f32.partialorder %v5563_v9, 0.0 }
 0x1ae   : > { %v757_v37 = vmul.f32 %v5589_v6, %v749_v27  ;;  %v849_v41 = vadd.f32 1.0, %v841_v13  ;;  %v4776_v16 = vpop.eup %4775  ;;  %v787_v44 = vmul.f32 %v5552_v0, %v779_v4  ;;  %v727_v45 = vmul.f32 1.0614054, %v5625_v39 }
 0x1af   : > { %v742_v22 = vmul.f32 %v5610_v3, %v734_v42  ;;  %v826_v53 = vmul.f32 %v4770_v8, %v786_v49  ;;  %v823_v27 = vmul.f32 1.442695, %v808_v60  ;;  %v680_v9 = vsel %vm672_vm10, 1.0, %v5111_v15 }
 0x1b0   : > { %v765_v57 = vadd.f32 -0.28449672, %v757_v37  ;;  %v857_v56 = vmul.f32 %v849_v41, %v5500_v11  ;;  %v827_v5 = vmul.f32 %v4772_v34, %v787_v44  ;;  %v735_v1 = vadd.f32 -1.4531521, %v727_v45 }
 0x1b1   : > { %v5635_v18 = vpop.eup %4777  ;;  %v750_v43 = vadd.f32 1.4214138, %v742_v22  ;;  %v834_v20 = vsub.f32 1.0, %v826_v53  ;;  %v772_v11 = vmul.f32 %v5583_v31, %v764_v12  ;;  %v965_v37 = vadd.f32 %v5606_v63, %v5568_v17 }
 0x1b2   : > { %v773_v0 = vmul.f32 %v5589_v6, %v765_v57  ;;  %v5638_v14 = vadd.f32 %v955_v55, %v857_v56  ;;  %v4780_v52 = vpop.eup %4779  ;;  %v835_v19 = vsub.f32 1.0, %v827_v5  ;;  %v743_v21 = vmul.f32 %v5625_v39, %v735_v1 }
 0x1b3   : > { %v758_v8 = vmul.f32 %v5610_v3, %v750_v43  ;;  %v728_v10 = vmul.f32 1.0614054, %v5635_v18  ;;  %v4782_v25 = vpop.eup %4781  ;;  %v842_v35 = vmul.f32 %v834_v20, %v5521_v30  ;;  %v780_v55 = vadd.f32 0.2548296, %v772_v11 }
 0x1b4   : > { %v781_v13 = vadd.f32 0.2548296, %v773_v0  ;;  %1139 = vmatprep.mubr.f32.mxu1 %v5638_v14  ;;  %v843_v34 = vmul.f32 %v835_v19, %v5537_v50  ;;  %v751_v4 = vadd.f32 1.4214138, %v743_v21  ;;  %v970_v30 = vadd.f32 %v5560_v7, %v5606_v63 }
 0x1b5   : > { %v766_v40 = vadd.f32 -0.28449672, %v758_v8  ;;  %v736_v41 = vadd.f32 -1.4531521, %v728_v10  ;;  %v850_v44 = vadd.f32 1.0, %v842_v35  ;;  %v788_v45 = vmul.f32 %v5583_v31, %v780_v55  ;;  %v4784_v0 = vpop.eup %4783 }
 0x1b6   : > { %v789_v38 = vmul.f32 %v5589_v6, %v781_v13  ;;  %v759_v42 = vmul.f32 %v5625_v39, %v751_v4  ;;  %v851_v49 = vadd.f32 1.0, %v843_v34  ;;  %4785 = vpow2.f32 %v823_v27 }
 0x1b7   : > { %v774_v54 = vmul.f32 %v5610_v3, %v766_v40  ;;  %v744_v57 = vmul.f32 %v5635_v18, %v736_v41  ;;  %v858_v60 = vmul.f32 %v850_v44, %v5517_v29  ;;  %v828_v17 = vmul.f32 %v4776_v16, %v788_v45 }
 0x1b8   : > { %v829_v50 = vmul.f32 %v4780_v52, %v789_v38  ;;  %v767_v6 = vadd.f32 -0.28449672, %v759_v42  ;;  %v859_v56 = vmul.f32 %v851_v49, %v5523_v32  ;;  %v1001_v29 = vrot.slane %v5638_v14, 4 }
 0x1b9   : > { %v782_v5 = vadd.f32 0.2548296, %v774_v54  ;;  %v752_v1 = vadd.f32 1.4214138, %v744_v57  ;;  %v5662_v53 = vadd.f32 %v5615_v51, %v858_v60  ;;  %v836_v7 = vsub.f32 1.0, %v828_v17 }
 0x1ba   : > { %v837_v22 = vsub.f32 1.0, %v829_v50  ;;  %v775_v31 = vmul.f32 %v5625_v39, %v767_v6  ;;  %v5664_v12 = vadd.f32 %v965_v37, %v859_v56  ;;  %v975_v13 = vadd.f32 %v5606_v63, %v5587_v36 }
 0x1bb   : > { %v790_v16 = vmul.f32 %v5610_v3, %v782_v5  ;;  %v760_v32 = vmul.f32 %v5635_v18, %v752_v1  ;;  %v844_v19 = vmul.f32 %v836_v7, %v5577_v26  ;;  %v1002_v51 = vrot.slane %v5662_v53, 4 }
 0x1bc   : > { %v845_v43 = vmul.f32 %v837_v22, %v5601_v62  ;;  %v783_v52 = vadd.f32 0.2548296, %v775_v31  ;;  %v1003_v21 = vrot.slane %v5664_v12, 4  ;;  %v678_v4 = vsel %vm670_vm8, 1.0, %v5111_v15 }
 0x1bd   : > { %v830_v20 = vmul.f32 %v4782_v25, %v790_v16  ;;  %v768_v27 = vadd.f32 -0.28449672, %v760_v32  ;;  %v852_v8 = vadd.f32 1.0, %v844_v19  ;;  %v1016_v3 = vsel %vm1009_vm7, %v1001_v29, %v1002_v51  ;;  %v1550_v19 = vld [vmem:[#allocation5 + $0x308] sm:$0xff] }
 0x1be   : > { %v853_v11 = vadd.f32 1.0, %v845_v43  ;;  %v791_v62 = vmul.f32 %v5625_v39, %v783_v52  ;;  %v1015_v26 = vsel %vm1009_vm7, %v1002_v51, %v1003_v21  ;;  %4041 = vmatprep.mubr.f32.mxu0 %v1016_v3  ;;  %v655_v50 = vmul.f32 0.5, %v5534_v47  ;;  %v1549_v52 = vld [vmem:[#allocation5 + $0x300] sm:$0xff]  ;;  %v1567_v51 = vld [vmem:[#allocation5 + $0x390] sm:$0xff] }
 0x1bf   : > { %v838_v10 = vsub.f32 1.0, %v830_v20  ;;  %v776_v36 = vmul.f32 %v5635_v18, %v768_v27  ;;  %v860_v39 = vmul.f32 %v852_v8, %v5548_v61  ;;  %4042 = vmatmul.mubr.f32.vlgmr.msra.gmra.mrb[24].mxu0 %v1015_v26  ;;  %v980_v61 = vadd.f32 %v5581_v28, %v5606_v63  ;;  %v1568_v20 = vld [vmem:[#allocation5 + $0x398] sm:$0xff]  ;;  %v1581_v8 = vld [vmem:[#allocation5 + $0x400] sm:$0xff] }
 0x1c0   : > { %v861_v25 = vmul.f32 %v853_v11, %v5566_v48  ;;  %v831_v34 = vmul.f32 %v4784_v0, %v791_v62  ;;  %v654_v48 = vmul.f32 0.5, %v5513_v24  ;;  %v4786_v41 = vpop.eup %4785  ;;  %v985_v28 = vadd.f32 %v5606_v63, %v5608_v2  ;;  %v1552_v27 = vld [vmem:[#allocation5 + $0x318] sm:$0xff] }
 0x1c1   : > { %v846_v35 = vmul.f32 %v838_v10, %v678_v4  ;;  %v784_v38 = vadd.f32 0.2548296, %v776_v36  ;;  %v5692_v40 = vadd.f32 %v970_v30, %v860_v39  ;;  %v656_v5 = vmul.f32 0.5, %v5556_v23  ;;  %v1569_v10 = vld [vmem:[#allocation5 + $0x3a0] sm:$0xff]  ;;  %v1554_v39 = vld [vmem:[#allocation5 + $0x328] sm:$0xff] }
 0x1c2   : > { %v5689_v55 = vadd.f32 %v975_v13, %v861_v25  ;;  %v839_v37 = vsub.f32 1.0, %v831_v34  ;;  %v990_v2 = vadd.f32 %v5596_v58, %v5606_v63  ;;  %v1566_v63 = vld [vmem:[#allocation5 + $0x388] sm:$0xff]  ;;  %v4428_v11 = vpack.c.bf16 %v1568_v20, %v1567_v51  ;;  %v1551_v13 = vld [vmem:[#allocation5 + $0x310] sm:$0xff]  ;;  %v1553_v34 = vld [vmem:[#allocation5 + $0x320] sm:$0xff] }
 0x1c3   : > { %v854_v42 = vadd.f32 1.0, %v846_v35  ;;  %v792_v33 = vmul.f32 %v5635_v18, %v784_v38  ;;  %v1004_v49 = vrot.slane %v5692_v40, 4  ;;  %v4430_v62 = vpack.c.bf16 %v1552_v27, %v1551_v13  ;;  %v1570_v25 = vld [vmem:[#allocation5 + $0x3a8] sm:$0xff]  ;;  %v1583_v35 = vld [vmem:[#allocation5 + $0x410] sm:$0xff]  ;;  %v1584_v38 = vld [vmem:[#allocation5 + $0x418] sm:$0xff] }
 0x1c4   : > { %v1005_v44 = vrot.slane %v5689_v55, 4  ;;  %v847_v45 = vmul.f32 %v839_v37, %v679_v59  ;;  %v4432_v36 = vpack.c.bf16 %v1570_v25, %v1569_v10  ;;  %v4434_v4 = vpack.c.bf16 %v1554_v39, %v1553_v34  ;;  %v1571_v37 = vld [vmem:[#allocation5 + $0x3b0] sm:$0xff]  ;;  %v1580_v51 = vld [vmem:[#allocation5 + $0x3f8] sm:$0xff] }
 0x1c5   : > { %v862_v30 = vmul.f32 %v854_v42, %v654_v48  ;;  %v832_v54 = vmul.f32 %v4786_v41, %v792_v33  ;;  %v1014_v24 = vsel %vm1009_vm7, %v1003_v21, %v1004_v49  ;;  %v4426_v21 = vpack.c.bf16 %v1550_v19, %v1549_v52  ;;  %v1572_v48 = vld [vmem:[#allocation5 + $0x3b8] sm:$0xff]  ;;  %v1555_v42 = vld [vmem:[#allocation5 + $0x330] sm:$0xff] }
 0x1c6   : > { %v855_v57 = vadd.f32 1.0, %v847_v45  ;;  %v1013_v18 = vsel %vm1009_vm7, %v1004_v49, %v1005_v44  ;;  %4044 = vmatprep.mubr.f32.mxu0 %v1014_v24  ;;  %v4460_v59 = vpack.c.bf16 %v1584_v38, %v1583_v35  ;;  %v4436_v41 = vpack.c.bf16 %v1572_v48, %v1571_v37  ;;  %v1586_v45 = vld [vmem:[#allocation5 + $0x428] sm:$0xff]  ;;  %v1592_v52 = vld [vmem:[#allocation5 + $0x458] sm:$0xff]  ;;  %v5743_v37 = vld [vmem:[%s6635_s2 + $0x1] ss:$0 sm:$0xff] }
 0x1c7   : > { %v5708_v6 = vadd.f32 %v980_v61, %v862_v30  ;;  %v840_v60 = vsub.f32 1.0, %v832_v54  ;;  %4045 = vmatmul.mubr.f32.gmra.mrb[26].mxu0 %v1013_v18  ;;  %v1556_v61 = vld [vmem:[#allocation5 + $0x338] sm:$0xff]  ;;  %v1574_v30 = vld [vmem:[#allocation5 + $0x3c8] sm:$0xff] }
 0x1c8   : > { %v863_v17 = vmul.f32 %v855_v57, %v655_v50  ;;  %v4438_v33 = vpack.c.bf16 %v1556_v61, %v1555_v42  ;;  %v1573_v50 = vld [vmem:[#allocation5 + $0x3c0] sm:$0xff]  ;;  %v1558_v57 = vld [vmem:[#allocation5 + $0x348] sm:$0xff]  ;;  %v1564_v13 = vld [vmem:[#allocation5 + $0x378] sm:$0xff] }
 0x1c9   : > { %v848_v47 = vmul.f32 %v840_v60, %v680_v9  ;;  %v1006_v56 = vrot.slane %v5708_v6, 4  ;;  %v4440_v54 = vpack.c.bf16 %v1574_v30, %v1573_v50  ;;  %v1588_v60 = vld [vmem:[#allocation5 + $0x438] sm:$0xff] }
 0x1ca   : > { %v5712_v22 = vadd.f32 %v985_v28, %v863_v17  ;;  %v1575_v17 = vld [vmem:[#allocation5 + $0x3d0] sm:$0xff]  ;;  %v1596_v10 = vld [vmem:[#allocation5 + $0x478] sm:$0xff] }
 0x1cb   : > { %v856_v1 = vadd.f32 1.0, %v848_v47  ;;  %v1012_v31 = vsel %vm1009_vm7, %v1005_v44, %v1006_v56  ;;  %v1585_v44 = vld [vmem:[#allocation5 + $0x420] sm:$0xff]  ;;  %v1576_v47 = vld [vmem:[#allocation5 + $0x3d8] sm:$0xff] }
 0x1cc   : > { %4047 = vmatprep.mubr.f32.mxu0 %v1012_v31  ;;  %v1007_v7 = vrot.slane %v5712_v22, 4  ;;  %v4464_v49 = vpack.c.bf16 %v1586_v45, %v1585_v44 }
 0x1cd   : > { %v864_v0 = vmul.f32 %v856_v1, %v656_v5  ;;  %v1559_v5 = vld [vmem:[#allocation5 + $0x350] sm:$0xff]  ;;  %v1560_v1 = vld [vmem:[#allocation5 + $0x358] sm:$0xff] }
 0x1ce   : > { %v1011_v43 = vsel %vm1009_vm7, %v1006_v56, %v1007_v7  ;;  %v4444_v56 = vpack.c.bf16 %v1576_v47, %v1575_v17 }
 0x1cf   : > { %v5722_v16 = vadd.f32 %v990_v2, %v864_v0  ;;  %4048 = vmatmul.mubr.f32.gmra.mrb[28].mxu0 %v1011_v43  ;;  %v4446_v2 = vpack.c.bf16 %v1560_v1, %v1559_v5 }
 0x1d1   : > { %v1008_v32 = vrot.slane %v5722_v16, 4 }
 0x1d3   : > { %v1017_v23 = vsel %vm1009_vm7, %v1008_v32, %v1001_v29  ;;  %v1010_v58 = vsel %vm1009_vm7, %v1007_v7, %v1008_v32  ;;  %v4424_v29 = vpack.c.bf16 %v1566_v63, %v1565_v46  ;;  %v1590_v7 = vld [vmem:[#allocation5 + $0x448] sm:$0xff] }
 0x1d4   : > { %1140 = vmatmul.mubr.f32.vlgmr.msra.gmra.mrb[8].mxu1 %v1017_v23  ;;  %4050 = vmatprep.mubr.f32.mxu0 %v1010_v58  ;;  %v1578_v32 = vld [vmem:[#allocation5 + $0x3e8] sm:$0xff] }
 0x1d5   : > { %1144 = vmatprep.mubr.f32.mxu1 %v5662_v53  ;;  %4051 = vmatmul.mubr.f32.gmra.mrb[30].mxu0 %v1017_v23  ;;  %v1562_v46 = vld [vmem:[#allocation5 + $0x368] sm:$0xff] }
 0x1d6   : > { %4425 = vmatprep.subr.bf16.mxu1 %v4424_v29  ;;  %v1591_v29 = vld [vmem:[#allocation5 + $0x450] sm:$0xff] }
 0x1d7   : > { %4427 = vmatpush3.bf16.msra.mxu1 %v4426_v21  ;;  %v4476_v19 = vpack.c.bf16 %v1592_v52, %v1591_v29  ;;  %v1579_v21 = vld [vmem:[#allocation5 + $0x3f0] sm:$0xff] }
 0x1d8   : > { %1145 = vmatmul.mubr.f32.gmra.mrb[10].mxu1 %v1016_v3  ;;  %4429 = vmatprep.subr.bf16.mxu1 %v4428_v11  ;;  %v1582_v3 = vld [vmem:[#allocation5 + $0x408] sm:$0xff]  ;;  %v4452_v20 = vpack.c.bf16 %v1580_v51, %v1579_v21  ;;  %v1563_v11 = vld [vmem:[#allocation5 + $0x370] sm:$0xff] }
 0x1d9   : > { %1149 = vmatprep.mubr.f32.mxu1 %v5664_v12  ;;  %v4454_v27 = vpack.c.bf16 %v1564_v13, %v1563_v11 }
 0x1db   : > { %4431 = vmatpush3.bf16.msra.mxu1 %v4430_v62  ;;  %v1593_v62 = vld [vmem:[#allocation5 + $0x460] sm:$0xff] }
 0x1dc   : > { %1150 = vmatmul.mubr.f32.gmra.mrb[12].mxu1 %v1015_v26  ;;  %v4456_v26 = vpack.c.bf16 %v1582_v3, %v1581_v8  ;;  %4433 = vmatprep.subr.bf16.mxu1 %v4432_v36  ;;  %v1594_v8 = vld [vmem:[#allocation5 + $0x468] sm:$0xff] }
 0x1dd   : > { %1154 = vmatprep.mubr.f32.mxu1 %v5692_v40  ;;  %v4480_v3 = vpack.c.bf16 %v1594_v8, %v1593_v62 }
 0x1de   : > { %4457 = vmatprep.subr.bf16.mxu0 %v4456_v26 }
 0x1df   : > { %4459 = vmatpush3.bf16.msra.mxu0 %v4456_v26  ;;  %4435 = vmatpush3.bf16.msra.mxu1 %v4434_v4  ;;  %v1595_v26 = vld [vmem:[#allocation5 + $0x470] sm:$0xff] }
 0x1e0   : > { %1155 = vmatmul.mubr.f32.gmra.mrb[14].mxu1 %v1014_v24  ;;  %4461 = vmatprep.subr.bf16.mxu0 %v4460_v59  ;;  %v1557_v24 = vld [vmem:[#allocation5 + $0x340] sm:$0xff]  ;;  %v4484_v25 = vpack.c.bf16 %v1596_v10, %v1595_v26 }
 0x1e1   : > { %1159 = vmatprep.mubr.f32.mxu1 %v5689_v55  ;;  %4437 = vmatprep.subr.bf16.mxu1 %v4436_v41  ;;  %v4442_v28 = vpack.c.bf16 %v1558_v57, %v1557_v24 }
 0x1e3   : > { %4463 = vmatpush3.bf16.msra.mxu0 %v4460_v59  ;;  %4439 = vmatpush3.bf16.msra.mxu1 %v4438_v33 }
 0x1e4   : > { %1160 = vmatmul.mubr.f32.gmra.mrb[16].mxu1 %v1013_v18  ;;  %4465 = vmatprep.subr.bf16.mxu0 %v4464_v49  ;;  %v1587_v18 = vld [vmem:[#allocation5 + $0x430] sm:$0xff] }
 0x1e5   : > { %1164 = vmatprep.mubr.f32.mxu1 %v5708_v6  ;;  %4441 = vmatprep.subr.bf16.mxu1 %v4440_v54  ;;  %v4468_v9 = vpack.c.bf16 %v1588_v60, %v1587_v18 }
 0x1e7   : > { %4467 = vmatpush3.bf16.msra.mxu0 %v4464_v49  ;;  %4443 = vmatpush3.bf16.msra.mxu1 %v4442_v28 }
 0x1e8   : > { %1165 = vmatmul.mubr.f32.gmra.mrb[18].mxu1 %v1012_v31  ;;  %4469 = vmatprep.subr.bf16.mxu0 %v4468_v9  ;;  %v1589_v31 = vld [vmem:[#allocation5 + $0x440] sm:$0xff] }
 0x1e9   : > { %1169 = vmatprep.mubr.f32.mxu1 %v5712_v22  ;;  %4445 = vmatprep.subr.bf16.mxu1 %v4444_v56  ;;  %v4472_v0 = vpack.c.bf16 %v1590_v7, %v1589_v31 }
 0x1eb   : > { %4471 = vmatpush3.bf16.msra.mxu0 %v4468_v9  ;;  %4447 = vmatpush3.bf16.msra.mxu1 %v4446_v2 }
 0x1ec   : > { %1170 = vmatmul.mubr.f32.gmra.mrb[20].mxu1 %v1011_v43  ;;  %v1577_v43 = vld [vmem:[#allocation5 + $0x3e0] sm:$0xff]  ;;  %4473 = vmatprep.subr.bf16.mxu0 %v4472_v0 }
 0x1ed   : > { %1174 = vmatprep.mubr.f32.mxu1 %v5722_v16  ;;  %v4448_v23 = vpack.c.bf16 %v1578_v32, %v1577_v43 }
 0x1ef   : > { %4449 = vmatprep.subr.bf16.mxu1 %v4448_v23  ;;  %4475 = vmatpush3.bf16.msra.mxu0 %v4472_v0 }
 0x1f0   : > { %1175 = vmatmul.mubr.f32.gmra.mrb[22].mxu1 %v1010_v58  ;;  %v1561_v58 = vld [vmem:[#allocation5 + $0x360] sm:$0xff]  ;;  %4477 = vmatprep.subr.bf16.mxu0 %v4476_v19 }
 0x1f1   : > { %v4450_v63 = vpack.c.bf16 %v1562_v46, %v1561_v58 }
 0x1f3   : > { %4451 = vmatpush3.bf16.msra.mxu1 %v4450_v63  ;;  %4479 = vmatpush3.bf16.msra.mxu0 %v4476_v19 }
 0x1f4   : > { %4453 = vmatprep.subr.bf16.mxu1 %v4452_v20  ;;  %4481 = vmatprep.subr.bf16.mxu0 %v4480_v3 }
 0x1f7   : > { %4455 = vmatpush3.bf16.msra.mxu1 %v4454_v27  ;;  %4483 = vmatpush3.bf16.msra.mxu0 %v4480_v3 }
 0x1f8   : > { %4485 = vmatprep.subr.bf16.mxu0 %v4484_v25 }
 0x1fb   : > { %4487 = vmatpush3.bf16.msra.mxu0 %v4484_v25 }
 0x292   : > { %v4043_v36 = vpop.f32.mrb[24].mxu0 }
 0x293   : > { %v1246_v34 = vpop.f32.mrb[25].mxu0 }
 0x29a   : > { %v4046_v39 = vpop.f32.mrb[26].mxu0 }
 0x29b   : > { %v1256_v4 = vpop.f32.mrb[27].mxu0 }
 0x2a2   : > { %v5738_v35 = vpop.f32.mrb[28].mxu0 }
 0x2a3   : > { %v1266_v38 = vpop.f32.mrb[29].mxu0 }
 0x2a7   : > { %v3592_v59 = vpop.f32.mrb[8].mxu1 }
 0x2a8   : > { %v3593_v48 = vpop.f32.mrb[9].mxu1  ;;  %v5745_v41 = vpop.f32.mrb[30].mxu0 }
 0x2a9   : > { %v3594_v42 = vadd.f32 %v3593_v48, %v3592_v59  ;;  %v5747_v61 = vpop.f32.mrb[31].mxu0 }
 0x2ab   : > { %v1142_v33 = vadd.f32 %v3594_v42, %v5743_v37  ;;  %v3595_v44 = vpop.f32.mrb[10].mxu1 }
 0x2ac   : > { %v3596_v45 = vpop.f32.mrb[11].mxu1 }
 0x2ad   : > { %v1247_v49 = vadd.f32 %v1246_v34, %v1142_v33  ;;  %v3597_v50 = vadd.f32 %v3596_v45, %v3595_v44 }
 0x2af   : > { %v1293_v30 = vmul.f32 0.70710677, %v1247_v49  ;;  %v1147_v54 = vadd.f32 %v3597_v50, %v5743_v37  ;;  %v3598_v24 = vpop.f32.mrb[12].mxu1  ;;  %v5776_v48 = vmul.f32 0.5, %v1247_v49 }
 0x2b0   : > { %v3599_v57 = vpop.f32.mrb[13].mxu1 }
 0x2b1   : > { %v1317_v28 = vand.u32 2147483647, %v1293_v30  ;;  %v1252_v18 = vadd.f32 %v4043_v36, %v1147_v54  ;;  %v3600_v60 = vadd.f32 %v3599_v57, %v3598_v24  ;;  %vm1301_vm11 = vcmp.ge.f32.partialorder %v1293_v30, 0.0 }
 0x2b2   : > { %v5789_v49 = vsel %vm1301_vm11, 1.0, %v5111_v15 }
 0x2b3   : > { %v1325_v9 = vmul.f32 0.3275911, %v1317_v28  ;;  %v5751_v17 = vmul.f32 0.70710677, %v1252_v18  ;;  %v1152_v47 = vadd.f32 %v3600_v60, %v5743_v37  ;;  %v3601_v56 = vpop.f32.mrb[14].mxu1  ;;  %v1429_v11 = vsub.f32 0.0, %v1317_v28 }
 0x2b4   : > { %v3602_v2 = vpop.f32.mrb[15].mxu1 }
 0x2b5   : > { %v1333_v5 = vadd.f32 1.0, %v1325_v9  ;;  %v1318_v1 = vand.u32 2147483647, %v5751_v17  ;;  %v5755_v31 = vadd.f32 %v1256_v4, %v1152_v47  ;;  %v3603_v7 = vadd.f32 %v3602_v2, %v3601_v56 }
 0x2b6   : > { %vm1302_vm12 = vcmp.ge.f32.partialorder %v5751_v17, 0.0 }
 0x2b7   : > { %v1326_v0 = vmul.f32 0.3275911, %v1318_v1  ;;  %v3604_v43 = vpop.f32.mrb[16].mxu1  ;;  %v5758_v32 = vmul.f32 0.70710677, %v5755_v31  ;;  %v1157_v23 = vadd.f32 %v3603_v7, %v5743_v37  ;;  %4787 = vrcp.f32 %v1333_v5 }
 0x2b8   : > { %v3605_v58 = vpop.f32.mrb[17].mxu1  ;;  %v1430_v62 = vsub.f32 0.0, %v1318_v1 }
 0x2b9   : > { %v1334_v46 = vadd.f32 1.0, %v1326_v0  ;;  %v3606_v63 = vadd.f32 %v3605_v58, %v3604_v43  ;;  %v1319_v29 = vand.u32 2147483647, %v5758_v32  ;;  %v5762_v52 = vadd.f32 %v4046_v39, %v1157_v23 }
 0x2ba   : > { %v1437_v39 = vmul.f32 %v1429_v11, %v1317_v28  ;;  %v1438_v42 = vmul.f32 %v1430_v62, %v1318_v1  ;;  %v5784_v28 = vmul.f32 0.5, %v1252_v18  ;;  %vm1303_vm13 = vcmp.ge.f32.partialorder %v5758_v32, 0.0 }
 0x2bb   : > { %4789 = vrcp.f32 %v1334_v46  ;;  %v1162_v19 = vadd.f32 %v3606_v63, %v5743_v37  ;;  %v3607_v21 = vpop.f32.mrb[18].mxu1  ;;  %v1327_v51 = vmul.f32 0.3275911, %v1319_v29  ;;  %v5766_v20 = vmul.f32 0.70710677, %v5762_v52 }
 0x2bc   : > { %v3608_v27 = vpop.f32.mrb[19].mxu1  ;;  %v1431_v45 = vsub.f32 0.0, %v1319_v29  ;;  %v5793_v47 = vmul.f32 1.442695, %v1437_v39  ;;  %v1447_v2 = vmul.f32 1.442695, %v1438_v42 }
 0x2bd   : > { %v5768_v13 = vadd.f32 %v1266_v38, %v1162_v19  ;;  %v1335_v8 = vadd.f32 1.0, %v1327_v51  ;;  %v1320_v3 = vand.u32 2147483647, %v5766_v20  ;;  %v3609_v10 = vadd.f32 %v3608_v27, %v3607_v21 }
 0x2be   : > { %v1439_v7 = vmul.f32 %v1431_v45, %v1319_v29  ;;  %v5808_v43 = vsel %vm1302_vm12, 1.0, %v5111_v15  ;;  %v5819_v63 = vsel %vm1303_vm13, 1.0, %v5111_v15  ;;  %v5835_v42 = vmul.f32 0.5, %v5762_v52 }
 0x2bf   : > { %v5772_v26 = vmul.f32 0.70710677, %v5768_v13  ;;  %v3610_v25 = vpop.f32.mrb[20].mxu1  ;;  %4791 = vrcp.f32 %v1335_v8  ;;  %v1328_v36 = vmul.f32 0.3275911, %v1320_v3  ;;  %v1167_v38 = vadd.f32 %v3609_v10, %v5743_v37 }
 0x2c0   : > { %v3611_v34 = vpop.f32.mrb[21].mxu1  ;;  %v1432_v58 = vsub.f32 0.0, %v1320_v3  ;;  %v1449_v62 = vmul.f32 1.442695, %v1439_v7  ;;  %vm1304_vm14 = vcmp.ge.f32.partialorder %v5766_v20, 0.0 }
 0x2c1   : > { %v1321_v4 = vand.u32 2147483647, %v5772_v26  ;;  %v3612_v59 = vadd.f32 %v3611_v34, %v3610_v25  ;;  %v1336_v33 = vadd.f32 1.0, %v1328_v36  ;;  %v5778_v44 = vpop.eup %4787  ;;  %v5781_v54 = vadd.f32 %v5738_v35, %v1167_v38 }
 0x2c2   : > { %v1357_v30 = vmul.f32 1.0614054, %v5778_v44  ;;  %v1440_v32 = vmul.f32 %v1432_v58, %v1320_v3  ;;  %vm1305_vm15 = vcmp.ge.f32.partialorder %v5772_v26, 0.0 }
 0x2c3   : > { %v1329_v50 = vmul.f32 0.3275911, %v1321_v4  ;;  %v1172_v24 = vadd.f32 %v3612_v59, %v5743_v37  ;;  %v3613_v57 = vpop.f32.mrb[22].mxu1  ;;  %4793 = vrcp.f32 %v1336_v33  ;;  %v5797_v56 = vmul.f32 0.70710677, %v5781_v54 }
 0x2c4   : > { %v3614_v60 = vpop.f32.mrb[23].mxu1  ;;  %v1433_v51 = vsub.f32 0.0, %v1321_v4  ;;  %v1365_v27 = vadd.f32 -1.4531521, %v1357_v30 }
 0x2c5   : > { %v5791_v9 = vpop.eup %4789  ;;  %v1337_v35 = vadd.f32 1.0, %v1329_v50  ;;  %v5801_v5 = vadd.f32 %v5747_v61, %v1172_v24  ;;  %v3615_v1 = vadd.f32 %v3614_v60, %v3613_v57  ;;  %v1322_v0 = vand.u32 2147483647, %v5797_v56 }
 0x2c6   : > { %v1358_v18 = vmul.f32 1.0614054, %v5791_v9  ;;  %v5814_v61 = vmul.f32 0.5, %v5755_v31  ;;  %v1373_v39 = vmul.f32 %v5778_v44, %v1365_v27  ;;  %v1441_v33 = vmul.f32 %v1433_v51, %v1321_v4 }
 0x2c7   : > { %4795 = vrcp.f32 %v1337_v35  ;;  %v5811_v46 = vmul.f32 0.70710677, %v5801_v5  ;;  %v1330_v29 = vmul.f32 0.3275911, %v1322_v0  ;;  %v1177_v19 = vadd.f32 %v3615_v1, %v5743_v37 }
 0x2c8   : > { %v1366_v23 = vadd.f32 -1.4531521, %v1358_v18  ;;  %4797 = vpow2.f32 %v1447_v2  ;;  %v1434_v34 = vsub.f32 0.0, %v1322_v0  ;;  %v1381_v57 = vadd.f32 1.4214138, %v1373_v39 }
 0x2c9   : > { %v5822_v21 = vpop.eup %4791  ;;  %v1323_v11 = vand.u32 2147483647, %v5811_v46  ;;  %v1338_v8 = vadd.f32 1.0, %v1330_v29  ;;  %v5828_v36 = vadd.f32 %v5745_v41, %v1177_v19  ;;  %v1451_v18 = vmul.f32 1.442695, %v1440_v32 }
 0x2ca   : > { %v1374_v17 = vmul.f32 %v5791_v9, %v1366_v23  ;;  %v1359_v31 = vmul.f32 1.0614054, %v5822_v21  ;;  %v1442_v4 = vmul.f32 %v1434_v34, %v1322_v0  ;;  %v1453_v2 = vmul.f32 1.442695, %v1441_v33 }
 0x2cb   : > { %v1331_v25 = vmul.f32 0.3275911, %v1323_v11  ;;  %4799 = vrcp.f32 %v1338_v8  ;;  %v5840_v50 = vmul.f32 0.70710677, %v5828_v36  ;;  %v1435_v29 = vsub.f32 0.0, %v1323_v11 }
 0x2cc   : > { %v1382_v10 = vadd.f32 1.4214138, %v1374_v17  ;;  %v1367_v37 = vadd.f32 -1.4531521, %v1359_v31  ;;  %4801 = vpow2.f32 %v1449_v62  ;;  %v1389_v19 = vmul.f32 %v5778_v44, %v1381_v57 }
 0x2cd   : > { %v5831_v38 = vpop.eup %4793  ;;  %v1339_v45 = vadd.f32 1.0, %v1331_v25  ;;  %v5848_v7 = vand.u32 2147483647, %v5840_v50  ;;  %v1455_v8 = vmul.f32 1.442695, %v1442_v4  ;;  %v1443_v33 = vmul.f32 %v1435_v29, %v1323_v11 }
 0x2ce   : > { %v1390_v59 = vmul.f32 %v5791_v9, %v1382_v10  ;;  %v1375_v3 = vmul.f32 %v5822_v21, %v1367_v37  ;;  %v1360_v41 = vmul.f32 1.0614054, %v5831_v38  ;;  %v1397_v37 = vadd.f32 -0.28449672, %v1389_v19 }
 0x2cf   : > { %4803 = vrcp.f32 %v1339_v45  ;;  %v1332_v0 = vmul.f32 0.3275911, %v5848_v7  ;;  %vm1306_vm0 = vcmp.ge.f32.partialorder %v5797_v56, 0.0  ;;  %vm1307_vm1 = vcmp.ge.f32.partialorder %v5811_v46, 0.0 }
 0x2d0   : > { %v1398_v24 = vadd.f32 -0.28449672, %v1390_v59  ;;  %v1383_v35 = vadd.f32 1.4214138, %v1375_v3  ;;  %v1368_v52 = vadd.f32 -1.4531521, %v1360_v41  ;;  %4805 = vpow2.f32 %v5793_v47 }
 0x2d1   : > { %v5843_v60 = vpop.eup %4795  ;;  %4807 = vpow2.f32 %v1451_v18  ;;  %v1340_v25 = vadd.f32 1.0, %v1332_v0  ;;  %v5863_v47 = vsel %vm1304_vm14, 1.0, %v5111_v15  ;;  %v1314_v56 = vsel %vm1306_vm0, 1.0, %v5111_v15 }
 0x2d2   : > { %v1406_v1 = vmul.f32 %v5791_v9, %v1398_v24  ;;  %v1361_v30 = vmul.f32 1.0614054, %v5843_v60  ;;  %v1391_v23 = vmul.f32 %v5822_v21, %v1383_v35  ;;  %v1376_v58 = vmul.f32 %v5831_v38, %v1368_v52  ;;  %v4798_v27 = vpop.eup %4797 }
 0x2d3   : > { %4809 = vrcp.f32 %v1340_v25  ;;  %v1405_v35 = vmul.f32 %v5778_v44, %v1397_v37  ;;  %v1315_v46 = vsel %vm1307_vm1, 1.0, %v5111_v15  ;;  %vm1308_vm2 = vcmp.ge.f32.partialorder %v5840_v50, 0.0 }
 0x2d4   : > { %v1414_v17 = vadd.f32 0.2548296, %v1406_v1  ;;  %v1369_v51 = vadd.f32 -1.4531521, %v1361_v30  ;;  %v1399_v31 = vadd.f32 -0.28449672, %v1391_v23  ;;  %4811 = vpow2.f32 %v1453_v2 }
 0x2d5   : > { %v1384_v62 = vadd.f32 1.4214138, %v1376_v58  ;;  %v5857_v34 = vpop.eup %4799  ;;  %4813 = vpow2.f32 %v1455_v8  ;;  %v1457_v23 = vmul.f32 1.442695, %v1443_v33  ;;  %v1413_v19 = vadd.f32 0.2548296, %v1405_v35 }
 0x2d6   : > { %v1422_v10 = vmul.f32 %v5791_v9, %v1414_v17  ;;  %v1377_v32 = vmul.f32 %v5843_v60, %v1369_v51  ;;  %v1407_v39 = vmul.f32 %v5822_v21, %v1399_v31  ;;  %v1362_v9 = vmul.f32 1.0614054, %v5857_v34  ;;  %v4802_v41 = vpop.eup %4801 }
 0x2d7   : > { %v1392_v59 = vmul.f32 %v5831_v38, %v1384_v62  ;;  %4815 = vpow2.f32 %v1457_v23  ;;  %v1292_v50 = vmul.f32 0.5, %v5828_v36  ;;  %v2088_v36 = vld [vmem:[#allocation5 + $0x500] sm:$0xff] }
 0x2d8   : > { %v1462_v45 = vmul.f32 %v4798_v27, %v1422_v10  ;;  %v1385_v3 = vadd.f32 1.4214138, %v1377_v32  ;;  %v1415_v24 = vadd.f32 0.2548296, %v1407_v39  ;;  %v1370_v4 = vadd.f32 -1.4531521, %v1362_v9 }
 0x2d9   : > { %v1400_v57 = vadd.f32 -0.28449672, %v1392_v59  ;;  %v5869_v52 = vpop.eup %4803  ;;  %v1436_v27 = vsub.f32 0.0, %v5848_v7  ;;  %v1421_v10 = vmul.f32 %v5778_v44, %v1413_v19 }
 0x2da   : > { %v1470_v20 = vsub.f32 1.0, %v1462_v45  ;;  %v1393_v18 = vmul.f32 %v5843_v60, %v1385_v3  ;;  %v1423_v11 = vmul.f32 %v5822_v21, %v1415_v24  ;;  %v1363_v30 = vmul.f32 1.0614054, %v5869_v52  ;;  %v4806_v31 = vpop.eup %4805 }
 0x2db   : > { %v1408_v1 = vmul.f32 %v5831_v38, %v1400_v57  ;;  %v1378_v2 = vmul.f32 %v5857_v34, %v1370_v4  ;;  %v4808_v32 = vpop.eup %4807  ;;  %v1461_v45 = vmul.f32 %v4806_v31, %v1421_v10  ;;  %v1444_v24 = vmul.f32 %v1436_v27, %v5848_v7 }
 0x2dc   : > { %v1478_v58 = vmul.f32 %v1470_v20, %v5808_v43  ;;  %v1401_v29 = vadd.f32 -0.28449672, %v1393_v18  ;;  %v1463_v17 = vmul.f32 %v4802_v41, %v1423_v11  ;;  %v1371_v0 = vadd.f32 -1.4531521, %v1363_v30 }
 0x2dd   : > { %v1416_v51 = vadd.f32 0.2548296, %v1408_v1  ;;  %v1386_v8 = vadd.f32 1.4214138, %v1378_v2  ;;  %v5886_v44 = vpop.eup %4809  ;;  %v1469_v35 = vsub.f32 1.0, %v1461_v45  ;;  %v1313_v7 = vsel %vm1305_vm15, 1.0, %v5111_v15 }
 0x2de   : > { %v1486_v62 = vadd.f32 1.0, %v1478_v58  ;;  %v1409_v21 = vmul.f32 %v5843_v60, %v1401_v29  ;;  %v1471_v25 = vsub.f32 1.0, %v1463_v17  ;;  %v1379_v37 = vmul.f32 %v5869_v52, %v1371_v0 }
 0x2df   : > { %v1424_v43 = vmul.f32 %v5831_v38, %v1416_v51  ;;  %v1394_v33 = vmul.f32 %v5857_v34, %v1386_v8  ;;  %v1477_v23 = vmul.f32 %v1469_v35, %v5789_v49  ;;  %v1459_v51 = vmul.f32 1.442695, %v1444_v24 }
 0x2e0   : > { %v1494_v39 = vmul.f32 %v1486_v62, %v5784_v28  ;;  %v1417_v59 = vadd.f32 0.2548296, %v1409_v21  ;;  %v1479_v3 = vmul.f32 %v1471_v25, %v5819_v63  ;;  %v1387_v41 = vadd.f32 1.4214138, %v1379_v37  ;;  %v4812_v28 = vpop.eup %4811 }
 0x2e1   : > { %v1464_v9 = vmul.f32 %v4808_v32, %v1424_v43  ;;  %v1402_v38 = vadd.f32 -0.28449672, %v1394_v33  ;;  %v1364_v63 = vmul.f32 1.0614054, %v5886_v44  ;;  %v4814_v1 = vpop.eup %4813  ;;  %v1485_v0 = vadd.f32 1.0, %v1477_v23  ;;  %v2073_v23 = vld [vmem:[#allocation5 + $0x488] sm:$0xff] }
 0x2e2   : > { %v1425_v57 = vmul.f32 %v5843_v60, %v1417_v59  ;;  %v5890_v20 = vadd.f32 %v1494_v39, %v5662_v53  ;;  %v1487_v18 = vadd.f32 1.0, %v1479_v3  ;;  %v1395_v11 = vmul.f32 %v5869_v52, %v1387_v41  ;;  %v4816_v8 = vpop.eup %4815 }
 0x2e3   : > { %v1472_v4 = vsub.f32 1.0, %v1464_v9  ;;  %v1410_v60 = vmul.f32 %v5857_v34, %v1402_v38  ;;  %v1372_v2 = vadd.f32 -1.4531521, %v1364_v63  ;;  %v1289_v62 = vmul.f32 0.5, %v5768_v13 }
 0x2e4   : > { %v1465_v30 = vmul.f32 %v4812_v28, %v1425_v57  ;;  %4085 = vmatprep.mubr.f32.mxu0 %v5890_v20  ;;  %v1495_v53 = vmul.f32 %v1487_v18, %v5814_v61  ;;  %v1403_v29 = vadd.f32 -0.28449672, %v1395_v11  ;;  %4817 = vpow2.f32 %v1459_v51 }
 0x2e5   : > { %v1480_v58 = vmul.f32 %v1472_v4, %v5863_v47  ;;  %v1418_v17 = vadd.f32 0.2548296, %v1410_v60  ;;  %v1380_v49 = vmul.f32 %v5886_v44, %v1372_v2  ;;  %v1493_v47 = vmul.f32 %v1485_v0, %v5776_v48  ;;  %v2092_v0 = vld [vmem:[#allocation5 + $0x520] sm:$0xff] }
 0x2e6   : > { %v1473_v19 = vsub.f32 1.0, %v1465_v30  ;;  %v1411_v26 = vmul.f32 %v5869_v52, %v1403_v29  ;;  %v5904_v31 = vadd.f32 %v1495_v53, %v5664_v12  ;;  %v5112_v33 = vmov 0.0   ;;  %v2089_v30 = vld [vmem:[#allocation5 + $0x508] sm:$0xff]  ;;  %v2091_v29 = vld [vmem:[#allocation5 + $0x518] sm:$0xff] }
 0x2e7   : > { %v1488_v27 = vadd.f32 1.0, %v1480_v58  ;;  %v1426_v61 = vmul.f32 %v5857_v34, %v1418_v17  ;;  %v1388_v25 = vadd.f32 1.4214138, %v1380_v49  ;;  %v5914_v37 = vadd.f32 %v1493_v47, %v5638_v14  ;;  %v2090_v58 = vld [vmem:[#allocation5 + $0x510] sm:$0xff]  ;;  %v2075_v17 = vld [vmem:[#allocation5 + $0x498] sm:$0xff] }
 0x2e8   : > { %v1481_v21 = vmul.f32 %v1473_v19, %v1313_v7  ;;  %v1419_v32 = vadd.f32 0.2548296, %v1411_v26  ;;  %4086 = vmatmul.mubr.f32.vlgmr.msra.gmra.mrb[32].mxu0 %v5904_v31  ;;  %v1290_v9 = vmul.f32 0.5, %v5781_v54  ;;  %v4488_v60 = vpack.c.bf16 %v2089_v30, %v2088_v36  ;;  %v2074_v19 = vld [vmem:[#allocation5 + $0x490] sm:$0xff]  ;;  %v2104_v26 = vld [vmem:[#allocation5 + $0x580] sm:$0xff]  ;;  %v2113_v36 = vld [vmem:[#allocation5 + $0x5c8] sm:$0xff] }
 0x2e9   : > { %v1496_v10 = vmul.f32 %v1488_v27, %v5835_v42  ;;  %v1466_v43 = vmul.f32 %v4814_v1, %v1426_v61  ;;  %v1396_v48 = vmul.f32 %v5886_v44, %v1388_v25  ;;  %1669 = vmatprep.mubr.f32.mxu1 %v5914_v37  ;;  %v4492_v2 = vpack.c.bf16 %v2091_v29, %v2090_v58  ;;  %v2093_v27 = vld [vmem:[#allocation5 + $0x528] sm:$0xff]  ;;  %v2106_v25 = vld [vmem:[#allocation5 + $0x590] sm:$0xff] }
 0x2ea   : > { %v1489_v12 = vadd.f32 1.0, %v1481_v21  ;;  %v1427_v13 = vmul.f32 %v5869_v52, %v1419_v32  ;;  %1670 = vmatmul.mubr.f32.vlgmr.msra.gmra.mrb[24].mxu1 %v5112_v33  ;;  %4489 = vmatprep.subr.bf16.mxu1 %v4488_v60  ;;  %v4494_v51 = vpack.c.bf16 %v2075_v17, %v2074_v19  ;;  %v4496_v49 = vpack.c.bf16 %v2093_v27, %v2092_v0  ;;  %v2077_v21 = vld [vmem:[#allocation5 + $0x4a8] sm:$0xff]  ;;  %v2095_v32 = vld [vmem:[#allocation5 + $0x538] sm:$0xff]  ;;  %v2086_v29 = vld [vmem:[#allocation5 + $0x4f0] sm:$0xff] }
 0x2eb   : > { %v5918_v34 = vadd.f32 %v1496_v10, %v5692_v40  ;;  %v1474_v39 = vsub.f32 1.0, %v1466_v43  ;;  %v1404_v14 = vadd.f32 -0.28449672, %v1396_v48  ;;  %1674 = vmatprep.mubr.f32.mxu1 %v5890_v20  ;;  %v2105_v61 = vld [vmem:[#allocation5 + $0x588] sm:$0xff]  ;;  %v2094_v10 = vld [vmem:[#allocation5 + $0x530] sm:$0xff]  ;;  %v2107_v48 = vld [vmem:[#allocation5 + $0x598] sm:$0xff] }
 0x2ec   : > { %v1497_v42 = vmul.f32 %v1489_v12, %v1289_v62  ;;  %v1467_v59 = vmul.f32 %v4816_v8, %v1427_v13  ;;  %v2076_v62 = vld [vmem:[#allocation5 + $0x4a0] sm:$0xff]  ;;  %v4520_v8 = vpack.c.bf16 %v2105_v61, %v2104_v26  ;;  %v4500_v12 = vpack.c.bf16 %v2095_v32, %v2094_v10  ;;  %v2078_v43 = vld [vmem:[#allocation5 + $0x4b0] sm:$0xff]  ;;  %v2079_v13 = vld [vmem:[#allocation5 + $0x4b8] sm:$0xff] }
 0x2ed   : > { %4088 = vmatprep.mubr.f32.mxu0 %v5918_v34  ;;  %v1482_v52 = vmul.f32 %v1474_v39, %v1314_v56  ;;  %v1412_v3 = vmul.f32 %v5886_v44, %v1404_v14  ;;  %v4498_v47 = vpack.c.bf16 %v2077_v21, %v2076_v62  ;;  %v4524_v39 = vpack.c.bf16 %v2107_v48, %v2106_v25  ;;  %v2096_v56 = vld [vmem:[#allocation5 + $0x540] sm:$0xff]  ;;  %v2115_v19 = vld [vmem:[#allocation5 + $0x5d8] sm:$0xff]  ;;  %v2117_v27 = vld [vmem:[#allocation5 + $0x5e8] sm:$0xff] }
 0x2ee   : > { %v5928_v40 = vadd.f32 %v1497_v42, %v5689_v55  ;;  %v1475_v45 = vsub.f32 1.0, %v1467_v59  ;;  %1675 = vmatmul.mubr.f32.gmra.mrb[26].mxu1 %v5914_v37  ;;  %v1291_v55 = vmul.f32 0.5, %v5801_v5  ;;  %v4818_v18 = vpop.eup %4817  ;;  %4521 = vmatprep.subr.bf16.mxu0 %v4520_v8  ;;  %v4502_v42 = vpack.c.bf16 %v2079_v13, %v2078_v43  ;;  %v2097_v59 = vld [vmem:[#allocation5 + $0x548] sm:$0xff]  ;;  %v2108_v14 = vld [vmem:[#allocation5 + $0x5a0] sm:$0xff]  ;;  %v2119_v62 = vld [vmem:[#allocation5 + $0x5f8] sm:$0xff] }
 0x2ef   : > { %v1490_v41 = vadd.f32 1.0, %v1482_v52  ;;  %v1420_v57 = vadd.f32 0.2548296, %v1412_v3  ;;  %1679 = vmatprep.mubr.f32.mxu1 %v5904_v31  ;;  %4523 = vmatpush3.bf16.msra.mxu0 %v4520_v8  ;;  %v4504_v52 = vpack.c.bf16 %v2097_v59, %v2096_v56  ;;  %v2081_v3 = vld [vmem:[#allocation5 + $0x4c8] sm:$0xff]  ;;  %v2116_v0 = vld [vmem:[#allocation5 + $0x5e0] sm:$0xff] }
 0x2f0   : > { %4089 = vmatmul.mubr.f32.gmra.mrb[34].mxu0 %v5928_v40  ;;  %v1483_v24 = vmul.f32 %v1475_v45, %v1315_v46  ;;  %4525 = vmatprep.subr.bf16.mxu0 %v4524_v39  ;;  %v2080_v45 = vld [vmem:[#allocation5 + $0x4c0] sm:$0xff]  ;;  %v4544_v26 = vpack.c.bf16 %v2117_v27, %v2116_v0 }
 0x2f1   : > { %v1498_v38 = vmul.f32 %v1490_v41, %v1290_v9  ;;  %v1428_v28 = vmul.f32 %v5886_v44, %v1420_v57  ;;  %v1316_v44 = vsel %vm1308_vm2, 1.0, %v5111_v15  ;;  %v2109_v9 = vld [vmem:[#allocation5 + $0x5a8] sm:$0xff]  ;;  %v4506_v41 = vpack.c.bf16 %v2081_v3, %v2080_v45  ;;  %v2099_v57 = vld [vmem:[#allocation5 + $0x558] sm:$0xff]  ;;  %v5968_v32 = vld [vmem:[%s6635_s2 + $0x2] ss:$0 sm:$0xff] }
 0x2f2   : > { %v1491_v35 = vadd.f32 1.0, %v1483_v24  ;;  %1680 = vmatmul.mubr.f32.gmra.mrb[28].mxu1 %v5890_v20  ;;  %v4528_v46 = vpack.c.bf16 %v2109_v9, %v2108_v14  ;;  %v2098_v24 = vld [vmem:[#allocation5 + $0x550] sm:$0xff] }
 0x2f3   : > { %v5939_v54 = vadd.f32 %v1498_v38, %v5708_v6  ;;  %v1468_v11 = vmul.f32 %v4818_v18, %v1428_v28  ;;  %1684 = vmatprep.mubr.f32.mxu1 %v5918_v34  ;;  %4527 = vmatpush3.bf16.msra.mxu0 %v4524_v39  ;;  %v2110_v38 = vld [vmem:[#allocation5 + $0x5b0] sm:$0xff]  ;;  %v2083_v28 = vld [vmem:[#allocation5 + $0x4d8] sm:$0xff] }
 0x2f4   : > { %v1499_v4 = vmul.f32 %v1491_v35, %v1291_v55  ;;  %4529 = vmatprep.subr.bf16.mxu0 %v4528_v46  ;;  %v4508_v55 = vpack.c.bf16 %v2099_v57, %v2098_v24  ;;  %v2082_v35 = vld [vmem:[#allocation5 + $0x4d0] sm:$0xff]  ;;  %v2111_v18 = vld [vmem:[#allocation5 + $0x5b8] sm:$0xff] }
 0x2f5   : > { %4091 = vmatprep.mubr.f32.mxu0 %v5939_v54  ;;  %v1476_v5 = vsub.f32 1.0, %v1468_v11  ;;  %v4532_v11 = vpack.c.bf16 %v2111_v18, %v2110_v38 }
 0x2f6   : > { %v5946_v63 = vadd.f32 %v1499_v4, %v5712_v22  ;;  %1685 = vmatmul.mubr.f32.gmra.mrb[30].mxu1 %v5904_v31  ;;  %v4510_v4 = vpack.c.bf16 %v2083_v28, %v2082_v35 }
 0x2f7   : > { %v1484_v6 = vmul.f32 %v1476_v5, %v1316_v44  ;;  %1689 = vmatprep.mubr.f32.mxu1 %v5928_v40  ;;  %4531 = vmatpush3.bf16.msra.mxu0 %v4528_v46  ;;  %v2100_v5 = vld [vmem:[#allocation5 + $0x560] sm:$0xff]  ;;  %v2101_v44 = vld [vmem:[#allocation5 + $0x568] sm:$0xff] }
 0x2f8   : > { %4092 = vmatmul.mubr.f32.gmra.mrb[36].mxu0 %v5946_v63  ;;  %4533 = vmatprep.subr.bf16.mxu0 %v4532_v11 }
 0x2f9   : > { %v1492_v1 = vadd.f32 1.0, %v1484_v6  ;;  %v2112_v6 = vld [vmem:[#allocation5 + $0x5c0] sm:$0xff] }
 0x2fa   : > { %1690 = vmatmul.mubr.f32.gmra.mrb[32].mxu1 %v5918_v34  ;;  %v4536_v60 = vpack.c.bf16 %v2113_v36, %v2112_v6 }
 0x2fb   : > { %v1500_v7 = vmul.f32 %v1492_v1, %v1292_v50  ;;  %1694 = vmatprep.mubr.f32.mxu1 %v5939_v54  ;;  %4535 = vmatpush3.bf16.msra.mxu0 %v4532_v11  ;;  %v4512_v50 = vpack.c.bf16 %v2101_v44, %v2100_v5  ;;  %v2084_v1 = vld [vmem:[#allocation5 + $0x4e0] sm:$0xff] }
 0x2fc   : > { %4537 = vmatprep.subr.bf16.mxu0 %v4536_v60 }
 0x2fd   : > { %v5956_v22 = vadd.f32 %v1500_v7, %v5722_v16  ;;  %v2072_v16 = vld [vmem:[#allocation5 + $0x480] sm:$0xff]  ;;  %v2085_v7 = vld [vmem:[#allocation5 + $0x4e8] sm:$0xff] }
 0x2fe   : > { %1695 = vmatmul.mubr.f32.gmra.mrb[34].mxu1 %v5928_v40  ;;  %v4490_v53 = vpack.c.bf16 %v2073_v23, %v2072_v16  ;;  %v4514_v30 = vpack.c.bf16 %v2085_v7, %v2084_v1  ;;  %v2102_v16 = vld [vmem:[#allocation5 + $0x570] sm:$0xff]  ;;  %v2103_v23 = vld [vmem:[#allocation5 + $0x578] sm:$0xff] }
 0x2ff   : > { %4094 = vmatprep.mubr.f32.mxu0 %v5956_v22  ;;  %1699 = vmatprep.mubr.f32.mxu1 %v5946_v63  ;;  %v4516_v58 = vpack.c.bf16 %v2103_v23, %v2102_v16 }
 0x300   : > { %4095 = vmatmul.mubr.f32.gmra.mrb[38].mxu0 %v5112_v33  ;;  %4491 = vmatpush3.bf16.msra.mxu1 %v4490_v53  ;;  %v2114_v53 = vld [vmem:[#allocation5 + $0x5d0] sm:$0xff] }
 0x301   : > { %4493 = vmatprep.subr.bf16.mxu1 %v4492_v2  ;;  %4539 = vmatpush3.bf16.msra.mxu0 %v4536_v60  ;;  %v2087_v2 = vld [vmem:[#allocation5 + $0x4f8] sm:$0xff] }
 0x302   : > { %1700 = vmatmul.mubr.f32.gmra.mrb[36].mxu1 %v5939_v54  ;;  %v4518_v17 = vpack.c.bf16 %v2087_v2, %v2086_v29 }
 0x303   : > { %1704 = vmatprep.mubr.f32.mxu1 %v5956_v22 }
 0x304   : > { %4495 = vmatpush3.bf16.msra.mxu1 %v4494_v51  ;;  %v4540_v51 = vpack.c.bf16 %v2115_v19, %v2114_v53 }
 0x305   : > { %4497 = vmatprep.subr.bf16.mxu1 %v4496_v49  ;;  %v2118_v49 = vld [vmem:[#allocation5 + $0x5f0] sm:$0xff] }
 0x306   : > { %1705 = vmatmul.mubr.f32.gmra.mrb[38].mxu1 %v5946_v63  ;;  %4541 = vmatprep.subr.bf16.mxu0 %v4540_v51  ;;  %v4548_v21 = vpack.c.bf16 %v2119_v62, %v2118_v49 }
 0x307   : > { %4543 = vmatpush3.bf16.msra.mxu0 %v4540_v51 }
 0x308   : > { %4499 = vmatpush3.bf16.msra.mxu1 %v4498_v47  ;;  %4545 = vmatprep.subr.bf16.mxu0 %v4544_v26 }
 0x309   : > { %4501 = vmatprep.subr.bf16.mxu1 %v4500_v12 }
 0x30b   : > { %4547 = vmatpush3.bf16.msra.mxu0 %v4544_v26 }
 0x30c   : > { %4503 = vmatpush3.bf16.msra.mxu1 %v4502_v42  ;;  %4549 = vmatprep.subr.bf16.mxu0 %v4548_v21 }
 0x30d   : > { %4505 = vmatprep.subr.bf16.mxu1 %v4504_v52 }
 0x30f   : > { %4551 = vmatpush3.bf16.msra.mxu0 %v4548_v21 }
 0x310   : > { %4507 = vmatpush3.bf16.msra.mxu1 %v4506_v41 }
 0x311   : > { %4509 = vmatprep.subr.bf16.mxu1 %v4508_v55 }
 0x314   : > { %4511 = vmatpush3.bf16.msra.mxu1 %v4510_v4 }
 0x315   : > { %4513 = vmatprep.subr.bf16.mxu1 %v4512_v50 }
 0x318   : > { %4515 = vmatpush3.bf16.msra.mxu1 %v4514_v30 }
 0x319   : > { %4517 = vmatprep.subr.bf16.mxu1 %v4516_v58 }
 0x31c   : > { %4519 = vmatpush3.bf16.msra.mxu1 %v4518_v17 }
 0x3bb   : > { %v4087_v61 = vpop.f32.mrb[32].mxu0 }
 0x3bc   : > { %v1776_v47 = vpop.f32.mrb[33].mxu0 }
 0x3bd   : > { %v3672_v8 = vpop.f32.mrb[24].mxu1 }
 0x3be   : > { %v3673_v10 = vpop.f32.mrb[25].mxu1 }
 0x3bf   : > { %v3674_v25 = vadd.f32 %v3673_v10, %v3672_v8 }
 0x3c1   : > { %v3675_v43 = vpop.f32.mrb[26].mxu1  ;;  %v1672_v13 = vadd.f32 %v3674_v25, %v5968_v32 }
 0x3c2   : > { %v3676_v42 = vpop.f32.mrb[27].mxu1 }
 0x3c3   : > { %v4090_v12 = vpop.f32.mrb[34].mxu0  ;;  %v3677_v39 = vadd.f32 %v3676_v42, %v3675_v43  ;;  %v5971_v56 = vadd.f32 %v1776_v47, %v1672_v13 }
 0x3c4   : > { %v1786_v48 = vpop.f32.mrb[35].mxu0 }
 0x3c5   : > { %v1677_v59 = vadd.f32 %v3677_v39, %v5968_v32  ;;  %v3678_v14 = vpop.f32.mrb[28].mxu1  ;;  %v5975_v52 = vmul.f32 0.70710677, %v5971_v56 }
 0x3c6   : > { %v3679_v45 = vpop.f32.mrb[29].mxu1 }
 0x3c7   : > { %v5977_v3 = vadd.f32 %v4087_v61, %v1677_v59  ;;  %v1847_v9 = vand.u32 2147483647, %v5975_v52  ;;  %v3680_v41 = vadd.f32 %v3679_v45, %v3678_v14  ;;  %vm1831_vm3 = vcmp.ge.f32.partialorder %v5975_v52, 0.0 }
 0x3c9   : > { %v5981_v46 = vmul.f32 0.70710677, %v5977_v3  ;;  %v1855_v24 = vmul.f32 0.3275911, %v1847_v9  ;;  %v3681_v57 = vpop.f32.mrb[30].mxu1  ;;  %v1682_v38 = vadd.f32 %v3680_v41, %v5968_v32  ;;  %v1959_v58 = vsub.f32 0.0, %v1847_v9 }
 0x3ca   : > { %v3682_v18 = vpop.f32.mrb[31].mxu1 }
 0x3cb   : > { %v4093_v55 = vpop.f32.mrb[36].mxu0  ;;  %v1848_v35 = vand.u32 2147483647, %v5981_v46  ;;  %v1863_v28 = vadd.f32 1.0, %v1855_v24  ;;  %v3683_v11 = vadd.f32 %v3682_v18, %v3681_v57  ;;  %v5985_v5 = vadd.f32 %v1786_v48, %v1682_v38 }
 0x3cc   : > { %v1796_v4 = vpop.f32.mrb[37].mxu0  ;;  %v1967_v47 = vmul.f32 %v1959_v58, %v1847_v9  ;;  %vm1832_vm4 = vcmp.ge.f32.partialorder %v5981_v46, 0.0 }
 0x3cd   : > { %v1856_v44 = vmul.f32 0.3275911, %v1848_v35  ;;  %4819 = vrcp.f32 %v1863_v28  ;;  %v3684_v6 = vpop.f32.mrb[32].mxu1  ;;  %v1687_v50 = vadd.f32 %v3683_v11, %v5968_v32  ;;  %v5989_v1 = vmul.f32 0.70710677, %v5985_v5 }
 0x3ce   : > { %v3685_v7 = vpop.f32.mrb[33].mxu1  ;;  %v1960_v61 = vsub.f32 0.0, %v1848_v35  ;;  %v1975_v9 = vmul.f32 1.442695, %v1967_v47  ;;  %v1840_v46 = vsel %vm1832_vm4, 1.0, %v5111_v15 }
 0x3cf   : > { %v1864_v36 = vadd.f32 1.0, %v1856_v44  ;;  %v3686_v30 = vadd.f32 %v3685_v7, %v3684_v6  ;;  %v5991_v60 = vadd.f32 %v4090_v12, %v1687_v50  ;;  %v1849_v16 = vand.u32 2147483647, %v5989_v1 }
 0x3d0   : > { %v1968_v45 = vmul.f32 %v1960_v61, %v1848_v35  ;;  %v6020_v35 = vmul.f32 0.5, %v5971_v56  ;;  %vm1833_vm5 = vcmp.ge.f32.partialorder %v5989_v1, 0.0 }
 0x3d1   : > { %4821 = vrcp.f32 %v1864_v36  ;;  %v3687_v23 = vpop.f32.mrb[34].mxu1  ;;  %v1692_v53 = vadd.f32 %v3686_v30, %v5968_v32  ;;  %v5996_v29 = vmul.f32 0.70710677, %v5991_v60  ;;  %v1857_v2 = vmul.f32 0.3275911, %v1849_v16 }
 0x3d2   : > { %v3688_v19 = vpop.f32.mrb[35].mxu1  ;;  %v1961_v38 = vsub.f32 0.0, %v1849_v16  ;;  %v1977_v36 = vmul.f32 1.442695, %v1968_v45 }
 0x3d3   : > { %v5998_v17 = vadd.f32 %v1796_v4, %v1692_v53  ;;  %v4096_v51 = vpop.f32.mrb[38].mxu0  ;;  %v1850_v0 = vand.u32 2147483647, %v5996_v29  ;;  %v1865_v27 = vadd.f32 1.0, %v1857_v2  ;;  %v3689_v49 = vadd.f32 %v3688_v19, %v3687_v23 }
 0x3d4   : > { %v1806_v26 = vpop.f32.mrb[39].mxu0  ;;  %v1969_v53 = vmul.f32 %v1961_v38, %v1849_v16  ;;  %v1839_v16 = vsel %vm1831_vm3, 1.0, %v5111_v15  ;;  %vm1834_vm6 = vcmp.ge.f32.partialorder %v5996_v29, 0.0  ;;  %vm5114_vm3 = vmmov 0  }
 0x3d5   : > { %v3690_v62 = vpop.f32.mrb[36].mxu1  ;;  %v6002_v21 = vmul.f32 0.70710677, %v5998_v17  ;;  %v1858_v8 = vmul.f32 0.3275911, %v1850_v0  ;;  %4823 = vrcp.f32 %v1865_v27  ;;  %v1697_v12 = vadd.f32 %v3689_v49, %v5968_v32 }
 0x3d6   : > { %v3691_v10 = vpop.f32.mrb[37].mxu1  ;;  %v1962_v44 = vsub.f32 0.0, %v1850_v0 }
 0x3d7   : > { %v6004_v25 = vpop.eup %4819  ;;  %v1851_v43 = vand.u32 2147483647, %v6002_v21  ;;  %v3692_v13 = vadd.f32 %v3691_v10, %v3690_v62  ;;  %v1866_v42 = vadd.f32 1.0, %v1858_v8  ;;  %v6009_v39 = vadd.f32 %v4093_v55, %v1697_v12 }
 0x3d8   : > { %v1887_v48 = vmul.f32 1.0614054, %v6004_v25  ;;  %v1970_v49 = vmul.f32 %v1962_v44, %v1850_v0  ;;  %v1979_v12 = vmul.f32 1.442695, %v1969_v53  ;;  %vm1835_vm7 = vcmp.ge.f32.partialorder %v6002_v21, 0.0 }
 0x3d9   : > { %v1859_v59 = vmul.f32 0.3275911, %v1851_v43  ;;  %v3693_v14 = vpop.f32.mrb[38].mxu1  ;;  %4825 = vrcp.f32 %v1866_v42  ;;  %v6014_v28 = vmul.f32 0.70710677, %v6009_v39  ;;  %v1702_v4 = vadd.f32 %v3692_v13, %v5968_v32 }
 0x3da   : > { %v1895_v41 = vadd.f32 -1.4531521, %v1887_v48  ;;  %v3694_v24 = vpop.f32.mrb[39].mxu1  ;;  %v1981_v42 = vmul.f32 1.442695, %v1970_v49 }
 0x3db   : > { %v6011_v57 = vpop.eup %4821  ;;  %v1867_v18 = vadd.f32 1.0, %v1859_v59  ;;  %v3695_v6 = vadd.f32 %v3694_v24, %v3693_v14  ;;  %v1852_v50 = vand.u32 2147483647, %v6014_v28  ;;  %v6025_v2 = vadd.f32 %v1806_v26, %v1702_v4 }
 0x3dc   : > { %v1888_v11 = vmul.f32 1.0614054, %v6011_v57  ;;  %v1903_v55 = vmul.f32 %v6004_v25, %v1895_v41  ;;  %vm1836_vm8 = vcmp.ge.f32.partialorder %v6014_v28, 0.0 }
 0x3dd   : > { %4827 = vrcp.f32 %v1867_v18  ;;  %v1707_v23 = vadd.f32 %v3695_v6, %v5968_v32  ;;  %v1860_v58 = vmul.f32 0.3275911, %v1852_v50  ;;  %v1963_v32 = vsub.f32 0.0, %v1851_v43 }
 0x3de   : > { %v1896_v7 = vadd.f32 -1.4531521, %v1888_v11  ;;  %v1911_v30 = vadd.f32 1.4214138, %v1903_v55  ;;  %4829 = vpow2.f32 %v1975_v9  ;;  %v1964_v14 = vsub.f32 0.0, %v1852_v50 }
 0x3df   : > { %v6027_v19 = vpop.eup %4823  ;;  %v6031_v62 = vadd.f32 %v4096_v51, %v1707_v23  ;;  %v1868_v47 = vadd.f32 1.0, %v1860_v58  ;;  %4831 = vpow2.f32 %v1977_v36  ;;  %v1971_v45 = vmul.f32 %v1963_v32, %v1851_v43 }
 0x3e0   : > { %v1904_v56 = vmul.f32 %v6011_v57, %v1896_v7  ;;  %v1919_v27 = vmul.f32 %v6004_v25, %v1911_v30  ;;  %v1889_v61 = vmul.f32 1.0614054, %v6027_v19  ;;  %v6054_v11 = vmul.f32 0.70710677, %v6025_v2 }
 0x3e1   : > { %4833 = vrcp.f32 %v1868_v47  ;;  %v6039_v0 = vmul.f32 0.70710677, %v6031_v62  ;;  %v1972_v23 = vmul.f32 %v1964_v14, %v1852_v50  ;;  %v1983_v53 = vmul.f32 1.442695, %v1971_v45 }
 0x3e2   : > { %v1912_v8 = vadd.f32 1.4214138, %v1904_v56  ;;  %v1927_v26 = vadd.f32 -0.28449672, %v1919_v27  ;;  %v1897_v10 = vadd.f32 -1.4531521, %v1889_v61  ;;  %4835 = vpow2.f32 %v1979_v12 }
 0x3e3   : > { %v6041_v51 = vpop.eup %4825  ;;  %v6049_v24 = vand.u32 2147483647, %v6039_v0  ;;  %4837 = vpow2.f32 %v1981_v42  ;;  %v6064_v47 = vand.u32 2147483647, %v6054_v11  ;;  %vm1838_vm9 = vcmp.ge.f32.partialorder %v6039_v0, 0.0 }
 0x3e4   : > { %v1920_v13 = vmul.f32 %v6011_v57, %v1912_v8  ;;  %v1935_v48 = vmul.f32 %v6004_v25, %v1927_v26  ;;  %v1890_v59 = vmul.f32 1.0614054, %v6041_v51  ;;  %v1905_v52 = vmul.f32 %v6027_v19, %v1897_v10 }
 0x3e5   : > { %v1862_v6 = vmul.f32 0.3275911, %v6049_v24  ;;  %v1861_v42 = vmul.f32 0.3275911, %v6064_v47  ;;  %vm1837_vm10 = vcmp.ge.f32.partialorder %v6054_v11, 0.0  ;;  %v2596_v11 = vld [vmem:[#allocation5 + $0x608] sm:$0xff] }
 0x3e6   : > { %v1928_v41 = vadd.f32 -0.28449672, %v1920_v13  ;;  %v1943_v9 = vadd.f32 0.2548296, %v1935_v48  ;;  %v1898_v18 = vadd.f32 -1.4531521, %v1890_v59 }
 0x3e7   : > { %v6051_v38 = vpop.eup %4827  ;;  %v1913_v4 = vadd.f32 1.4214138, %v1905_v52  ;;  %v1870_v49 = vadd.f32 1.0, %v1862_v6  ;;  %v1985_v48 = vmul.f32 1.442695, %v1972_v23 }
 0x3e8   : > { %v1936_v55 = vmul.f32 %v6011_v57, %v1928_v41  ;;  %v1951_v44 = vmul.f32 %v6004_v25, %v1943_v9  ;;  %v1891_v43 = vmul.f32 1.0614054, %v6051_v38  ;;  %v4830_v7 = vpop.eup %4829  ;;  %v1906_v36 = vmul.f32 %v6041_v51, %v1898_v18 }
 0x3e9   : > { %v1921_v30 = vmul.f32 %v6027_v19, %v1913_v4  ;;  %v4832_v32 = vpop.eup %4831  ;;  %4839 = vrcp.f32 %v1870_v49  ;;  %v1869_v9 = vadd.f32 1.0, %v1861_v42  ;;  %v1965_v42 = vsub.f32 0.0, %v6064_v47 }
 0x3ea   : > { %v1944_v58 = vadd.f32 0.2548296, %v1936_v55  ;;  %v1991_v56 = vmul.f32 %v4830_v7, %v1951_v44  ;;  %v1899_v27 = vadd.f32 -1.4531521, %v1891_v43  ;;  %v1914_v61 = vadd.f32 1.4214138, %v1906_v36 }
 0x3eb   : > { %v1929_v25 = vadd.f32 -0.28449672, %v1921_v30  ;;  %v6068_v12 = vpop.eup %4833  ;;  %4841 = vpow2.f32 %v1983_v53  ;;  %v1966_v36 = vsub.f32 0.0, %v6049_v24 }
 0x3ec   : > { %v1952_v8 = vmul.f32 %v6011_v57, %v1944_v58  ;;  %v1999_v26 = vsub.f32 1.0, %v1991_v56  ;;  %v1907_v10 = vmul.f32 %v6051_v38, %v1899_v27  ;;  %v1922_v50 = vmul.f32 %v6041_v51, %v1914_v61  ;;  %v4836_v43 = vpop.eup %4835 }
 0x3ed   : > { %v1937_v13 = vmul.f32 %v6027_v19, %v1929_v25  ;;  %v1892_v14 = vmul.f32 1.0614054, %v6068_v12  ;;  %4843 = vrcp.f32 %v1869_v9  ;;  %v1816_v58 = vmul.f32 0.5, %v5977_v3 }
 0x3ee   : > { %v1992_v59 = vmul.f32 %v4832_v32, %v1952_v8  ;;  %v2007_v52 = vmul.f32 %v1999_v26, %v1839_v16  ;;  %v1915_v45 = vadd.f32 1.4214138, %v1907_v10  ;;  %v1930_v41 = vadd.f32 -0.28449672, %v1922_v50 }
 0x3ef   : > { %v1945_v57 = vadd.f32 0.2548296, %v1937_v13  ;;  %v1900_v55 = vadd.f32 -1.4531521, %v1892_v14  ;;  %v1841_v27 = vsel %vm1833_vm5, 1.0, %v5111_v15  ;;  %4845 = vpow2.f32 %v1985_v48 }
 0x3f0   : > { %v2000_v18 = vsub.f32 1.0, %v1992_v59  ;;  %v2015_v4 = vadd.f32 1.0, %v2007_v52  ;;  %v1923_v44 = vmul.f32 %v6051_v38, %v1915_v45  ;;  %v1938_v6 = vmul.f32 %v6041_v51, %v1930_v41 }
 0x3f1   : > { %v1953_v7 = vmul.f32 %v6027_v19, %v1945_v57  ;;  %v1908_v23 = vmul.f32 %v6068_v12, %v1900_v55  ;;  %v1974_v50 = vmul.f32 %v1966_v36, %v6049_v24  ;;  %v1817_v48 = vmul.f32 0.5, %v5985_v5 }
 0x3f2   : > { %v2008_v16 = vmul.f32 %v2000_v18, %v1840_v46  ;;  %v2023_v30 = vmul.f32 %v2015_v4, %v6020_v35  ;;  %v1931_v53 = vadd.f32 -0.28449672, %v1923_v44  ;;  %v1946_v56 = vadd.f32 0.2548296, %v1938_v6  ;;  %v4838_v46 = vpop.eup %4837 }
 0x3f3   : > { %v1993_v49 = vmul.f32 %v4836_v43, %v1953_v7  ;;  %v1916_v25 = vadd.f32 1.4214138, %v1908_v23  ;;  %v6090_v3 = vpop.eup %4839  ;;  %v1842_v24 = vsel %vm1834_vm6, 1.0, %v5111_v15  ;;  %v1989_v5 = vmul.f32 1.442695, %v1974_v50 }
 0x3f4   : > { %v2016_v61 = vadd.f32 1.0, %v2008_v16  ;;  %v1939_v19 = vmul.f32 %v6051_v38, %v1931_v53  ;;  %v6086_v32 = vadd.f32 %v2023_v30, %v5914_v37  ;;  %v1954_v35 = vmul.f32 %v6041_v51, %v1946_v56 }
 0x3f5   : > { %v2001_v8 = vsub.f32 1.0, %v1993_v49  ;;  %v1924_v1 = vmul.f32 %v6068_v12, %v1916_v25  ;;  %v1894_v51 = vmul.f32 1.0614054, %v6090_v3  ;;  %v4842_v45 = vpop.eup %4841  ;;  %v1973_v44 = vmul.f32 %v1965_v42, %v6064_v47 }
 0x3f6   : > { %v2024_v26 = vmul.f32 %v2016_v61, %v1816_v58  ;;  %v1947_v10 = vadd.f32 0.2548296, %v1939_v19  ;;  %2192 = vmatprep.mubr.f32.mxu1 %v6086_v32  ;;  %v1994_v13 = vmul.f32 %v4838_v46, %v1954_v35  ;;  %v1818_v43 = vmul.f32 0.5, %v5991_v60 }
 0x3f7   : > { %v2009_v37 = vmul.f32 %v2001_v8, %v1841_v27  ;;  %2193 = vmatmul.mubr.f32.vlgmr.msra.gmra.mrb[40].mxu1 %v5112_v33  ;;  %v1932_v59 = vadd.f32 -0.28449672, %v1924_v1  ;;  %v1902_v9 = vadd.f32 -1.4531521, %v1894_v51  ;;  %v1843_v23 = vsel %vm1835_vm7, 1.0, %v5111_v15 }
 0x3f8   : > { %v1955_v52 = vmul.f32 %v6051_v38, %v1947_v10  ;;  %v6101_v14 = vadd.f32 %v2024_v26, %v5890_v20  ;;  %v2002_v41 = vsub.f32 1.0, %v1994_v13  ;;  %v4844_v38 = vpop.eup %4843  ;;  %4847 = vpow2.f32 %v1989_v5 }
 0x3f9   : > { %v2017_v57 = vadd.f32 1.0, %v2009_v37  ;;  %v1940_v18 = vmul.f32 %v6068_v12, %v1932_v59  ;;  %v1910_v29 = vmul.f32 %v6090_v3, %v1902_v9  ;;  %v1893_v36 = vmul.f32 1.0614054, %v4844_v38  ;;  %v4846_v27 = vpop.eup %4845 }
 0x3fa   : > { %v1995_v4 = vmul.f32 %v4842_v45, %v1955_v52  ;;  %2197 = vmatprep.mubr.f32.mxu1 %v6101_v14  ;;  %v2010_v55 = vmul.f32 %v2002_v41, %v1842_v24  ;;  %v1819_v60 = vmul.f32 0.5, %v5998_v17  ;;  %v1987_v61 = vmul.f32 1.442695, %v1973_v44 }
 0x3fb   : > { %v2025_v20 = vmul.f32 %v2017_v57, %v1817_v48  ;;  %2198 = vmatmul.mubr.f32.gmra.mrb[42].mxu1 %v5112_v33  ;;  %v1948_v6 = vadd.f32 0.2548296, %v1940_v18  ;;  %v1918_v53 = vadd.f32 1.4214138, %v1910_v29  ;;  %v1901_v56 = vadd.f32 -1.4531521, %v1893_v36 }
 0x3fc   : > { %v2003_v7 = vsub.f32 1.0, %v1995_v4  ;;  %v2018_v16 = vadd.f32 1.0, %v2010_v55  ;;  %v1844_v26 = vsel %vm1836_vm8, 1.0, %v5111_v15  ;;  %4849 = vpow2.f32 %v1987_v61  ;;  %v2613_v36 = vld [vmem:[#allocation5 + $0x690] sm:$0xff]  ;;  %v2600_v61 = vld [vmem:[#allocation5 + $0x628] sm:$0xff] }
 0x3fd   : > { %v6114_v30 = vadd.f32 %v2025_v20, %v5904_v31  ;;  %v1956_v47 = vmul.f32 %v6068_v12, %v1948_v6  ;;  %v1926_v31 = vmul.f32 %v6090_v3, %v1918_v53  ;;  %v1909_v19 = vmul.f32 %v4844_v38, %v1901_v56  ;;  %v2597_v53 = vld [vmem:[#allocation5 + $0x610] sm:$0xff]  ;;  %v2615_v56 = vld [vmem:[#allocation5 + $0x6a0] sm:$0xff] }
 0x3fe   : > { %v2011_v58 = vmul.f32 %v2003_v7, %v1843_v23  ;;  %v2026_v49 = vmul.f32 %v2018_v16, %v1818_v43  ;;  %v1820_v13 = vmul.f32 0.5, %v6009_v39  ;;  %v1845_v5 = vsel %vm1837_vm10, 1.0, %v5111_v15  ;;  %v2614_v16 = vld [vmem:[#allocation5 + $0x698] sm:$0xff] }
 0x3ff   : > { %2202 = vmatprep.mubr.f32.mxu1 %v6114_v30  ;;  %4129 = vmatprep.mubr.f32.mxu0 %v6114_v30  ;;  %v1996_v21 = vmul.f32 %v4846_v27, %v1956_v47  ;;  %v1934_v46 = vadd.f32 -0.28449672, %v1926_v31  ;;  %v1917_v8 = vadd.f32 1.4214138, %v1909_v19  ;;  %v1821_v20 = vmul.f32 0.5, %v6025_v2  ;;  %v2612_v2 = vld [vmem:[#allocation5 + $0x688] sm:$0xff] }
 0x400   : > { %v2019_v25 = vadd.f32 1.0, %v2011_v58  ;;  %2203 = vmatmul.mubr.f32.gmra.mrb[44].mxu1 %v6086_v32  ;;  %v6127_v12 = vadd.f32 %v2026_v49, %v5918_v34  ;;  %v4556_v23 = vpack.c.bf16 %v2614_v16, %v2613_v36  ;;  %v2598_v47 = vld [vmem:[#allocation5 + $0x618] sm:$0xff]  ;;  %v2616_v27 = vld [vmem:[#allocation5 + $0x6a8] sm:$0xff]  ;;  %v2635_v36 = vld [vmem:[#allocation5 + $0x740] sm:$0xff] }
 0x401   : > { %v2004_v35 = vsub.f32 1.0, %v1996_v21  ;;  %v1942_v28 = vmul.f32 %v6090_v3, %v1934_v46  ;;  %v1925_v50 = vmul.f32 %v4844_v38, %v1917_v8  ;;  %v4558_v58 = vpack.c.bf16 %v2598_v47, %v2597_v53  ;;  %v2617_v21 = vld [vmem:[#allocation5 + $0x6b0] sm:$0xff]  ;;  %v2619_v8 = vld [vmem:[#allocation5 + $0x6c0] sm:$0xff]  ;;  %v2636_v16 = vld [vmem:[#allocation5 + $0x748] sm:$0xff] }
 0x402   : > { %v2027_v17 = vmul.f32 %v2019_v25, %v1819_v60  ;;  %4130 = vmatmul.mubr.f32.vlgmr.msra.gmra.mrb[40].mxu0 %v6127_v12  ;;  %2207 = vmatprep.mubr.f32.mxu1 %v6127_v12  ;;  %v4848_v48 = vpop.eup %4847  ;;  %v4560_v49 = vpack.c.bf16 %v2616_v27, %v2615_v56  ;;  %v2599_v60 = vld [vmem:[#allocation5 + $0x620] sm:$0xff]  ;;  %v2618_v25 = vld [vmem:[#allocation5 + $0x6b8] sm:$0xff]  ;;  %v2601_v46 = vld [vmem:[#allocation5 + $0x630] sm:$0xff]  ;;  %v4600_v53 = vpack.c.bf16 %v2636_v16, %v2635_v36 }
 0x403   : > { %v2012_v1 = vmul.f32 %v2004_v35, %v1844_v26  ;;  %v1950_v34 = vadd.f32 0.2548296, %v1942_v28  ;;  %v1933_v42 = vadd.f32 -0.28449672, %v1925_v50  ;;  %v4562_v31 = vpack.c.bf16 %v2600_v61, %v2599_v60  ;;  %v2602_v35 = vld [vmem:[#allocation5 + $0x638] sm:$0xff]  ;;  %v2620_v26 = vld [vmem:[#allocation5 + $0x6c8] sm:$0xff] }
 0x404   : > { %v6134_v10 = vadd.f32 %v2027_v17, %v5928_v40  ;;  %2208 = vmatmul.mubr.f32.gmra.mrb[46].mxu1 %v6101_v14  ;;  %v4564_v19 = vpack.c.bf16 %v2618_v25, %v2617_v21  ;;  %v4566_v17 = vpack.c.bf16 %v2602_v35, %v2601_v46  ;;  %v2627_v28 = vld [vmem:[#allocation5 + $0x700] sm:$0xff]  ;;  %v2628_v50 = vld [vmem:[#allocation5 + $0x708] sm:$0xff]  ;;  %v2637_v56 = vld [vmem:[#allocation5 + $0x750] sm:$0xff] }
 0x405   : > { %v2020_v37 = vadd.f32 1.0, %v2012_v1  ;;  %v1958_v51 = vmul.f32 %v6090_v3, %v1950_v34  ;;  %v1941_v52 = vmul.f32 %v4844_v38, %v1933_v42  ;;  %v1846_v3 = vsel %vm1838_vm9, 1.0, %v5111_v15  ;;  %v2603_v34 = vld [vmem:[#allocation5 + $0x640] sm:$0xff]  ;;  %v3079_v47 = vld [vmem:[#allocation7 + $0x208] sm:$0xff]  ;;  %v2638_v27 = vld [vmem:[#allocation5 + $0x758] sm:$0xff] }
 0x406   : > { %2212 = vmatprep.mubr.f32.mxu1 %v6134_v10  ;;  %4132 = vmatprep.mubr.f32.mxu0 %v6134_v10  ;;  %v4850_v57 = vpop.eup %4849  ;;  %v4568_v1 = vpack.c.bf16 %v2620_v26, %v2619_v8  ;;  %v2639_v60 = vld [vmem:[#allocation5 + $0x760] sm:$0xff]  ;;  %v2640_v61 = vld [vmem:[#allocation5 + $0x768] sm:$0xff]  ;;  %v2641_v21 = vld [vmem:[#allocation5 + $0x770] sm:$0xff] }
 0x407   : > { %v2028_v59 = vmul.f32 %v2020_v37, %v1820_v13  ;;  %v1998_v40 = vmul.f32 %v4848_v48, %v1958_v51  ;;  %v1949_v39 = vadd.f32 0.2548296, %v1941_v52  ;;  %v2604_v13 = vld [vmem:[#allocation5 + $0x648] sm:$0xff]  ;;  %v4584_v37 = vpack.c.bf16 %v2628_v50, %v2627_v28  ;;  %v2621_v51 = vld [vmem:[#allocation5 + $0x6d0] sm:$0xff]  ;;  %v2622_v48 = vld [vmem:[#allocation5 + $0x6d8] sm:$0xff] }
 0x408   : > { %2213 = vmatmul.mubr.f32.gmra.mrb[48].mxu1 %v6114_v30  ;;  %v4570_v42 = vpack.c.bf16 %v2604_v13, %v2603_v34  ;;  %v4572_v52 = vpack.c.bf16 %v2622_v48, %v2621_v51  ;;  %v2642_v25 = vld [vmem:[#allocation5 + $0x778] sm:$0xff] }
 0x409   : > { %v6144_v45 = vadd.f32 %v2028_v59, %v5939_v54  ;;  %v2006_v24 = vsub.f32 1.0, %v1998_v40  ;;  %v1957_v41 = vmul.f32 %v4844_v38, %v1949_v39  ;;  %v1822_v54 = vmul.f32 0.5, %v6031_v62  ;;  %v2595_v62 = vld [vmem:[#allocation5 + $0x600] sm:$0xff]  ;;  %4585 = vmatprep.subr.bf16.mxu0 %v4584_v37  ;;  %v2629_v59 = vld [vmem:[#allocation5 + $0x710] sm:$0xff]  ;;  %v2630_v40 = vld [vmem:[#allocation5 + $0x718] sm:$0xff] }
 0x40a   : > { %v4554_v7 = vpack.c.bf16 %v2596_v11, %v2595_v62  ;;  %4587 = vmatpush3.bf16.msra.mxu0 %v4584_v37  ;;  %v2605_v39 = vld [vmem:[#allocation5 + $0x650] sm:$0xff]  ;;  %v2610_v62 = vld [vmem:[#allocation5 + $0x678] sm:$0xff] }
 0x40b   : > { %4133 = vmatmul.mubr.f32.gmra.mrb[42].mxu0 %v6144_v45  ;;  %2217 = vmatprep.mubr.f32.mxu1 %v6144_v45  ;;  %v2014_v9 = vmul.f32 %v2006_v24, %v1846_v3  ;;  %v1997_v0 = vmul.f32 %v4850_v57, %v1957_v41  ;;  %v2606_v24 = vld [vmem:[#allocation5 + $0x658] sm:$0xff]  ;;  %v4588_v41 = vpack.c.bf16 %v2630_v40, %v2629_v59  ;;  %v2623_v57 = vld [vmem:[#allocation5 + $0x6e0] sm:$0xff] }
 0x40c   : > { %2218 = vmatmul.mubr.f32.gmra.mrb[50].mxu1 %v6127_v12  ;;  %v4574_v3 = vpack.c.bf16 %v2606_v24, %v2605_v39 }
 0x40d   : > { %v2022_v18 = vadd.f32 1.0, %v2014_v9  ;;  %v2005_v4 = vsub.f32 1.0, %v1997_v0  ;;  %4589 = vmatprep.subr.bf16.mxu0 %v4588_v41  ;;  %v2624_v9 = vld [vmem:[#allocation5 + $0x6e8] sm:$0xff]  ;;  %v2631_v0 = vld [vmem:[#allocation5 + $0x720] sm:$0xff] }
 0x40e   : > { %4591 = vmatpush3.bf16.msra.mxu0 %v4588_v41 }
 0x40f   : > { %v2013_v38 = vmul.f32 %v2005_v4, %v1845_v5  ;;  %v2030_v55 = vmul.f32 %v2022_v18, %v1822_v54  ;;  %v4576_v18 = vpack.c.bf16 %v2624_v9, %v2623_v57  ;;  %v2632_v4 = vld [vmem:[#allocation5 + $0x728] sm:$0xff]  ;;  %v2607_v54 = vld [vmem:[#allocation5 + $0x660] sm:$0xff] }
 0x410   : > { %v2608_v5 = vld [vmem:[#allocation5 + $0x668] sm:$0xff] }
 0x411   : > { %v2021_v44 = vadd.f32 1.0, %v2013_v38  ;;  %v6155_v43 = vadd.f32 %v2030_v55, %v5956_v22  ;;  %v2611_v22 = vld [vmem:[#allocation5 + $0x680] sm:$0xff]  ;;  %v4592_v38 = vpack.c.bf16 %v2632_v4, %v2631_v0  ;;  %v4578_v55 = vpack.c.bf16 %v2608_v5, %v2607_v54 }
 0x413   : > { %v2029_v29 = vmul.f32 %v2021_v44, %v1821_v20  ;;  %4593 = vmatprep.subr.bf16.mxu0 %v4592_v38  ;;  %v2625_v20 = vld [vmem:[#allocation5 + $0x6f0] sm:$0xff]  ;;  %v2626_v44 = vld [vmem:[#allocation5 + $0x6f8] sm:$0xff] }
 0x414   : > { %4595 = vmatpush3.bf16.msra.mxu0 %v4592_v38 }
 0x415   : > { %v6158_v6 = vadd.f32 %v2029_v29, %v5946_v63  ;;  %v4552_v63 = vpack.c.bf16 %v2612_v2, %v2611_v22  ;;  %v2633_v29 = vld [vmem:[#allocation5 + $0x730] sm:$0xff]  ;;  %v4580_v22 = vpack.c.bf16 %v2626_v44, %v2625_v20  ;;  %v2634_v2 = vld [vmem:[#allocation5 + $0x738] sm:$0xff] }
 0x416   : > { %v4596_v11 = vpack.c.bf16 %v2634_v2, %v2633_v29 }
 0x417   : > { %4135 = vmatprep.mubr.f32.mxu0 %v6158_v6  ;;  %2222 = vmatprep.mubr.f32.mxu1 %v6158_v6 }
 0x418   : > { %2223 = vmatmul.mubr.f32.gmra.mrb[52].mxu1 %v6134_v10  ;;  %4136 = vmatmul.mubr.f32.gmra.mrb[44].mxu0 %v6155_v43 }
 0x419   : > { %2227 = vmatprep.mubr.f32.mxu1 %v6155_v43  ;;  %4138 = vmatprep.mubr.f32.mxu0 %v5112_v33 }
 0x41a   : > { %4553 = vmatprep.subr.bf16.mxu1 %v4552_v63  ;;  %v2609_v63 = vld [vmem:[#allocation5 + $0x670] sm:$0xff]  ;;  %4597 = vmatprep.subr.bf16.mxu0 %v4596_v11 }
 0x41b   : > { %4555 = vmatpush3.bf16.msra.mxu1 %v4554_v7  ;;  %v4582_v7 = vpack.c.bf16 %v2610_v62, %v2609_v63  ;;  %4599 = vmatpush3.bf16.msra.mxu0 %v4596_v11 }
 0x41c   : > { %2228 = vmatmul.mubr.f32.gmra.mrb[54].mxu1 %v6144_v45  ;;  %4139 = vmatmul.mubr.f32.gmra.mrb[46].mxu0 %v5112_v33 }
 0x41d   : > { %4557 = vmatprep.subr.bf16.mxu1 %v4556_v23  ;;  %v3078_v23 = vld [vmem:[#allocation7 + $0x200] sm:$0xff]  ;;  %4601 = vmatprep.subr.bf16.mxu0 %v4600_v53 }
 0x41f   : > { %4559 = vmatpush3.bf16.msra.mxu1 %v4558_v58  ;;  %v6168_v58 = vpack.c.bf16 %v3079_v47, %v3078_v23  ;;  %4603 = vmatpush3.bf16.msra.mxu0 %v4600_v53 }
 0x420   : > { %4561 = vmatprep.subr.bf16.mxu1 %v4560_v49  ;;  %v4604_v49 = vpack.c.bf16 %v2638_v27, %v2637_v56 }
 0x422   : > { %4605 = vmatprep.subr.bf16.mxu0 %v4604_v49 }
 0x423   : > { %4563 = vmatpush3.bf16.msra.mxu1 %v4562_v31  ;;  %4607 = vmatpush3.bf16.msra.mxu0 %v4604_v49  ;;  %v4608_v31 = vpack.c.bf16 %v2640_v61, %v2639_v60 }
 0x424   : > { %4565 = vmatprep.subr.bf16.mxu1 %v4564_v19  ;;  %v4612_v19 = vpack.c.bf16 %v2642_v25, %v2641_v21 }
 0x425   : > { %4609 = vmatprep.subr.bf16.mxu0 %v4608_v31 }
 0x427   : > { %4567 = vmatpush3.bf16.msra.mxu1 %v4566_v17  ;;  %4611 = vmatpush3.bf16.msra.mxu0 %v4608_v31 }
 0x428   : > { %4569 = vmatprep.subr.bf16.mxu1 %v4568_v1  ;;  %4613 = vmatprep.subr.bf16.mxu0 %v4612_v19  ;;  %v6174_v1 = vld [vmem:[%s6635_s2 + $0x3] ss:$0 sm:$0xff] }
 0x42b   : > { %4571 = vmatpush3.bf16.msra.mxu1 %v4570_v42  ;;  %4615 = vmatpush3.bf16.msra.mxu0 %v4612_v19 }
 0x42c   : > { %4573 = vmatprep.subr.bf16.mxu1 %v4572_v52 }
 0x42f   : > { %4575 = vmatpush3.bf16.msra.mxu1 %v4574_v3 }
 0x430   : > { %4577 = vmatprep.subr.bf16.mxu1 %v4576_v18 }
 0x433   : > { %4579 = vmatpush3.bf16.msra.mxu1 %v4578_v55 }
 0x434   : > { %4581 = vmatprep.subr.bf16.mxu1 %v4580_v22 }
 0x437   : > { %4583 = vmatpush3.bf16.msra.mxu1 %v4582_v7 }
 0x438   : > { %4617 = vmatprep.subr.bf16.mxu1 %v6168_v58 }
 0x4ca   : > { %v3752_v46 = vpop.f32.mrb[40].mxu1 }
 0x4cb   : > { %v3753_v35 = vpop.f32.mrb[41].mxu1 }
 0x4cc   : > { %v3754_v17 = vadd.f32 %v3753_v35, %v3752_v46 }
 0x4ce   : > { %v3755_v8 = vpop.f32.mrb[42].mxu1  ;;  %v2195_v51 = vadd.f32 %v3754_v17, %v6174_v1 }
 0x4cf   : > { %v3756_v26 = vpop.f32.mrb[43].mxu1 }
 0x4d0   : > { %v3757_v28 = vadd.f32 %v3756_v26, %v3755_v8 }
 0x4d2   : > { %v2200_v34 = vadd.f32 %v3757_v28, %v6174_v1 }
 0x4d3   : > { %v3758_v50 = vpop.f32.mrb[44].mxu1 }
 0x4d4   : > { %v3759_v13 = vpop.f32.mrb[45].mxu1 }
 0x4d5   : > { %v3760_v37 = vadd.f32 %v3759_v13, %v3758_v50  ;;  %v4131_v42 = vpop.f32.mrb[40].mxu0 }
 0x4d6   : > { %v6178_v48 = vadd.f32 %v4131_v42, %v2200_v34  ;;  %v2299_v59 = vpop.f32.mrb[41].mxu0 }
 0x4d7   : > { %v3761_v52 = vpop.f32.mrb[46].mxu1  ;;  %v6180_v40 = vadd.f32 %v2299_v59, %v2195_v51  ;;  %v2205_v44 = vadd.f32 %v3760_v37, %v6174_v1 }
 0x4d8   : > { %v3762_v39 = vpop.f32.mrb[47].mxu1  ;;  %v6183_v24 = vmul.f32 0.70710677, %v6178_v48 }
 0x4d9   : > { %v3763_v41 = vadd.f32 %v3762_v39, %v3761_v52  ;;  %v6186_v3 = vmul.f32 0.70710677, %v6180_v40 }
 0x4da   : > { %v2371_v57 = vand.u32 2147483647, %v6183_v24  ;;  %vm2355_vm11 = vcmp.ge.f32.partialorder %v6183_v24, 0.0 }
 0x4db   : > { %v3764_v9 = vpop.f32.mrb[48].mxu1  ;;  %v2370_v0 = vand.u32 2147483647, %v6186_v3  ;;  %v2210_v18 = vadd.f32 %v3763_v41, %v6174_v1  ;;  %vm2354_vm12 = vcmp.ge.f32.partialorder %v6186_v3, 0.0 }
 0x4dc   : > { %v3765_v4 = vpop.f32.mrb[49].mxu1  ;;  %v2379_v54 = vmul.f32 0.3275911, %v2371_v57  ;;  %v2483_v56 = vsub.f32 0.0, %v2371_v57 }
 0x4dd   : > { %v3766_v5 = vadd.f32 %v3765_v4, %v3764_v9  ;;  %v2378_v38 = vmul.f32 0.3275911, %v2370_v0  ;;  %v2482_v49 = vsub.f32 0.0, %v2370_v0 }
 0x4de   : > { %v2387_v55 = vadd.f32 1.0, %v2379_v54  ;;  %v4134_v20 = vpop.f32.mrb[42].mxu0  ;;  %v2491_v21 = vmul.f32 %v2483_v56, %v2371_v57  ;;  %v6222_v54 = vmul.f32 0.5, %v6178_v48 }
 0x4df   : > { %v2386_v29 = vadd.f32 1.0, %v2378_v38  ;;  %v6192_v22 = vadd.f32 %v4134_v20, %v2210_v18  ;;  %v2309_v2 = vpop.f32.mrb[43].mxu0  ;;  %v3767_v63 = vpop.f32.mrb[50].mxu1  ;;  %v2490_v35 = vmul.f32 %v2482_v49, %v2370_v0  ;;  %v2215_v13 = vadd.f32 %v3766_v5, %v6174_v1 }
 0x4e0   : > { %4851 = vrcp.f32 %v2387_v55  ;;  %v6194_v62 = vadd.f32 %v2309_v2, %v2205_v44  ;;  %v3768_v11 = vpop.f32.mrb[51].mxu1  ;;  %v2500_v37 = vmul.f32 1.442695, %v2491_v21  ;;  %v6228_v44 = vmul.f32 0.5, %v6180_v40 }
 0x4e1   : > { %4853 = vrcp.f32 %v2386_v29  ;;  %v6197_v7 = vmul.f32 0.70710677, %v6192_v22  ;;  %v3769_v16 = vadd.f32 %v3768_v11, %v3767_v63  ;;  %v2498_v41 = vmul.f32 1.442695, %v2490_v35 }
 0x4e2   : > { %v6200_v36 = vmul.f32 0.70710677, %v6194_v62  ;;  %v2363_v21 = vsel %vm2355_vm11, 1.0, %v5111_v15 }
 0x4e3   : > { %v2373_v23 = vand.u32 2147483647, %v6197_v7  ;;  %v2220_v25 = vadd.f32 %v3769_v16, %v6174_v1  ;;  %vm2357_vm13 = vcmp.ge.f32.partialorder %v6197_v7, 0.0 }
 0x4e4   : > { %v2372_v53 = vand.u32 2147483647, %v6200_v36  ;;  %vm2356_vm14 = vcmp.ge.f32.partialorder %v6200_v36, 0.0  ;;  %v2341_v36 = vmul.f32 0.5, %v6192_v22 }
 0x4e5   : > { %v2381_v47 = vmul.f32 0.3275911, %v2373_v23  ;;  %v2485_v8 = vsub.f32 0.0, %v2373_v23 }
 0x4e6   : > { %v2380_v27 = vmul.f32 0.3275911, %v2372_v53  ;;  %v2484_v28 = vsub.f32 0.0, %v2372_v53 }
 0x4e7   : > { %v2389_v60 = vadd.f32 1.0, %v2381_v47  ;;  %v2493_v18 = vmul.f32 %v2485_v8, %v2373_v23 }
 0x4e8   : > { %v2388_v61 = vadd.f32 1.0, %v2380_v27  ;;  %v2492_v38 = vmul.f32 %v2484_v28, %v2372_v53 }
 0x4e9   : > { %4855 = vrcp.f32 %v2389_v60  ;;  %v2504_v27 = vmul.f32 1.442695, %v2493_v18 }
 0x4ea   : > { %v6204_v31 = vpop.eup %4851  ;;  %4857 = vrcp.f32 %v2388_v61  ;;  %v2502_v24 = vmul.f32 1.442695, %v2492_v38 }
 0x4eb   : > { %v6207_v19 = vpop.eup %4853  ;;  %v2411_v46 = vmul.f32 1.0614054, %v6204_v31  ;;  %v3770_v50 = vpop.f32.mrb[52].mxu1  ;;  %4859 = vpow2.f32 %v2500_v37 }
 0x4ec   : > { %v2410_v17 = vmul.f32 1.0614054, %v6207_v19  ;;  %v4137_v34 = vpop.f32.mrb[44].mxu0  ;;  %v3771_v59 = vpop.f32.mrb[53].mxu1  ;;  %4861 = vpow2.f32 %v2498_v41 }
 0x4ed   : > { %v2419_v26 = vadd.f32 -1.4531521, %v2411_v46  ;;  %v6212_v51 = vadd.f32 %v4137_v34, %v2220_v25  ;;  %v2319_v52 = vpop.f32.mrb[45].mxu0  ;;  %v3772_v57 = vadd.f32 %v3771_v59, %v3770_v50 }
 0x4ee   : > { %v2418_v42 = vadd.f32 -1.4531521, %v2410_v17  ;;  %v6215_v9 = vadd.f32 %v2319_v52, %v2215_v13 }
 0x4ef   : > { %v2427_v39 = vmul.f32 %v6204_v31, %v2419_v26  ;;  %v6219_v4 = vmul.f32 0.70710677, %v6212_v51  ;;  %v3773_v20 = vpop.f32.mrb[54].mxu1  ;;  %v4140_v63 = vpop.f32.mrb[46].mxu0  ;;  %v2225_v28 = vadd.f32 %v3772_v57, %v6174_v1 }
 0x4f0   : > { %v2426_v0 = vmul.f32 %v6207_v19, %v2418_v42  ;;  %v6225_v55 = vmul.f32 0.70710677, %v6215_v9  ;;  %v3774_v23 = vpop.f32.mrb[55].mxu1  ;;  %v2329_v53 = vpop.f32.mrb[47].mxu0 }
 0x4f1   : > { %v2435_v5 = vadd.f32 1.4214138, %v2427_v39  ;;  %v2375_v2 = vand.u32 2147483647, %v6219_v4  ;;  %v3775_v39 = vadd.f32 %v3774_v23, %v3773_v20  ;;  %v6252_v57 = vadd.f32 %v2329_v53, %v2225_v28 }
 0x4f2   : > { %v2434_v29 = vadd.f32 1.4214138, %v2426_v0  ;;  %v6236_v16 = vand.u32 2147483647, %v6225_v55  ;;  %v2362_v20 = vsel %vm2354_vm12, 1.0, %v5111_v15  ;;  %vm2359_vm15 = vcmp.ge.f32.partialorder %v6219_v4, 0.0 }
 0x4f3   : > { %v6231_v11 = vpop.eup %4855  ;;  %v2443_v48 = vmul.f32 %v6204_v31, %v2435_v5  ;;  %v2383_v49 = vmul.f32 0.3275911, %v2375_v2  ;;  %v6262_v23 = vmul.f32 0.70710677, %v6252_v57  ;;  %vm2358_vm0 = vcmp.ge.f32.partialorder %v6225_v55, 0.0 }
 0x4f4   : > { %v6238_v47 = vpop.eup %4857  ;;  %v2442_v40 = vmul.f32 %v6207_v19, %v2434_v29  ;;  %v2413_v56 = vmul.f32 1.0614054, %v6231_v11  ;;  %v2382_v26 = vmul.f32 0.3275911, %v6236_v16  ;;  %v2487_v29 = vsub.f32 0.0, %v2375_v2 }
 0x4f5   : > { %v2451_v60 = vadd.f32 -0.28449672, %v2443_v48  ;;  %v2412_v61 = vmul.f32 1.0614054, %v6238_v47  ;;  %v2391_v35 = vadd.f32 1.0, %v2383_v49  ;;  %v4860_v18 = vpop.eup %4859  ;;  %v2230_v48 = vadd.f32 %v3775_v39, %v6174_v1 }
 0x4f6   : > { %v2450_v25 = vadd.f32 -0.28449672, %v2442_v40  ;;  %v2421_v46 = vadd.f32 -1.4531521, %v2413_v56  ;;  %v2390_v42 = vadd.f32 1.0, %v2382_v26  ;;  %v4862_v40 = vpop.eup %4861  ;;  %v2366_v4 = vsel %vm2358_vm0, 1.0, %v5111_v15 }
 0x4f7   : > { %v2459_v17 = vmul.f32 %v6204_v31, %v2451_v60  ;;  %v2420_v8 = vadd.f32 -1.4531521, %v2412_v61  ;;  %4863 = vrcp.f32 %v2391_v35  ;;  %v6265_v49 = vadd.f32 %v4140_v63, %v2230_v48 }
 0x4f8   : > { %v2458_v50 = vmul.f32 %v6207_v19, %v2450_v25  ;;  %v2429_v34 = vmul.f32 %v6231_v11, %v2421_v46  ;;  %4865 = vpow2.f32 %v2504_v27  ;;  %v6269_v61 = vand.u32 2147483647, %v6262_v23 }
 0x4f9   : > { %v2467_v13 = vadd.f32 0.2548296, %v2459_v17  ;;  %v2428_v37 = vmul.f32 %v6238_v47, %v2420_v8  ;;  %4867 = vpow2.f32 %v2502_v24  ;;  %v2495_v25 = vmul.f32 %v2487_v29, %v2375_v2  ;;  %v3080_v2 = vld [vmem:[#allocation7 + $0x210] sm:$0xff] }
 0x4fa   : > { %v2466_v59 = vadd.f32 0.2548296, %v2458_v50  ;;  %v2437_v52 = vadd.f32 1.4214138, %v2429_v34  ;;  %4869 = vrcp.f32 %v2390_v42  ;;  %v6273_v46 = vmul.f32 0.70710677, %v6265_v49 }
 0x4fb   : > { %v2475_v41 = vmul.f32 %v6204_v31, %v2467_v13  ;;  %v2436_v0 = vadd.f32 1.4214138, %v2428_v37  ;;  %v2384_v17 = vmul.f32 0.3275911, %v6269_v61  ;;  %vm2360_vm1 = vcmp.ge.f32.partialorder %v6262_v23, 0.0 }
 0x4fc   : > { %v2474_v5 = vmul.f32 %v6207_v19, %v2466_v59  ;;  %v2445_v38 = vmul.f32 %v6231_v11, %v2437_v52  ;;  %v2486_v19 = vsub.f32 0.0, %v6236_v16  ;;  %v6282_v34 = vand.u32 2147483647, %v6273_v46 }
 0x4fd   : > { %v2515_v56 = vmul.f32 %v4860_v18, %v2475_v41  ;;  %v2444_v31 = vmul.f32 %v6238_v47, %v2436_v0  ;;  %v2392_v59 = vadd.f32 1.0, %v2384_v17  ;;  %v2508_v0 = vmul.f32 1.442695, %v2495_v25 }
 0x4fe   : > { %v2514_v53 = vmul.f32 %v4862_v40, %v2474_v5  ;;  %v2453_v27 = vadd.f32 -0.28449672, %v2445_v38  ;;  %v2494_v50 = vmul.f32 %v2486_v19, %v6236_v16  ;;  %v2385_v18 = vmul.f32 0.3275911, %v6282_v34  ;;  %v3081_v5 = vld [vmem:[#allocation7 + $0x218] sm:$0xff] }
 0x4ff   : > { %v2523_v60 = vsub.f32 1.0, %v2515_v56  ;;  %v2452_v1 = vadd.f32 -0.28449672, %v2444_v31  ;;  %4871 = vrcp.f32 %v2392_v59  ;;  %v4620_v19 = vpack.c.bf16 %v3081_v5, %v3080_v2 }
 0x500   : > { %v2522_v3 = vsub.f32 1.0, %v2514_v53  ;;  %v2461_v24 = vmul.f32 %v6231_v11, %v2453_v27  ;;  %v2393_v31 = vadd.f32 1.0, %v2385_v18  ;;  %v2506_v7 = vmul.f32 1.442695, %v2494_v50 }
 0x501   : > { %v2531_v35 = vmul.f32 %v2523_v60, %v2363_v21  ;;  %v2460_v63 = vmul.f32 %v6238_v47, %v2452_v1  ;;  %v6278_v8 = vpop.eup %4863  ;;  %v3082_v1 = vld [vmem:[#allocation7 + $0x220] sm:$0xff]  ;;  %v2489_v59 = vsub.f32 0.0, %v6282_v34  ;;  %vm2361_vm2 = vcmp.ge.f32.partialorder %v6273_v46, 0.0 }
 0x502   : > { %v2530_v26 = vmul.f32 %v2522_v3, %v2362_v20  ;;  %v2469_v28 = vadd.f32 0.2548296, %v2461_v24  ;;  %v4866_v13 = vpop.eup %4865  ;;  %v2415_v21 = vmul.f32 1.0614054, %v6278_v8  ;;  %4873 = vrcp.f32 %v2393_v31 }
 0x503   : > { %v2539_v37 = vadd.f32 1.0, %v2531_v35  ;;  %v2468_v42 = vadd.f32 0.2548296, %v2460_v63  ;;  %v4868_v52 = vpop.eup %4867  ;;  %v2364_v3 = vsel %vm2356_vm14, 1.0, %v5111_v15  ;;  %4875 = vpow2.f32 %v2508_v0 }
 0x504   : > { %v2538_v39 = vadd.f32 1.0, %v2530_v26  ;;  %v2477_v41 = vmul.f32 %v6231_v11, %v2469_v28  ;;  %v6287_v38 = vpop.eup %4869  ;;  %v2423_v48 = vadd.f32 -1.4531521, %v2415_v21  ;;  %v2365_v11 = vsel %vm2357_vm13, 1.0, %v5111_v15 }
 0x505   : > { %v2547_v16 = vmul.f32 %v2539_v37, %v6222_v54  ;;  %v2476_v29 = vmul.f32 %v6238_v47, %v2468_v42  ;;  %v2414_v20 = vmul.f32 1.0614054, %v6287_v38  ;;  %v2488_v28 = vsub.f32 0.0, %v6269_v61 }
 0x506   : > { %v2546_v40 = vmul.f32 %v2538_v39, %v6228_v44  ;;  %v2517_v56 = vmul.f32 %v4866_v13, %v2477_v41  ;;  %v2431_v27 = vmul.f32 %v6278_v8, %v2423_v48  ;;  %v3083_v44 = vld [vmem:[#allocation7 + $0x228] sm:$0xff]  ;;  %v2340_v37 = vmul.f32 0.5, %v6194_v62  ;;  %v3085_v62 = vld [vmem:[#allocation7 + $0x238] sm:$0xff] }
 0x507   : > { %v2516_v53 = vmul.f32 %v4868_v52, %v2476_v29  ;;  %v2422_v54 = vadd.f32 -1.4531521, %v2414_v20  ;;  %v6306_v17 = vadd.f32 %v2547_v16, %v6101_v14  ;;  %v4624_v13 = vpack.c.bf16 %v3083_v44, %v3082_v1 }
 0x508   : > { %v2525_v60 = vsub.f32 1.0, %v2517_v56  ;;  %v6298_v47 = vadd.f32 %v2546_v40, %v6086_v32  ;;  %v2439_v25 = vadd.f32 1.4214138, %v2431_v27  ;;  %4877 = vpow2.f32 %v2506_v7  ;;  %v3086_v27 = vld [vmem:[#allocation7 + $0x240] sm:$0xff] }
 0x509   : > { %v2524_v24 = vsub.f32 1.0, %v2516_v53  ;;  %v2430_v63 = vmul.f32 %v6287_v38, %v2422_v54  ;;  %v6317_v52 = vpop.eup %4871  ;;  %v2496_v0 = vmul.f32 %v2488_v28, %v6269_v61  ;;  %v2497_v56 = vmul.f32 %v2489_v59, %v6282_v34  ;;  %v3091_v59 = vld [vmem:[#allocation7 + $0x268] sm:$0xff] }
 0x50a   : > { %v2533_v35 = vmul.f32 %v2525_v60, %v2365_v11  ;;  %2715 = vmatprep.mubr.f32.mxu1 %v6298_v47  ;;  %v2447_v26 = vmul.f32 %v6278_v8, %v2439_v25  ;;  %v2416_v5 = vmul.f32 1.0614054, %v6317_v52 }
 0x50b   : > { %v2532_v32 = vmul.f32 %v2524_v24, %v2364_v3  ;;  %2716 = vmatmul.mubr.f32.vlgmr.msra.gmra.mrb[56].mxu1 %v5112_v33  ;;  %v2438_v50 = vadd.f32 1.4214138, %v2430_v63  ;;  %v2510_v11 = vmul.f32 1.442695, %v2496_v0  ;;  %v2512_v44 = vmul.f32 1.442695, %v2497_v56 }
 0x50c   : > { %v2541_v2 = vadd.f32 1.0, %v2533_v35  ;;  %2720 = vmatprep.mubr.f32.mxu1 %v6306_v17  ;;  %4619 = vmatpush3.bf16.msra.mxu1 %v6168_v58  ;;  %v2455_v42 = vadd.f32 -0.28449672, %v2447_v26  ;;  %v3084_v58 = vld [vmem:[#allocation7 + $0x230] sm:$0xff]  ;;  %v6326_v48 = vpop.eup %4873  ;;  %v2424_v61 = vadd.f32 -1.4531521, %v2416_v5 }
 0x50d   : > { %v2540_v14 = vadd.f32 1.0, %v2532_v32  ;;  %4621 = vmatprep.subr.bf16.mxu1 %v4620_v19  ;;  %v2446_v21 = vmul.f32 %v6287_v38, %v2438_v50  ;;  %v4628_v20 = vpack.c.bf16 %v3085_v62, %v3084_v58  ;;  %v4876_v60 = vpop.eup %4875  ;;  %4879 = vpow2.f32 %v2510_v11  ;;  %v3088_v35 = vld [vmem:[#allocation7 + $0x250] sm:$0xff]  ;;  %v3089_v63 = vld [vmem:[#allocation7 + $0x258] sm:$0xff] }
 0x50e   : > { %v2549_v22 = vmul.f32 %v2541_v2, %v2341_v36  ;;  %v2463_v41 = vmul.f32 %v6278_v8, %v2455_v42  ;;  %v2432_v1 = vmul.f32 %v6317_v52, %v2424_v61  ;;  %v2367_v26 = vsel %vm2359_vm15, 1.0, %v5111_v15  ;;  %v3092_v56 = vld [vmem:[#allocation7 + $0x270] sm:$0xff]  ;;  %v3093_v61 = vld [vmem:[#allocation7 + $0x278] sm:$0xff] }
 0x50f   : > { %v2548_v39 = vmul.f32 %v2540_v14, %v2340_v37  ;;  %2721 = vmatmul.mubr.f32.gmra.mrb[58].mxu1 %v5112_v33  ;;  %v2454_v18 = vadd.f32 -0.28449672, %v2446_v21  ;;  %4881 = vpow2.f32 %v2512_v44  ;;  %v4636_v37 = vpack.c.bf16 %v3089_v63, %v3088_v35  ;;  %v3090_v21 = vld [vmem:[#allocation7 + $0x260] sm:$0xff]  ;;  %v3235_v35 = vld [vmem:[#allocation8 + $0x28] sm:$0xff] }
 0x510   : > { %4623 = vmatpush3.bf16.msra.mxu1 %v4620_v19  ;;  %v2471_v16 = vadd.f32 0.2548296, %v2463_v41  ;;  %v6333_v53 = vadd.f32 %v2549_v22, %v6127_v12  ;;  %v2417_v19 = vmul.f32 1.0614054, %v6326_v48  ;;  %v2440_v3 = vadd.f32 1.4214138, %v2432_v1 }
 0x511   : > { %v6324_v29 = vadd.f32 %v2548_v39, %v6114_v30  ;;  %4625 = vmatprep.subr.bf16.mxu1 %v4624_v13  ;;  %v2462_v40 = vmul.f32 %v6287_v38, %v2454_v18  ;;  %v3087_v30 = vld [vmem:[#allocation7 + $0x248] sm:$0xff]  ;;  %v2343_v14 = vmul.f32 0.5, %v6212_v51  ;;  %v2342_v58 = vmul.f32 0.5, %v6215_v9 }
 0x512   : > { %v2479_v31 = vmul.f32 %v6278_v8, %v2471_v16  ;;  %v2425_v8 = vadd.f32 -1.4531521, %v2417_v19  ;;  %v4632_v24 = vpack.c.bf16 %v3087_v30, %v3086_v27  ;;  %v4878_v25 = vpop.eup %4877  ;;  %v4640_v5 = vpack.c.bf16 %v3091_v59, %v3090_v21  ;;  %v3245_v21 = vld [vmem:[#allocation8 + $0x78] sm:$0xff] }
 0x513   : > { %2725 = vmatprep.mubr.f32.mxu1 %v6324_v29  ;;  %v2470_v54 = vadd.f32 0.2548296, %v2462_v40  ;;  %v4644_v19 = vpack.c.bf16 %v3093_v61, %v3092_v56 }
 0x514   : > { %2726 = vmatmul.mubr.f32.gmra.mrb[60].mxu1 %v5112_v33  ;;  %v2519_v34 = vmul.f32 %v4876_v60, %v2479_v31  ;;  %v2433_v32 = vmul.f32 %v6326_v48, %v2425_v8 }
 0x515   : > { %2730 = vmatprep.mubr.f32.mxu1 %v6333_v53  ;;  %4627 = vmatpush3.bf16.msra.mxu1 %v4624_v13  ;;  %v2478_v12 = vmul.f32 %v6287_v38, %v2470_v54  ;;  %v2448_v38 = vmul.f32 %v6317_v52, %v2440_v3 }
 0x516   : > { %4629 = vmatprep.subr.bf16.mxu1 %v4628_v20  ;;  %v2527_v7 = vsub.f32 1.0, %v2519_v34  ;;  %v2441_v2 = vadd.f32 1.4214138, %v2433_v32  ;;  %v2369_v34 = vsel %vm2361_vm2, 1.0, %v5111_v15  ;;  %v3237_v32 = vld [vmem:[#allocation8 + $0x38] sm:$0xff] }
 0x517   : > { %v2518_v28 = vmul.f32 %v4878_v25, %v2478_v12  ;;  %v2456_v13 = vadd.f32 -0.28449672, %v2448_v38  ;;  %v2345_v12 = vmul.f32 0.5, %v6265_v49  ;;  %v5113_v49 = vmov 0.0|0.0   ;;  %v3239_v38 = vld [vmem:[#allocation8 + $0x48] sm:$0xff] }
 0x518   : > { %2731 = vmatmul.mubr.f32.gmra.mrb[62].mxu1 %v5112_v33  ;;  %v2535_v36 = vmul.f32 %v2527_v7, %v2367_v26  ;;  %v2449_v55 = vmul.f32 %v6326_v48, %v2441_v2  ;;  %4648 = vmatprep.subr.bf16.mxu0 %v5113_v49  ;;  %v3233_v7 = vld [vmem:[#allocation8 + $0x18] sm:$0xff]  ;;  %v3240_v2 = vld [vmem:[#allocation8 + $0x50] sm:$0xff] }
 0x519   : > { %4631 = vmatpush3.bf16.msra.mxu1 %v4628_v20  ;;  %v2526_v50 = vsub.f32 1.0, %v2518_v28  ;;  %v2464_v39 = vmul.f32 %v6317_v52, %v2456_v13  ;;  %v4880_v20 = vpop.eup %4879  ;;  %v3238_v28 = vld [vmem:[#allocation8 + $0x40] sm:$0xff] }
 0x51a   : > { %4633 = vmatprep.subr.bf16.mxu1 %v4632_v24  ;;  %v2543_v42 = vadd.f32 1.0, %v2535_v36  ;;  %v2457_v0 = vadd.f32 -0.28449672, %v2449_v55  ;;  %v4882_v60 = vpop.eup %4881  ;;  %v4661_v36 = vpack.c.bf16 %v3239_v38, %v3238_v28  ;;  %v3244_v55 = vld [vmem:[#allocation8 + $0x70] sm:$0xff] }
 0x51b   : > { %v2534_v22 = vmul.f32 %v2526_v50, %v2366_v4  ;;  %v2472_v18 = vadd.f32 0.2548296, %v2464_v39  ;;  %v3241_v50 = vld [vmem:[#allocation8 + $0x58] sm:$0xff]  ;;  %v4670_v39 = vpack.c.bf16 %v3245_v21, %v3244_v55 }
 0x51c   : > { %v2551_v41 = vmul.f32 %v2543_v42, %v2343_v14  ;;  %v2465_v51 = vmul.f32 %v6326_v48, %v2457_v0  ;;  %v4664_v13 = vpack.c.bf16 %v3241_v50, %v3240_v2  ;;  %v3243_v14 = vld [vmem:[#allocation8 + $0x68] sm:$0xff] }
 0x51d   : > { %4635 = vmatpush3.bf16.msra.mxu1 %v4632_v24  ;;  %v2542_v62 = vadd.f32 1.0, %v2534_v22  ;;  %v2480_v40 = vmul.f32 %v6317_v52, %v2472_v18  ;;  %v2368_v52 = vsel %vm2360_vm1, 1.0, %v5111_v15 }
 0x51e   : > { %4637 = vmatprep.subr.bf16.mxu1 %v4636_v37  ;;  %v2559_v31 = vadd.f32 %v2551_v41, %v6144_v45  ;;  %v2473_v11 = vadd.f32 0.2548296, %v2465_v51 }
 0x51f   : > { %v2550_v16 = vmul.f32 %v2542_v62, %v2342_v58  ;;  %v2520_v27 = vmul.f32 %v4880_v20, %v2480_v40  ;;  %v6382_v40 = vld [vmem:[%s6635_s2 + $0x4] ss:$0 sm:$0xff] }
 0x520   : > { %v2481_v30 = vmul.f32 %v6326_v48, %v2473_v11  ;;  %v2344_v48 = vmul.f32 0.5, %v6252_v57 }
 0x521   : > { %4639 = vmatpush3.bf16.msra.mxu1 %v4636_v37  ;;  %v2558_v9 = vadd.f32 %v2550_v16, %v6134_v10  ;;  %v2528_v54 = vsub.f32 1.0, %v2520_v27  ;;  %v3242_v37 = vld [vmem:[#allocation8 + $0x60] sm:$0xff] }
 0x522   : > { %4641 = vmatprep.subr.bf16.mxu1 %v4640_v5  ;;  %v2521_v45 = vmul.f32 %v4882_v60, %v2481_v30  ;;  %v4667_v42 = vpack.c.bf16 %v3243_v14, %v3242_v37 }
 0x523   : > { %2735 = vmatprep.mubr.f32.mxu1 %v2558_v9  ;;  %4173 = vmatprep.mubr.f32.mxu0 %v2558_v9  ;;  %v2536_v23 = vmul.f32 %v2528_v54, %v2368_v52 }
 0x524   : > { %2736 = vmatmul.mubr.f32.gmra.mrb[64].mxu1 %v6298_v47  ;;  %4174 = vmatmul.mubr.f32.vlgmr.msra.gmra.mrb[48].mxu0 %v2559_v31  ;;  %v2529_v10 = vsub.f32 1.0, %v2521_v45 }
 0x525   : > { %2740 = vmatprep.mubr.f32.mxu1 %v2559_v31  ;;  %4643 = vmatpush3.bf16.msra.mxu1 %v4640_v5  ;;  %v2544_v1 = vadd.f32 1.0, %v2536_v23 }
 0x526   : > { %4645 = vmatprep.subr.bf16.mxu1 %v4644_v19  ;;  %v2537_v8 = vmul.f32 %v2529_v10, %v2369_v34 }
 0x527   : > { %v2552_v46 = vmul.f32 %v2544_v1, %v2344_v48 }
 0x528   : > { %2741 = vmatmul.mubr.f32.gmra.mrb[66].mxu1 %v6306_v17  ;;  %v2545_v44 = vadd.f32 1.0, %v2537_v8 }
 0x529   : > { %4647 = vmatpush3.bf16.msra.mxu1 %v4644_v19  ;;  %v2560_v3 = vadd.f32 %v2552_v46, %v6158_v6  ;;  %v3231_v6 = vld [vmem:[#allocation8 + $0x8] sm:$0xff] }
 0x52a   : > { %v2553_v24 = vmul.f32 %v2545_v44, %v2345_v12 }
 0x52b   : > { %4176 = vmatprep.mubr.f32.mxu0 %v2560_v3  ;;  %2745 = vmatprep.mubr.f32.mxu1 %v2560_v3 }
 0x52c   : > { %v2561_v25 = vadd.f32 %v2553_v24, %v6155_v43  ;;  %2746 = vmatmul.mubr.f32.gmra.mrb[68].mxu1 %v6324_v29  ;;  %v3230_v43 = vld [vmem:[#allocation8] sm:$0xff] }
 0x52d   : > { %v4649_v57 = vpack.c.bf16 %v3231_v6, %v3230_v43 }
 0x52e   : > { %4177 = vmatmul.mubr.f32.gmra.mrb[50].mxu0 %v2561_v25  ;;  %2750 = vmatprep.mubr.f32.mxu1 %v2561_v25 }
 0x52f   : > { %4179 = vmatprep.mubr.f32.mxu0 %v5112_v33  ;;  %4650 = vmatpush3.bf16.msra.mxu0 %v4649_v57 }
 0x530   : > { %2751 = vmatmul.mubr.f32.gmra.mrb[70].mxu1 %v6333_v53  ;;  %4651 = vmatprep.subr.bf16.mxu0 %v5113_v49 }
 0x531   : > { %4217 = vmatprep.mubr.f32.mxu1 %v6298_v47  ;;  %v3232_v47 = vld [vmem:[#allocation8 + $0x10] sm:$0xff] }
 0x532   : > { %4180 = vmatmul.mubr.f32.gmra.mrb[52].mxu0 %v5112_v33 }
 0x533   : > { %4182 = vmatprep.mubr.f32.mxu0 %v5112_v33 }
 0x534   : > { %4218 = vmatmul.mubr.f32.vlgmr.msra.gmra.mrb[72].mxu1 %v6306_v17  ;;  %v4652_v17 = vpack.c.bf16 %v3233_v7, %v3232_v47 }
 0x535   : > { %4220 = vmatprep.mubr.f32.mxu1 %v6324_v29  ;;  %v3234_v29 = vld [vmem:[#allocation8 + $0x20] sm:$0xff] }
 0x536   : > { %4183 = vmatmul.mubr.f32.gmra.mrb[54].mxu0 %v5112_v33  ;;  %v4655_v63 = vpack.c.bf16 %v3235_v35, %v3234_v29 }
 0x537   : > { %4653 = vmatpush3.bf16.msra.mxu0 %v4652_v17  ;;  %4261 = vmatprep.mubr.msk.f32.mxu0 %vm5114_vm3, %v5112_v33 }
 0x538   : > { %4221 = vmatmul.mubr.f32.gmra.mrb[74].mxu1 %v6333_v53  ;;  %4654 = vmatprep.subr.bf16.mxu0 %v5113_v49  ;;  %v3236_v53 = vld [vmem:[#allocation8 + $0x30] sm:$0xff] }
 0x539   : > { %4223 = vmatprep.mubr.f32.mxu1 %v2558_v9  ;;  %v4658_v26 = vpack.c.bf16 %v3237_v32, %v3236_v53 }
 0x53b   : > { %4656 = vmatpush3.bf16.msra.mxu0 %v4655_v63 }
 0x53c   : > { %4224 = vmatmul.mubr.f32.gmra.mrb[76].mxu1 %v2559_v31  ;;  %4657 = vmatprep.subr.bf16.mxu0 %v5113_v49 }
 0x53d   : > { %4226 = vmatprep.mubr.f32.mxu1 %v2560_v3 }
 0x53f   : > { %4659 = vmatpush3.bf16.msra.mxu0 %v4658_v26 }
 0x540   : > { %4227 = vmatmul.mubr.f32.gmra.mrb[78].mxu1 %v2561_v25  ;;  %4660 = vmatprep.subr.bf16.mxu0 %v5113_v49 }
 0x543   : > { %4662 = vmatpush3.bf16.msra.mxu0 %v4661_v36 }
 0x544   : > { %4663 = vmatprep.subr.bf16.mxu0 %v5113_v49 }
 0x547   : > { %4665 = vmatpush3.bf16.msra.mxu0 %v4664_v13 }
 0x548   : > { %4666 = vmatprep.subr.bf16.mxu0 %v5113_v49 }
 0x54b   : > { %4668 = vmatpush3.bf16.msra.mxu0 %v4667_v42 }
 0x54c   : > { %4669 = vmatprep.subr.bf16.mxu0 %v5113_v49 }
 0x54f   : > { %4671 = vmatpush3.bf16.msra.mxu0 %v4670_v39 }
 0x5de   : > { %v3832_v4 = vpop.f32.mrb[56].mxu1 }
 0x5df   : > { %v3833_v59 = vpop.f32.mrb[57].mxu1 }
 0x5e0   : > { %v3834_v22 = vadd.f32 %v3833_v59, %v3832_v4 }
 0x5e2   : > { %v3835_v41 = vpop.f32.mrb[58].mxu1  ;;  %v2718_v31 = vadd.f32 %v3834_v22, %v6382_v40 }
 0x5e3   : > { %v3836_v0 = vpop.f32.mrb[59].mxu1 }
 0x5e4   : > { %v3837_v58 = vadd.f32 %v3836_v0, %v3835_v41 }
 0x5e6   : > { %v2723_v56 = vadd.f32 %v3837_v58, %v6382_v40 }
 0x5e7   : > { %v3838_v62 = vpop.f32.mrb[60].mxu1 }
 0x5e8   : > { %v3839_v18 = vpop.f32.mrb[61].mxu1 }
 0x5e9   : > { %v3840_v5 = vadd.f32 %v3839_v18, %v3838_v62 }
 0x5eb   : > { %v3841_v51 = vpop.f32.mrb[62].mxu1  ;;  %v2728_v25 = vadd.f32 %v3840_v5, %v6382_v40 }
 0x5ec   : > { %v3842_v33 = vpop.f32.mrb[63].mxu1 }
 0x5ed   : > { %v3843_v16 = vadd.f32 %v3842_v33, %v3841_v51 }
 0x5ef   : > { %v2733_v44 = vadd.f32 %v3843_v16, %v6382_v40 }
 0x5f7   : > { %v3844_v61 = vpop.f32.mrb[64].mxu1  ;;  %v4175_v20 = vpop.f32.mrb[48].mxu0 }
 0x5f8   : > { %v2828_v11 = vadd.f32 %v4175_v20, %v2723_v56  ;;  %v3845_v27 = vpop.f32.mrb[65].mxu1  ;;  %v2822_v9 = vpop.f32.mrb[49].mxu0 }
 0x5f9   : > { %v3846_v30 = vadd.f32 %v3845_v27, %v3844_v61  ;;  %v2823_v19 = vadd.f32 %v2822_v9, %v2718_v31 }
 0x5fa   : > { %v2870_v60 = vmul.f32 0.70710677, %v2828_v11  ;;  %v6413_v21 = vmul.f32 0.5, %v2828_v11 }
 0x5fb   : > { %v6386_v54 = vmul.f32 0.70710677, %v2823_v19  ;;  %v3847_v52 = vpop.f32.mrb[66].mxu1  ;;  %v2738_v26 = vadd.f32 %v3846_v30, %v6382_v40  ;;  %v6426_v51 = vmul.f32 0.5, %v2823_v19 }
 0x5fc   : > { %v2894_v45 = vand.u32 2147483647, %v2870_v60  ;;  %v3848_v23 = vpop.f32.mrb[67].mxu1  ;;  %vm2878_vm4 = vcmp.ge.f32.partialorder %v2870_v60, 0.0 }
 0x5fd   : > { %v2893_v10 = vand.u32 2147483647, %v6386_v54  ;;  %v3849_v48 = vadd.f32 %v3848_v23, %v3847_v52  ;;  %v6431_v61 = vsel %vm2878_vm4, 1.0, %v5111_v15  ;;  %vm2877_vm5 = vcmp.ge.f32.partialorder %v6386_v54, 0.0 }
 0x5fe   : > { %v2902_v1 = vmul.f32 0.3275911, %v2894_v45  ;;  %v3006_v6 = vsub.f32 0.0, %v2894_v45 }
 0x5ff   : > { %v2901_v34 = vmul.f32 0.3275911, %v2893_v10  ;;  %v3850_v12 = vpop.f32.mrb[68].mxu1  ;;  %v3005_v17 = vsub.f32 0.0, %v2893_v10  ;;  %v2743_v35 = vadd.f32 %v3849_v48, %v6382_v40 }
 0x600   : > { %v2910_v8 = vadd.f32 1.0, %v2902_v1  ;;  %v3851_v3 = vpop.f32.mrb[69].mxu1  ;;  %v3014_v38 = vmul.f32 %v3006_v6, %v2894_v45 }
 0x601   : > { %v2909_v46 = vadd.f32 1.0, %v2901_v34  ;;  %v4178_v24 = vpop.f32.mrb[50].mxu0  ;;  %v3852_v43 = vadd.f32 %v3851_v3, %v3850_v12  ;;  %v3013_v42 = vmul.f32 %v3005_v17, %v2893_v10 }
 0x602   : > { %4883 = vrcp.f32 %v2910_v8  ;;  %v6391_v57 = vadd.f32 %v4178_v24, %v2733_v44  ;;  %v2832_v49 = vpop.f32.mrb[51].mxu0  ;;  %v3023_v41 = vmul.f32 1.442695, %v3014_v38 }
 0x603   : > { %4885 = vrcp.f32 %v2909_v46  ;;  %v6393_v47 = vadd.f32 %v2832_v49, %v2728_v25  ;;  %v3853_v7 = vpop.f32.mrb[70].mxu1  ;;  %v3021_v31 = vmul.f32 1.442695, %v3013_v42  ;;  %v2748_v8 = vadd.f32 %v3852_v43, %v6382_v40 }
 0x604   : > { %v6396_v29 = vmul.f32 0.70710677, %v6391_v57  ;;  %v3854_v63 = vpop.f32.mrb[71].mxu1 }
 0x605   : > { %v6400_v53 = vmul.f32 0.70710677, %v6393_v47  ;;  %v4181_v32 = vpop.f32.mrb[52].mxu0  ;;  %v3855_v28 = vadd.f32 %v3854_v63, %v3853_v7  ;;  %v6469_v54 = vmul.f32 0.5, %v6393_v47 }
 0x606   : > { %v2896_v36 = vand.u32 2147483647, %v6396_v29  ;;  %v6404_v2 = vadd.f32 %v4181_v32, %v2743_v35  ;;  %v2842_v50 = vpop.f32.mrb[53].mxu0  ;;  %v6455_v35 = vsel %vm2877_vm5, 1.0, %v5111_v15  ;;  %v6461_v32 = vmul.f32 0.5, %v6391_v57 }
 0x607   : > { %v2895_v13 = vand.u32 2147483647, %v6400_v53  ;;  %v6407_v37 = vadd.f32 %v2842_v50, %v2738_v26  ;;  %v6409_v14 = vpop.f32.mrb[72].mxu1  ;;  %v2753_v30 = vadd.f32 %v3855_v28, %v6382_v40  ;;  %vm2880_vm6 = vcmp.ge.f32.partialorder %v6396_v29, 0.0 }
 0x608   : > { %v2904_v4 = vmul.f32 0.3275911, %v2896_v36  ;;  %v6411_v55 = vpop.f32.mrb[73].mxu1  ;;  %v6416_v22 = vmul.f32 0.70710677, %v6404_v2  ;;  %v3008_v60 = vsub.f32 0.0, %v2896_v36 }
 0x609   : > { %v2903_v59 = vmul.f32 0.3275911, %v2895_v13  ;;  %v6421_v58 = vmul.f32 0.70710677, %v6407_v37  ;;  %v4184_v62 = vpop.f32.mrb[54].mxu0  ;;  %v3007_v23 = vsub.f32 0.0, %v2895_v13 }
 0x60a   : > { %v2912_v0 = vadd.f32 1.0, %v2904_v4  ;;  %v2852_v16 = vpop.f32.mrb[55].mxu0  ;;  %v2898_v9 = vand.u32 2147483647, %v6416_v22  ;;  %v6447_v24 = vadd.f32 %v4184_v62, %v2753_v30  ;;  %v3016_v6 = vmul.f32 %v3008_v60, %v2896_v36 }
 0x60b   : > { %v2911_v33 = vadd.f32 1.0, %v2903_v59  ;;  %v6428_v56 = vpop.f32.mrb[74].mxu1  ;;  %v2897_v52 = vand.u32 2147483647, %v6421_v58  ;;  %v6449_v7 = vadd.f32 %v2852_v16, %v2748_v8  ;;  %v3015_v40 = vmul.f32 %v3007_v23, %v2895_v13 }
 0x60c   : > { %v6418_v39 = vpop.eup %4883  ;;  %4887 = vrcp.f32 %v2912_v0  ;;  %v6434_v11 = vpop.f32.mrb[75].mxu1  ;;  %v2906_v10 = vmul.f32 0.3275911, %v2898_v9  ;;  %v3010_v3 = vsub.f32 0.0, %v2898_v9  ;;  %v6464_v26 = vmul.f32 0.70710677, %v6447_v24 }
 0x60d   : > { %v6423_v18 = vpop.eup %4885  ;;  %v2934_v5 = vmul.f32 1.0614054, %v6418_v39  ;;  %4889 = vrcp.f32 %v2911_v33  ;;  %v2905_v34 = vmul.f32 0.3275911, %v2897_v52  ;;  %v3009_v50 = vsub.f32 0.0, %v2897_v52 }
 0x60e   : > { %v2933_v20 = vmul.f32 1.0614054, %v6423_v18  ;;  %4891 = vpow2.f32 %v3023_v41  ;;  %v2914_v44 = vadd.f32 1.0, %v2906_v10  ;;  %v3018_v36 = vmul.f32 %v3010_v3, %v2898_v9 }
 0x60f   : > { %v2942_v27 = vadd.f32 -1.4531521, %v2934_v5  ;;  %v6441_v48 = vpop.f32.mrb[76].mxu1  ;;  %4893 = vpow2.f32 %v3021_v31  ;;  %v2913_v49 = vadd.f32 1.0, %v2905_v34  ;;  %v3027_v4 = vmul.f32 1.442695, %v3016_v6 }
 0x610   : > { %v2941_v19 = vadd.f32 -1.4531521, %v2933_v20  ;;  %v6445_v46 = vpop.f32.mrb[77].mxu1  ;;  %4895 = vrcp.f32 %v2914_v44  ;;  %v2900_v59 = vand.u32 2147483647, %v6464_v26  ;;  %v3017_v30 = vmul.f32 %v3009_v50, %v2897_v52 }
 0x611   : > { %v2950_v45 = vmul.f32 %v6418_v39, %v2942_v27  ;;  %4897 = vrcp.f32 %v2913_v49  ;;  %v3025_v62 = vmul.f32 1.442695, %v3015_v40  ;;  %v6479_v5 = vmul.f32 0.70710677, %v6449_v7 }
 0x612   : > { %v2949_v1 = vmul.f32 %v6423_v18, %v2941_v19  ;;  %v2908_v16 = vmul.f32 0.3275911, %v2900_v59  ;;  %v3031_v9 = vmul.f32 1.442695, %v3018_v36  ;;  %4899 = vpow2.f32 %v3027_v4 }
 0x613   : > { %v2958_v12 = vadd.f32 1.4214138, %v2950_v45  ;;  %v6457_v43 = vpop.f32.mrb[78].mxu1  ;;  %4901 = vpow2.f32 %v3025_v62  ;;  %v6487_v34 = vand.u32 2147483647, %v6479_v5  ;;  %vm2879_vm7 = vcmp.ge.f32.partialorder %v6400_v53, 0.0 }
 0x614   : > { %v2957_v25 = vadd.f32 1.4214138, %v2949_v1  ;;  %v6466_v28 = vpop.f32.mrb[79].mxu1  ;;  %v2916_v23 = vadd.f32 1.0, %v2908_v16  ;;  %vm2882_vm8 = vcmp.ge.f32.partialorder %v6416_v22, 0.0  ;;  %vm2881_vm9 = vcmp.ge.f32.partialorder %v6421_v58, 0.0 }
 0x615   : > { %v2966_v17 = vmul.f32 %v6418_v39, %v2958_v12  ;;  %v6493_v12 = vsel %vm2880_vm6, 1.0, %v5111_v15  ;;  %v2907_v6 = vmul.f32 0.3275911, %v6487_v34  ;;  %vm2884_vm10 = vcmp.ge.f32.partialorder %v6464_v26, 0.0 }
 0x616   : > { %v2965_v63 = vmul.f32 %v6423_v18, %v2957_v25  ;;  %v6471_v13 = vpop.eup %4887  ;;  %4903 = vrcp.f32 %v2916_v23  ;;  %v3029_v25 = vmul.f32 1.442695, %v3017_v30  ;;  %vm2883_vm11 = vcmp.ge.f32.partialorder %v6479_v5, 0.0 }
 0x617   : > { %v2974_v38 = vadd.f32 -0.28449672, %v2966_v17  ;;  %v6474_v57 = vpop.eup %4889  ;;  %v2936_v0 = vmul.f32 1.0614054, %v6471_v13  ;;  %4905 = vpow2.f32 %v3031_v9  ;;  %v2915_v36 = vadd.f32 1.0, %v2907_v6 }
 0x618   : > { %v2973_v42 = vadd.f32 -0.28449672, %v2965_v63  ;;  %v2935_v33 = vmul.f32 1.0614054, %v6474_v57  ;;  %v4892_v20 = vpop.eup %4891  ;;  %v2868_v26 = vmul.f32 0.5, %v6447_v24 }
 0x619   : > { %v2982_v41 = vmul.f32 %v6418_v39, %v2974_v38  ;;  %v2944_v27 = vadd.f32 -1.4531521, %v2936_v0  ;;  %v4894_v19 = vpop.eup %4893  ;;  %v6508_v0 = vld [vmem:[%s6637_s4 + $0x4] ss:$0 sm:$0xff]  ;;  %4907 = vrcp.f32 %v2915_v36 }
 0x61a   : > { %v2981_v47 = vmul.f32 %v6423_v18, %v2973_v42  ;;  %v2943_v45 = vadd.f32 -1.4531521, %v2935_v33  ;;  %v6496_v44 = vpop.eup %4895  ;;  %4909 = vpow2.f32 %v3029_v25  ;;  %v3199_v24 = vadd.f32 %v6508_v0, %v6466_v28 }
 0x61b   : > { %v2990_v31 = vadd.f32 0.2548296, %v2982_v41  ;;  %v2952_v1 = vmul.f32 %v6471_v13, %v2944_v27  ;;  %v6499_v49 = vpop.eup %4897  ;;  %v3012_v41 = vsub.f32 0.0, %v2900_v59 }
 0x61c   : > { %v2989_v60 = vadd.f32 0.2548296, %v2981_v47  ;;  %v2951_v52 = vmul.f32 %v6474_v57, %v2943_v45  ;;  %v2937_v38 = vmul.f32 1.0614054, %v6499_v49 }
 0x61d   : > { %v2998_v10 = vmul.f32 %v6418_v39, %v2990_v31  ;;  %v2960_v39 = vadd.f32 1.4214138, %v2952_v1  ;;  %v3020_v23 = vmul.f32 %v3012_v41, %v2900_v59 }
 0x61e   : > { %v2997_v8 = vmul.f32 %v6423_v18, %v2989_v60  ;;  %v2959_v40 = vadd.f32 1.4214138, %v2951_v52  ;;  %v2938_v18 = vmul.f32 1.0614054, %v6496_v44  ;;  %v2945_v33 = vadd.f32 -1.4531521, %v2937_v38  ;;  %v4900_v60 = vpop.eup %4899 }
 0x61f   : > { %v3038_v3 = vmul.f32 %v4892_v20, %v2998_v10  ;;  %v2968_v63 = vmul.f32 %v6471_v13, %v2960_v39  ;;  %v4902_v1 = vpop.eup %4901 }
 0x620   : > { %v3037_v17 = vmul.f32 %v4894_v19, %v2997_v8  ;;  %v2967_v42 = vmul.f32 %v6474_v57, %v2959_v40  ;;  %v2946_v4 = vadd.f32 -1.4531521, %v2938_v18  ;;  %v2953_v9 = vmul.f32 %v6499_v49, %v2945_v33  ;;  %v6521_v39 = vpop.eup %4903 }
 0x621   : > { %v3046_v29 = vsub.f32 1.0, %v3038_v3  ;;  %v2976_v47 = vadd.f32 -0.28449672, %v2968_v63  ;;  %v3174_v19 = vadd.f32 %v6409_v14, %v6508_v0  ;;  %v3169_v3 = vadd.f32 %v6508_v0, %v6411_v55 }
 0x622   : > { %v3045_v50 = vsub.f32 1.0, %v3037_v17  ;;  %v2975_v20 = vadd.f32 -0.28449672, %v2967_v42  ;;  %v2954_v31 = vmul.f32 %v6496_v44, %v2946_v4  ;;  %v2961_v8 = vadd.f32 1.4214138, %v2953_v9 }
 0x623   : > { %v3054_v62 = vmul.f32 %v3046_v29, %v6431_v61  ;;  %v2984_v27 = vmul.f32 %v6471_v13, %v2976_v47  ;;  %v3011_v14 = vsub.f32 0.0, %v6487_v34  ;;  %v2940_v18 = vmul.f32 1.0614054, %v6521_v39 }
 0x624   : > { %v3053_v16 = vmul.f32 %v3045_v50, %v6455_v35  ;;  %v2983_v61 = vmul.f32 %v6474_v57, %v2975_v20  ;;  %v2962_v45 = vadd.f32 1.4214138, %v2954_v31  ;;  %v2969_v40 = vmul.f32 %v6499_v49, %v2961_v8 }
 0x625   : > { %v3062_v30 = vadd.f32 1.0, %v3054_v62  ;;  %v2992_v35 = vadd.f32 0.2548296, %v2984_v27  ;;  %v2948_v42 = vadd.f32 -1.4531521, %v2940_v18  ;;  %v2887_v31 = vsel %vm2879_vm7, 1.0, %v5111_v15 }
 0x626   : > { %v3061_v10 = vadd.f32 1.0, %v3053_v16  ;;  %v2991_v25 = vadd.f32 0.2548296, %v2983_v61  ;;  %v2970_v6 = vmul.f32 %v6496_v44, %v2962_v45  ;;  %v2977_v50 = vadd.f32 -0.28449672, %v2969_v40 }
 0x627   : > { %v3070_v52 = vmul.f32 %v3062_v30, %v6413_v21  ;;  %v3000_v59 = vmul.f32 %v6471_v13, %v2992_v35  ;;  %v4906_v21 = vpop.eup %4905  ;;  %v3035_v4 = vmul.f32 1.442695, %v3020_v23  ;;  %v2956_v16 = vmul.f32 %v6521_v39, %v2948_v42 }
 0x628   : > { %v3069_v17 = vmul.f32 %v3061_v10, %v6426_v51  ;;  %v2999_v55 = vmul.f32 %v6474_v57, %v2991_v25  ;;  %v2978_v63 = vadd.f32 -0.28449672, %v2970_v6  ;;  %v6533_v62 = vpop.eup %4907  ;;  %v2985_v33 = vmul.f32 %v6499_v49, %v2977_v50 }
 0x629   : > { %v3208_v29 = vadd.f32 %v3174_v19, %v3070_v52  ;;  %v3040_v36 = vmul.f32 %v4900_v60, %v3000_v59  ;;  %v3019_v57 = vmul.f32 %v3011_v14, %v6487_v34  ;;  %v4910_v20 = vpop.eup %4909  ;;  %v2939_v30 = vmul.f32 1.0614054, %v6533_v62 }
 0x62a   : > { %v3207_v38 = vadd.f32 %v3169_v3, %v3069_v17  ;;  %v3039_v51 = vmul.f32 %v4902_v1, %v2999_v55  ;;  %v2986_v13 = vmul.f32 %v6496_v44, %v2978_v63  ;;  %v2890_v60 = vsel %vm2882_vm8, 1.0, %v5111_v15 }
 0x62b   : > { %v3048_v47 = vsub.f32 1.0, %v3040_v36  ;;  %v2993_v61 = vadd.f32 0.2548296, %v2985_v33  ;;  %v2964_v45 = vadd.f32 1.4214138, %v2956_v16  ;;  %4911 = vpow2.f32 %v3035_v4 }
 0x62c   : > { %v3215_v41 = vadd.f32 %v3208_v29, %v3207_v38  ;;  %v3047_v27 = vsub.f32 1.0, %v3039_v51  ;;  %v2994_v9 = vadd.f32 0.2548296, %v2986_v13  ;;  %v2947_v10 = vadd.f32 -1.4531521, %v2939_v30 }
 0x62d   : > { %v3056_v19 = vmul.f32 %v3048_v47, %v6493_v12  ;;  %v3001_v53 = vmul.f32 %v6499_v49, %v2993_v61  ;;  %v2972_v1 = vmul.f32 %v6521_v39, %v2964_v45  ;;  %v3033_v35 = vmul.f32 1.442695, %v3019_v57 }
 0x62e   : > { %v3055_v23 = vmul.f32 %v3047_v27, %v2887_v31  ;;  %v3002_v34 = vmul.f32 %v6496_v44, %v2994_v9  ;;  %v2955_v12 = vmul.f32 %v6533_v62, %v2947_v10  ;;  %v3184_v44 = vadd.f32 %v6428_v56, %v6508_v0 }
 0x62f   : > { %v3064_v8 = vadd.f32 1.0, %v3056_v19  ;;  %v3041_v3 = vmul.f32 %v4910_v20, %v3001_v53  ;;  %v2980_v25 = vadd.f32 -0.28449672, %v2972_v1  ;;  %v3179_v59 = vadd.f32 %v6508_v0, %v6434_v11 }
 0x630   : > { %v3042_v52 = vmul.f32 %v4906_v21, %v3002_v34  ;;  %v3063_v22 = vadd.f32 1.0, %v3055_v23  ;;  %v2963_v17 = vadd.f32 1.4214138, %v2955_v12  ;;  %4913 = vpow2.f32 %v3033_v35 }
 0x631   : > { %v3072_v6 = vmul.f32 %v3064_v8, %v6461_v32  ;;  %v3049_v40 = vsub.f32 1.0, %v3041_v3  ;;  %v2988_v18 = vmul.f32 %v6521_v39, %v2980_v25  ;;  %v2889_v32 = vsel %vm2881_vm9, 1.0, %v5111_v15 }
 0x632   : > { %v3050_v14 = vsub.f32 1.0, %v3042_v52  ;;  %v3071_v49 = vmul.f32 %v3063_v22, %v6469_v54  ;;  %v2971_v55 = vmul.f32 %v6533_v62, %v2963_v17  ;;  %v2866_v54 = vmul.f32 0.5, %v6404_v2 }
 0x633   : > { %v3210_v29 = vadd.f32 %v3184_v44, %v3072_v6  ;;  %v3057_v63 = vmul.f32 %v3049_v40, %v2889_v32  ;;  %v2996_v38 = vadd.f32 0.2548296, %v2988_v18  ;;  %v2865_v42 = vmul.f32 0.5, %v6407_v37 }
 0x634   : > { %v3058_v21 = vmul.f32 %v3050_v14, %v2890_v60  ;;  %v3209_v56 = vadd.f32 %v3179_v59, %v3071_v49  ;;  %v2979_v36 = vadd.f32 -0.28449672, %v2971_v55  ;;  %v3194_v33 = vadd.f32 %v6441_v48, %v6508_v0 }
 0x635   : > { %v3004_v51 = vmul.f32 %v6521_v39, %v2996_v38  ;;  %v3065_v13 = vadd.f32 1.0, %v3057_v63  ;;  %v4912_v4 = vpop.eup %4911  ;;  %v2892_v27 = vsel %vm2884_vm10, 1.0, %v5111_v15  ;;  %v3204_v10 = vadd.f32 %v6457_v43, %v6508_v0 }
 0x636   : > { %v3216_v50 = vadd.f32 %v3215_v41, %v3209_v56  ;;  %v3066_v11 = vadd.f32 1.0, %v3058_v21  ;;  %v2987_v47 = vmul.f32 %v6533_v62, %v2979_v36  ;;  %v3189_v41 = vadd.f32 %v6508_v0, %v6445_v46 }
 0x637   : > { %v3044_v57 = vmul.f32 %v4912_v4, %v3004_v51  ;;  %v3073_v2 = vmul.f32 %v3065_v13, %v2865_v42  ;;  %v2891_v46 = vsel %vm2883_vm11, 1.0, %v5111_v15 }
 0x638   : > { %v3074_v58 = vmul.f32 %v3066_v11, %v2866_v54  ;;  %v3217_v16 = vadd.f32 %v3216_v50, %v3210_v29  ;;  %v2995_v20 = vadd.f32 0.2548296, %v2987_v47 }
 0x639   : > { %v3052_v31 = vsub.f32 1.0, %v3044_v57  ;;  %v3211_v39 = vadd.f32 %v3189_v41, %v3073_v2 }
 0x63a   : > { %v3212_v37 = vadd.f32 %v3194_v33, %v3074_v58  ;;  %v3003_v9 = vmul.f32 %v6533_v62, %v2995_v20  ;;  %v4914_v30 = vpop.eup %4913  ;;  %v2867_v62 = vmul.f32 0.5, %v6449_v7  ;;  %v3246_v7 = vld [vmem:[%s6639_s6] sm:$0x1] }
 0x63b   : > { %v3060_v19 = vmul.f32 %v3052_v31, %v2892_v27  ;;  %v3218_v60 = vadd.f32 %v3217_v16, %v3211_v39 }
 0x63c   : > { %v3043_v48 = vmul.f32 %v4914_v30, %v3003_v9 }
 0x63d   : > { %v3068_v61 = vadd.f32 1.0, %v3060_v19  ;;  %v3219_v45 = vadd.f32 %v3218_v60, %v3212_v37 }
 0x63e   : > { %v3051_v23 = vsub.f32 1.0, %v3043_v48 }
 0x63f   : > { %v3076_v34 = vmul.f32 %v3068_v61, %v2868_v26 }
 0x640   : > { %v3059_v53 = vmul.f32 %v3051_v23, %v2891_v46 }
 0x641   : > { %v3214_v1 = vadd.f32 %v3204_v10, %v3076_v34 }
 0x642   : > { %v3067_v35 = vadd.f32 1.0, %v3059_v53 }
 0x644   : > { %v3075_v5 = vmul.f32 %v3067_v35, %v2867_v62 }
 0x646   : > { %v3213_v8 = vadd.f32 %v3199_v24, %v3075_v5 }
 0x648   : > { %v3220_v52 = vadd.f32 %v3219_v45, %v3213_v8 }
 0x64a   : > { %v3221_v12 = vadd.f32 %v3220_v52, %v3214_v1 }
 0x64c   : > { %v3222_v22 = vrot.slane %v3221_v12, 4 }
 0x64e   : > { %v3223_v15 = vadd.f32 %v3222_v22, %v3221_v12 }
 0x650   : > { %v3224_v3 = vrot.slane %v3223_v15, 2 }
 0x652   : > { %v3225_v25 = vadd.f32 %v3224_v3, %v3223_v15 }
 0x654   : > { %v3226_v43 = vrot.slane %v3225_v25, 1 }
 0x656   : > { %v3227_v6 = vadd.f32 %v3226_v43, %v3225_v25 }
 0x658   : > { %v3229_v44 = vmul.f32 0.015625, %v3227_v6 }
 0x65a   : > { %4262 = vmatmul.mubr.f32.vlgmr.msra.gmra.mrb[56].mxu0 %v3229_v44 }
 0x72d   : > { %v3313_v28 = vpop.f32.mrb[56].mxu0 }
 0x72e   : > { %v3314_v0 = vadd.f32 %v3313_v28, %v3246_v7  ;;  %v4263_v14 = vpop.f32.mrb[57].mxu0 }
 0x730   : > { %3317 = vst [vmem:[%s339_s15] sm:$0x1] %v3314_v0 }
 0x731   : > { %5042 = shalt.err (!%p5039_p4)
}
 0x732   : > { %s5043_s17 = scalar_lea.hbm %s6589_s12, 16  ;;  %s5047_s30 = scalar_lea.hbm %s6640_s7, 32 }
 0x733   : > { %p5044_p9 = scmp.ne.s32.totalorder %s6589_s12, %s5043_s17  ;;  %p5048_p8 = scmp.lt.u32.totalorder %s6589_s12, %s6640_s7 }
 0x734   : > { %p5049_p13 = scmp.lt.u32.totalorder %s5047_s30, %s5043_s17  ;;  %p5051_p10 = scmp.lt.u32.totalorder %s5043_s17, %s6589_s12 }
 0x735   : > { %p5045_p0 = pnand %p5044_p9, %p5310_p5 }
 0x736   : > { %p5050_p6 = por %p5049_p13, %p5048_p8 }
 0x737   : > { %p5046_p11 = pneg %p5045_p0 }
 0x738   : > { %p5052_p3 = por %p5051_p10, %p5050_p6 }
 0x73a   : > { %p5053_p7 = pnand %p5052_p3, %p5046_p11 }
 0x73c   : > { %5056 = shalt.err (!%p5053_p7)
}
 0x73d   : > { %4686 = dma.vmem_to_hbm [thread:$0]  (%p5310_p5), %s6591_s10, 16, %s6589_s12, %s3319_s21  }
 0x73e PF: > { %s6660_s15 = sld [smem:[#allocation15_spill]]  ;;  %s3343_s14 = sand.u32 1, %s5091_s24  }
 0x73f   : > { %p6662_p1 = scmp.ge.s32.totalorder %s5103_s27, 2  ;;  %s3344_s8 = scalar_lea.sflag [#allocation4], %s3343_s14 }
 0x744   : > { %p6661_p12 = scmp.ne.s32.totalorder %s6660_s15, 0 }
 0x746   : > { %p4703_p2 = pnand %p6662_p1, %p6661_p12 }
 0x748   : > { %5086 = dma.done.wait (!%p4703_p2), %s3344_s8, 16  }
 0x749   : > { %5088 = vsyncadd (!%p4703_p2), %s3344_s8, 4294967280  ;;  %p22_p4 = scmp.ge.s32.totalorder %s5296_s22, 4   ;;  %s6663_s24 = smov %s5095_s25 }
 0x74a   : > { %s6664_s25 = smov %s5099_s26  ;;  %s6665_s26 = smov %s5306_s18 }
 0x74b   : > { %s6666_s27 = smov %s5296_s22  ;;  %24 = sbr.rel (!%p22_p4) target bundleno = 7 (0x7), region = 115 }
 0x752   :  { %3348 = vsyncpa [#allocation3], 1 }
 0x753   :  { %3350 = vsyncpa [#allocation3 + $0x1], 1 }
 0x754   :  { %3351 = vsyncpa [#allocation6], 1 }
 0x755   :  { %3352 = vsyncpa [#allocation9], 1 }
 0x756   :  { %3353 = vsyncpa [#allocation4], 1 }
 0x757   :  { %3355 = vsyncpa [#allocation4 + $0x1], 1 }

</bundles_post_ra>
